<compile_context>
chip_gen: v7x
topology: tpu7x:2x2x1
jax: 0.10.0
libtpu: 0.0.40
codegen_flags: <defaults>
</compile_context>

<pallas_src>
import functools
import math

import numpy as np
import jax
import jax.numpy as jnp
from jax.experimental import pallas as pl
from jax.experimental.pallas import tpu as pltpu

EPS = 1e-5              # PyTorch LayerNorm / BatchNorm2d default eps
_LANE = 128             # lane width / MXU granularity target
_SUB = 8                # f32 sublane height
_TM = 256               # row tile for the parallel-M (no-BN) conv path
_VMEM_LIMIT = 16 * 1024 * 1024   # generous for <1 MiB of live buffers per call

# ---------------------------------------------------------------------------
# Small synthetic config (mirrors cfg['model'][...] of the PyTorch module)
# ---------------------------------------------------------------------------
CFG = dict(
    img_shape=16,
    enc_conv_channels=[8, 16], enc_kernels=[3, 4], enc_strides=[1, 2], enc_norm=[True, False],
    enc_fc=[64, 32],
    latent_dim=32,
    dec_conv_channels=[8, 3], dec_kernels=[4, 3], dec_strides=[2, 1], dec_norm=[True, False],
)

_VMEM_SPEC = pl.BlockSpec(memory_space=pltpu.MemorySpace.VMEM)


def _round_up(x, m):
    return (x + m - 1) // m * m


# ---------------------------------------------------------------------------
# Pallas kernels
# ---------------------------------------------------------------------------
def _fc_stack_kernel(*refs, true_dims):
    """Fused chain of Linear(+bias) -> LayerNorm -> ReLU layers.

    refs = (x_ref, [w, b, gamma, beta] * n_layers, o_ref).  Feature dims are
    zero-padded to 128 multiples; `true_dims` are the un-padded widths so LN uses
    the correct divisor and padded lanes are masked out of the centered sum-sq.
    All activations stay in vregs/VMEM for the whole stack.
    """
    x_ref, o_ref = refs[0], refs[-1]
    h = x_ref[...]                                       # bf16 activations
    for li, d in enumerate(true_dims):
        w_ref, b_ref, g_ref, be_ref = refs[1 + 4 * li: 5 + 4 * li]
        y = jnp.dot(h, w_ref[...], preferred_element_type=jnp.float32) + b_ref[...]
        inv_d = 1.0 / d
        mu = jnp.sum(y, axis=-1, keepdims=True) * inv_d          # padded lanes are exact 0
        lane = jax.lax.broadcasted_iota(jnp.int32, y.shape, 1)
        diff = jnp.where(lane < d, y - mu, 0.0)                  # two-pass, masked
        var = jnp.sum(diff * diff, axis=-1, keepdims=True) * inv_d
        y = diff * jax.lax.rsqrt(var + EPS) * g_ref[...] + be_ref[...]
        h = jnp.maximum(y, 0.0).astype(jnp.bfloat16)
    o_ref[...] = h


def _conv_relu_bn_kernel(p_ref, w_ref, g_ref, beta_ref, o_ref, *, apply_bn, m_true):
    """im2col-patches @ weight -> ReLU -> (optional) BatchNorm (train-mode stats).

    ReLU BEFORE BatchNorm matches the PyTorch Sequential order
    (Conv2d -> activation -> BatchNorm2d).  Weights arrive pre-padded (K, Cout
    multiples of 128) in bf16; BN uses two-pass statistics in f32; the output is
    a lane-dense (M, 128k) slab cast to o_ref.dtype (bf16 between layers).
    """
    y = jnp.dot(p_ref[...], w_ref[...], preferred_element_type=jnp.float32)
    y = jnp.maximum(y, 0.0)
    if apply_bn:
        inv_m = 1.0 / m_true
        mu = jnp.sum(y, axis=0, keepdims=True) * inv_m
        diff = y - mu
        var = jnp.sum(diff * diff, axis=0, keepdims=True) * inv_m
        y = diff * jax.lax.rsqrt(var + EPS) * g_ref[...] + beta_ref[...]
    o_ref[...] = y.astype(o_ref.dtype)


# ---------------------------------------------------------------------------
# Pallas wrappers
# ---------------------------------------------------------------------------
def fc_stack_pallas(z_pad, layers):
    """Single pallas_call for the whole encoder-fc + decoder-fc chain."""
    bp = z_pad.shape[0]
    np_last = layers[-1]["w"].shape[1]
    inputs = [z_pad]
    for l in layers:
        inputs += [l["w"], l["b"], l["gamma"], l["beta"]]
    kern = functools.partial(_fc_stack_kernel, true_dims=tuple(l["d"] for l in layers))
    return pl.pallas_call(
        kern,
        out_shape=jax.ShapeDtypeStruct((bp, np_last), jnp.bfloat16),
        in_specs=[_VMEM_SPEC] * len(inputs),
        out_specs=_VMEM_SPEC,
        compiler_params=pltpu.CompilerParams(vmem_limit_bytes=_VMEM_LIMIT),
    )(*inputs)


def _fc_stack_ref(z_pad, layers):
    h = z_pad
    for l in layers:
        y = jnp.dot(h, l["w"], preferred_element_type=jnp.float32) + l["b"]
        d = l["d"]
        mu = jnp.sum(y, axis=-1, keepdims=True) / d
        diff = jnp.where(jnp.arange(y.shape[-1]) < d, y - mu, 0.0)
        var = jnp.sum(diff * diff, axis=-1, keepdims=True) / d
        y = diff * jax.lax.rsqrt(var + EPS) * l["gamma"] + l["beta"]
        h = jnp.maximum(y, 0.0).astype(jnp.bfloat16)
    return h


def conv_matmul(patches, w, gamma, beta, apply_bn, out_dtype):
    M = patches.shape[0]
    Kp, Np = w.shape

    if apply_bn or M < 2 * _TM:
        # BatchNorm needs global (N,H,W) stats -> single block; also used for tiny M.
        # TODO(synk): grid + scratch-accumulated stats for v7x megacore once M grows.
        kern = functools.partial(_conv_relu_bn_kernel, apply_bn=apply_bn, m_true=M)
        return pl.pallas_call(
            kern,
            out_shape=jax.ShapeDtypeStruct((M, Np), out_dtype),
            in_specs=[_VMEM_SPEC] * 4,
            out_specs=_VMEM_SPEC,
            compiler_params=pltpu.CompilerParams(vmem_limit_bytes=_VMEM_LIMIT),
        )(patches, w, gamma, beta)

    # No BatchNorm -> rows are independent: tile M and shard across TensorCores (v7x).
    Mp = _round_up(M, _TM)
    if Mp != M:
        patches = jnp.pad(patches, ((0, Mp - M), (0, 0)))
    kern = functools.partial(_conv_relu_bn_kernel, apply_bn=False, m_true=_TM)
    out = pl.pallas_call(
        kern,
        out_shape=jax.ShapeDtypeStruct((Mp, Np), out_dtype),
        grid=(Mp // _TM,),
        in_specs=[pl.BlockSpec((_TM, Kp), lambda i: (i, 0)),
                  pl.BlockSpec((Kp, Np), lambda i: (0, 0)),
                  pl.BlockSpec((1, Np), lambda i: (0, 0)),
                  pl.BlockSpec((1, Np), lambda i: (0, 0))],
        out_specs=pl.BlockSpec((_TM, Np), lambda i: (i, 0)),
        compiler_params=pltpu.CompilerParams(
            dimension_semantics=("parallel",), vmem_limit_bytes=_VMEM_LIMIT),
    )(patches, w, gamma, beta)
    return out[:M] if Mp != M else out


def _conv_matmul_ref(patches, w, gamma, beta, apply_bn, out_dtype):
    y = jnp.dot(patches, w, preferred_element_type=jnp.float32)
    y = jnp.maximum(y, 0.0)
    if apply_bn:
        mu = jnp.mean(y, axis=0, keepdims=True)
        diff = y - mu
        var = jnp.mean(diff * diff, axis=0, keepdims=True)
        y = diff * jax.lax.rsqrt(var + EPS) * gamma + beta
    return y.astype(out_dtype)


# ---------------------------------------------------------------------------
# Glue: im2col, conv / conv-transpose wrappers (NHWC).  All ops here are fused
# by XLA under jit into a single gather/pad kernel between pallas_calls.
# ---------------------------------------------------------------------------
def im2col(x, kh, kw, stride):
    N, H, W, C = x.shape
    Ho = (H - kh) // stride + 1
    Wo = (W - kw) // stride + 1
    cols = [x[:, i:i + stride * Ho:stride, j:j + stride * Wo:stride, :]
            for i in range(kh) for j in range(kw)]
    p = jnp.stack(cols, axis=3)                      # (N, Ho, Wo, kh*kw, C)
    return p.reshape(N * Ho * Wo, kh * kw * C), (N, Ho, Wo)


def _apply_conv(patches, layer, mm_fn):
    Kp = layer["w"].shape[0]
    p = patches.astype(jnp.bfloat16)
    if Kp != p.shape[1]:
        p = jnp.pad(p, ((0, 0), (0, Kp - p.shape[1])))      # fused with the im2col gather
    y = mm_fn(p, layer["w"], layer["gamma"], layer["beta"], layer["norm"], layer["out_dtype"])
    return y[:, :layer["cout"]]                              # fused read into next layer's glue


def conv2d_block(x_nhwc, layer, mm_fn):
    patches, (N, Ho, Wo) = im2col(x_nhwc, layer["k"], layer["k"], layer["stride"])
    y = _apply_conv(patches, layer, mm_fn)
    return y.reshape(N, Ho, Wo, layer["cout"])


def conv_transpose2d_block(x_nhwc, layer, mm_fn):
    # transposed conv == zero-dilate by stride, pad by (k-1), stride-1 conv, flipped kernel
    kh = kw = layer["k"]
    stride = layer["stride"]
    N, H, W, C = x_nhwc.shape
    if stride > 1:
        z = jnp.zeros((N, (H - 1) * stride + 1, (W - 1) * stride + 1, C), x_nhwc.dtype)
        x_nhwc = z.at[:, ::stride, ::stride, :].set(x_nhwc)
    x_nhwc = jnp.pad(x_nhwc, ((0, 0), (kh - 1, kh - 1), (kw - 1, kw - 1), (0, 0)))
    patches, (N2, Ho, Wo) = im2col(x_nhwc, kh, kw, 1)
    y = _apply_conv(patches, layer, mm_fn)
    return y.reshape(N2, Ho, Wo, layer["cout"])


# ---------------------------------------------------------------------------
# Raw parameters (deterministic, shapes derived exactly as in the PyTorch __init__)
# ---------------------------------------------------------------------------
def init_params(seed=0):
    key = jax.random.PRNGKey(seed)
    kiter = iter(jax.random.split(key, 32))

    def nrm(shape, scale):
        return scale * jax.random.normal(next(kiter), shape, dtype=jnp.float32)

    enc_conv, cin, s = [], 3, CFG["img_shape"]
    for cout, k, st, norm in zip(CFG["enc_conv_channels"], CFG["enc_kernels"],
                                 CFG["enc_strides"], CFG["enc_norm"]):
        enc_conv.append(dict(w=nrm((cout, cin, k, k), 1.0 / math.sqrt(cin * k * k)),
                             gamma=jnp.ones((cout,), jnp.float32),
                             beta=jnp.zeros((cout,), jnp.float32),
                             stride=st, norm=norm))
        cin = cout
        s = (s - k) // st + 1

    flatten_size = s * s * cin

    enc_fc, fin = [], flatten_size
    for fout in CFG["enc_fc"]:
        enc_fc.append(dict(w=nrm((fin, fout), 1.0 / math.sqrt(fin)),
                           b=jnp.zeros((fout,), jnp.float32),
                           gamma=jnp.ones((fout,), jnp.float32),
                           beta=jnp.zeros((fout,), jnp.float32)))
        fin = fout

    dec_fc, fcs = [], CFG["enc_fc"]
    for i in range(len(fcs) - 1, -1, -1):
        _in = fcs[i]
        out = flatten_size if i == 0 else fcs[i - 1]
        dec_fc.append(dict(w=nrm((_in, out), 1.0 / math.sqrt(_in)),
                           b=jnp.zeros((out,), jnp.float32),
                           gamma=jnp.ones((out,), jnp.float32),
                           beta=jnp.zeros((out,), jnp.float32)))

    final_conv_channels = CFG["enc_conv_channels"][-1]
    latent_img = int(math.sqrt(flatten_size / final_conv_channels))

    dec_conv, cin = [], final_conv_channels
    for cout, k, st, norm in zip(CFG["dec_conv_channels"], CFG["dec_kernels"],
                                 CFG["dec_strides"], CFG["dec_norm"]):
        dec_conv.append(dict(w=nrm((cin, cout, k, k), 1.0 / math.sqrt(cin * k * k)),
                             gamma=jnp.ones((cout,), jnp.float32),
                             beta=jnp.zeros((cout,), jnp.float32),
                             stride=st, norm=norm))
        cin = cout

    return dict(enc_conv=enc_conv, enc_fc=enc_fc, dec_fc=dec_fc, dec_conv=dec_conv,
                final_conv_channels=final_conv_channels, latent_img=latent_img)


# ---------------------------------------------------------------------------
# One-time parameter preparation: matmul layout, 128-padding, bf16, and the
# flatten/un-flatten permutations folded into the first/last FC weights.
# ---------------------------------------------------------------------------
def prepare_params(raw):
    def pad_row_vec(v, n):
        v = v.reshape(1, -1)
        return jnp.pad(v, ((0, 0), (0, n - v.shape[1])))

    def prep_conv(layer, transposed, out_dtype):
        w = layer["w"]
        if transposed:                       # ConvTranspose2d weight (Cin, Cout, KH, KW)
            cin, cout, kh, kw = w.shape
            wm = jnp.transpose(jnp.flip(w, axis=(2, 3)), (2, 3, 0, 1)).reshape(kh * kw * cin, cout)
        else:                                # Conv2d weight (Cout, Cin, KH, KW)
            cout, cin, kh, kw = w.shape
            wm = jnp.transpose(w, (2, 3, 1, 0)).reshape(kh * kw * cin, cout)
        Kp = _round_up(wm.shape[0], _LANE)
        Np = _round_up(cout, _LANE)
        wm = jnp.pad(wm, ((0, Kp - wm.shape[0]), (0, Np - cout))).astype(jnp.bfloat16)
        return dict(w=wm, gamma=pad_row_vec(layer["gamma"], Np),
                    beta=pad_row_vec(layer["beta"], Np),
                    k=kh, stride=layer["stride"], norm=layer["norm"],
                    cout=cout, out_dtype=out_dtype)

    enc_conv = [prep_conv(l, False, jnp.bfloat16) for l in raw["enc_conv"]]
    n_dec = len(raw["dec_conv"])
    dec_conv = [prep_conv(l, True, jnp.float32 if i == n_dec - 1 else jnp.bfloat16)
                for i, l in enumerate(raw["dec_conv"])]

    # NHWC-flat -> NCHW-flat index permutation for the latent image (S, S, C)
    S, C = raw["latent_img"], raw["final_conv_channels"]
    p = np.arange(S * S * C)
    h, w_, c = p // (S * C), (p // C) % S, p % C
    perm = (c * S * S + h * S + w_).astype(np.int32)

    fc_raw = list(raw["enc_fc"]) + list(raw["dec_fc"])
    n_fc = len(fc_raw)
    fc = []
    for i, l in enumerate(fc_raw):
        w, b, g, be = l["w"], l["b"], l["gamma"], l["beta"]
        if i == 0:                 # absorb NCHW flatten: permute input rows to NHWC order
            w = w[perm, :]
        if i == n_fc - 1:          # absorb view(b,C,S,S)->NHWC: permute output columns
            w, b, g, be = w[:, perm], b[perm], g[perm], be[perm]
        d = int(w.shape[1])
        Kp = _round_up(w.shape[0], _LANE)
        Np = _round_up(d, _LANE)
        w = jnp.pad(w, ((0, Kp - w.shape[0]), (0, Np - d))).astype(jnp.bfloat16)
        fc.append(dict(w=w, b=pad_row_vec(b, Np), gamma=pad_row_vec(g, Np),
                       beta=pad_row_vec(be, Np), d=d))

    return dict(enc_conv=enc_conv, dec_conv=dec_conv, fc=fc,
                final_conv_channels=C, latent_img=S)


# ---------------------------------------------------------------------------
# Full forward pass (AutoEncoder.forward)
# ---------------------------------------------------------------------------
def autoencoder_forward(prep, x_nchw, noise_key, *, use_pallas=True):
    mm_fn = conv_matmul if use_pallas else _conv_matmul_ref

    # ---- Encoder convs ----
    x = jnp.transpose(x_nchw, (0, 2, 3, 1))           # NCHW -> NHWC (only input transpose)
    for layer in prep["enc_conv"]:
        x = conv2d_block(x, layer, mm_fn)
    B = x.shape[0]
    # NHWC flatten; the NCHW (channel-major) order is absorbed into the first FC weight rows.
    z = x.reshape(B, -1)

    # ---- Fused FC stack (encoder fc + decoder fc, all Linear+LN+ReLU) ----
    fc = prep["fc"]
    Bp = max(_round_up(B, _SUB), _SUB)                # pad batch to a full sublane once
    Kp0 = fc[0]["w"].shape[0]
    z = jnp.pad(z.astype(jnp.bfloat16), ((0, Bp - B), (0, Kp0 - z.shape[1])))
    z = fc_stack_pallas(z, fc) if use_pallas else _fc_stack_ref(z, fc)
    z = z[:B, :fc[-1]["d"]]

    # ---- Decoder convs ----
    S, C = prep["latent_img"], prep["final_conv_channels"]
    # Already NHWC: the view(b, C, S, S) un-flatten is absorbed into the last FC weight cols.
    y = z.reshape(B, S, S, C)
    for layer in prep["dec_conv"]:
        y = conv_transpose2d_block(y, layer, mm_fn)
    y = jnp.transpose(y, (0, 3, 1, 2))                # final output back to NCHW (f32)

    noise = jax.random.normal(noise_key, (1,), dtype=jnp.float32)   # mirrors torch.randn(1)
    return y, noise


# ---------------------------------------------------------------------------
if __name__ == "__main__":
    raw = init_params(0)
    prep = prepare_params(raw)

    key = jax.random.PRNGKey(0)
    xkey, nkey = jax.random.split(key)
    x = jax.random.normal(xkey, (2, 3, CFG["img_shape"], CFG["img_shape"]), dtype=jnp.float32)

    fwd = jax.jit(functools.partial(autoencoder_forward, prep, use_pallas=True))
    recon, noise = fwd(x, nkey)
    recon = jax.block_until_ready(recon)
    noise = jax.block_until_ready(noise)

    # sanity check against a pure-JAX reference of the same math
    recon_ref, _ = autoencoder_forward(prep, x, nkey, use_pallas=False)
    recon_ref = jax.block_until_ready(recon_ref)
    np.testing.assert_allclose(np.asarray(recon), np.asarray(recon_ref), rtol=1e-2, atol=1e-2)

    assert recon.shape == x.shape, recon.shape
    assert noise.shape == (1,)
    print("KERNEL_OK")
</pallas_src>

<mosaic_0001>
module attributes {stable_mosaic.version = 11 : i64} {
  func.func @_conv_relu_bn_kernel(%arg0: memref<392x128xbf16, #tpu.memory_space<vmem>>, %arg1: memref<128x128xbf16, #tpu.memory_space<vmem>>, %arg2: memref<1x128xf32, #tpu.memory_space<vmem>>, %arg3: memref<1x128xf32, #tpu.memory_space<vmem>>, %arg4: memref<392x128xbf16, #tpu.memory_space<vmem>>) attributes {dimension_semantics = [], scalar_prefetch = 0 : i64, scratch_operands = 0 : i64, tpu.core_type = #tpu.core_type<tc>} {
    %c0 = arith.constant 0 : index
    %c0_0 = arith.constant 0 : index
    %0 = vector.load %arg0[%c0, %c0_0] : memref<392x128xbf16, #tpu.memory_space<vmem>>, vector<392x128xbf16>
    %c0_1 = arith.constant 0 : index
    %c0_2 = arith.constant 0 : index
    %1 = vector.load %arg1[%c0_1, %c0_2] : memref<128x128xbf16, #tpu.memory_space<vmem>>, vector<128x128xbf16>
    %cst = arith.constant dense<0.000000e+00> : vector<392x128xf32>
    %2 = tpu.matmul %0, %1, %cst {dimension_numbers = #tpu.dot_dimension_numbers<[1], [0], [0], [1], [0, 0, 1, 1], [], []>} : vector<392x128xbf16>, vector<128x128xbf16>, vector<392x128xf32> -> vector<392x128xf32>
    %cst_3 = arith.constant 0.000000e+00 : f32
    %3 = vector.broadcast %cst_3 : f32 to vector<392x128xf32>
    %4 = arith.maximumf %2, %3 : vector<392x128xf32>
    %cst_4 = arith.constant dense<0.000000e+00> : vector<128xf32>
    %5 = vector.multi_reduction <add>, %4, %cst_4 [0] : vector<392x128xf32> to vector<128xf32>
    %6 = vector.shape_cast %5 : vector<128xf32> to vector<1x128xf32>
    %cst_5 = arith.constant 0.00255102036 : f32
    %7 = vector.broadcast %cst_5 : f32 to vector<1x128xf32>
    %8 = arith.mulf %6, %7 : vector<1x128xf32>
    %9 = vector.broadcast %8 : vector<1x128xf32> to vector<392x128xf32>
    %10 = arith.subf %4, %9 : vector<392x128xf32>
    %11 = arith.mulf %10, %10 : vector<392x128xf32>
    %cst_6 = arith.constant dense<0.000000e+00> : vector<128xf32>
    %12 = vector.multi_reduction <add>, %11, %cst_6 [0] : vector<392x128xf32> to vector<128xf32>
    %13 = vector.shape_cast %12 : vector<128xf32> to vector<1x128xf32>
    %cst_7 = arith.constant 0.00255102036 : f32
    %14 = vector.broadcast %cst_7 : f32 to vector<1x128xf32>
    %15 = arith.mulf %13, %14 : vector<1x128xf32>
    %cst_8 = arith.constant 9.99999974E-6 : f32
    %16 = vector.broadcast %cst_8 : f32 to vector<1x128xf32>
    %17 = arith.addf %15, %16 : vector<1x128xf32>
    %18 = math.rsqrt %17 : vector<1x128xf32>
    %19 = vector.broadcast %18 : vector<1x128xf32> to vector<392x128xf32>
    %20 = arith.mulf %10, %19 : vector<392x128xf32>
    %c0_9 = arith.constant 0 : index
    %c0_10 = arith.constant 0 : index
    %21 = vector.load %arg2[%c0_9, %c0_10] : memref<1x128xf32, #tpu.memory_space<vmem>>, vector<1x128xf32>
    %22 = vector.broadcast %21 : vector<1x128xf32> to vector<392x128xf32>
    %23 = arith.mulf %20, %22 : vector<392x128xf32>
    %c0_11 = arith.constant 0 : index
    %c0_12 = arith.constant 0 : index
    %24 = vector.load %arg3[%c0_11, %c0_12] : memref<1x128xf32, #tpu.memory_space<vmem>>, vector<1x128xf32>
    %25 = vector.broadcast %24 : vector<1x128xf32> to vector<392x128xf32>
    %26 = arith.addf %23, %25 : vector<392x128xf32>
    %27 = arith.truncf %26 : vector<392x128xf32> to vector<392x128xbf16>
    %c0_13 = arith.constant 0 : index
    %c0_14 = arith.constant 0 : index
    %28 = vector.load %arg4[%c0_13, %c0_14] : memref<392x128xbf16, #tpu.memory_space<vmem>>, vector<392x128xbf16>
    tpu.vector_store %arg4[%c0_13, %c0_14], %27 {strides = array<i32>} : memref<392x128xbf16, #tpu.memory_space<vmem>>, vector<392x128xbf16>,
    return
  }
}

module attributes {stable_mosaic.version = 11 : i64} {
  func.func @_conv_relu_bn_kernel(%arg0: memref<72x128xbf16, #tpu.memory_space<vmem>>, %arg1: memref<128x128xbf16, #tpu.memory_space<vmem>>, %arg2: memref<1x128xf32, #tpu.memory_space<vmem>>, %arg3: memref<1x128xf32, #tpu.memory_space<vmem>>, %arg4: memref<72x128xbf16, #tpu.memory_space<vmem>>) attributes {dimension_semantics = [], scalar_prefetch = 0 : i64, scratch_operands = 0 : i64, tpu.core_type = #tpu.core_type<tc>} {
    %c0 = arith.constant 0 : index
    %c0_0 = arith.constant 0 : index
    %0 = vector.load %arg0[%c0, %c0_0] : memref<72x128xbf16, #tpu.memory_space<vmem>>, vector<72x128xbf16>
    %c0_1 = arith.constant 0 : index
    %c0_2 = arith.constant 0 : index
    %1 = vector.load %arg1[%c0_1, %c0_2] : memref<128x128xbf16, #tpu.memory_space<vmem>>, vector<128x128xbf16>
    %cst = arith.constant dense<0.000000e+00> : vector<72x128xf32>
    %2 = tpu.matmul %0, %1, %cst {dimension_numbers = #tpu.dot_dimension_numbers<[1], [0], [0], [1], [0, 0, 1, 1], [], []>} : vector<72x128xbf16>, vector<128x128xbf16>, vector<72x128xf32> -> vector<72x128xf32>
    %cst_3 = arith.constant 0.000000e+00 : f32
    %3 = vector.broadcast %cst_3 : f32 to vector<72x128xf32>
    %4 = arith.maximumf %2, %3 : vector<72x128xf32>
    %5 = arith.truncf %4 : vector<72x128xf32> to vector<72x128xbf16>
    %c0_4 = arith.constant 0 : index
    %c0_5 = arith.constant 0 : index
    %6 = vector.load %arg4[%c0_4, %c0_5] : memref<72x128xbf16, #tpu.memory_space<vmem>>, vector<72x128xbf16>
    tpu.vector_store %arg4[%c0_4, %c0_5], %5 {strides = array<i32>} : memref<72x128xbf16, #tpu.memory_space<vmem>>, vector<72x128xbf16>,
    return
  }
}

module attributes {stable_mosaic.version = 11 : i64} {
  func.func @_fc_stack_kernel(%arg0: memref<8x640xbf16, #tpu.memory_space<vmem>>, %arg1: memref<640x128xbf16, #tpu.memory_space<vmem>>, %arg2: memref<1x128xf32, #tpu.memory_space<vmem>>, %arg3: memref<1x128xf32, #tpu.memory_space<vmem>>, %arg4: memref<1x128xf32, #tpu.memory_space<vmem>>, %arg5: memref<128x128xbf16, #tpu.memory_space<vmem>>, %arg6: memref<1x128xf32, #tpu.memory_space<vmem>>, %arg7: memref<1x128xf32, #tpu.memory_space<vmem>>, %arg8: memref<1x128xf32, #tpu.memory_space<vmem>>, %arg9: memref<128x128xbf16, #tpu.memory_space<vmem>>, %arg10: memref<1x128xf32, #tpu.memory_space<vmem>>, %arg11: memref<1x128xf32, #tpu.memory_space<vmem>>, %arg12: memref<1x128xf32, #tpu.memory_space<vmem>>, %arg13: memref<128x640xbf16, #tpu.memory_space<vmem>>, %arg14: memref<1x640xf32, #tpu.memory_space<vmem>>, %arg15: memref<1x640xf32, #tpu.memory_space<vmem>>, %arg16: memref<1x640xf32, #tpu.memory_space<vmem>>, %arg17: memref<8x640xbf16, #tpu.memory_space<vmem>>) attributes {dimension_semantics = [], scalar_prefetch = 0 : i64, scratch_operands = 0 : i64, tpu.core_type = #tpu.core_type<tc>} {
    %c0 = arith.constant 0 : index
    %c0_0 = arith.constant 0 : index
    %0 = vector.load %arg0[%c0, %c0_0] : memref<8x640xbf16, #tpu.memory_space<vmem>>, vector<8x640xbf16>
    %c0_1 = arith.constant 0 : index
    %c0_2 = arith.constant 0 : index
    %1 = vector.load %arg1[%c0_1, %c0_2] : memref<640x128xbf16, #tpu.memory_space<vmem>>, vector<640x128xbf16>
    %cst = arith.constant dense<0.000000e+00> : vector<8x128xf32>
    %2 = tpu.matmul %0, %1, %cst {dimension_numbers = #tpu.dot_dimension_numbers<[1], [0], [0], [1], [0, 0, 1, 1], [], []>} : vector<8x640xbf16>, vector<640x128xbf16>, vector<8x128xf32> -> vector<8x128xf32>
    %c0_3 = arith.constant 0 : index
    %c0_4 = arith.constant 0 : index
    %3 = vector.load %arg2[%c0_3, %c0_4] : memref<1x128xf32, #tpu.memory_space<vmem>>, vector<1x128xf32>
    %4 = vector.broadcast %3 : vector<1x128xf32> to vector<8x128xf32>
    %5 = arith.addf %2, %4 : vector<8x128xf32>
    %cst_5 = arith.constant dense<0.000000e+00> : vector<8xf32>
    %6 = vector.multi_reduction <add>, %5, %cst_5 [1] : vector<8x128xf32> to vector<8xf32>
    %7 = vector.shape_cast %6 : vector<8xf32> to vector<8x1xf32>
    %cst_6 = arith.constant 1.562500e-02 : f32
    %8 = vector.broadcast %cst_6 : f32 to vector<8x1xf32>
    %9 = arith.mulf %7, %8 : vector<8x1xf32>
    %10 = tpu.iota {dimensions = array<i32: 1>} : vector<8x128xi32>
    %c64_i32 = arith.constant 64 : i32
    %11 = vector.broadcast %c64_i32 : i32 to vector<8x128xi32>
    %12 = arith.cmpi slt, %10, %11 : vector<8x128xi32>
    %13 = vector.broadcast %9 : vector<8x1xf32> to vector<8x128xf32>
    %14 = arith.subf %5, %13 : vector<8x128xf32>
    %cst_7 = arith.constant 0.000000e+00 : f32
    %15 = vector.broadcast %cst_7 : f32 to vector<8x128xf32>
    %16 = arith.select %12, %14, %15 : vector<8x128xi1>, vector<8x128xf32>
    %17 = arith.mulf %16, %16 : vector<8x128xf32>
    %cst_8 = arith.constant dense<0.000000e+00> : vector<8xf32>
    %18 = vector.multi_reduction <add>, %17, %cst_8 [1] : vector<8x128xf32> to vector<8xf32>
    %19 = vector.shape_cast %18 : vector<8xf32> to vector<8x1xf32>
    %cst_9 = arith.constant 1.562500e-02 : f32
    %20 = vector.broadcast %cst_9 : f32 to vector<8x1xf32>
    %21 = arith.mulf %19, %20 : vector<8x1xf32>
    %cst_10 = arith.constant 9.99999974E-6 : f32
    %22 = vector.broadcast %cst_10 : f32 to vector<8x1xf32>
    %23 = arith.addf %21, %22 : vector<8x1xf32>
    %24 = math.rsqrt %23 : vector<8x1xf32>
    %25 = vector.broadcast %24 : vector<8x1xf32> to vector<8x128xf32>
    %26 = arith.mulf %16, %25 : vector<8x128xf32>
    %c0_11 = arith.constant 0 : index
    %c0_12 = arith.constant 0 : index
    %27 = vector.load %arg3[%c0_11, %c0_12] : memref<1x128xf32, #tpu.memory_space<vmem>>, vector<1x128xf32>
    %28 = vector.broadcast %27 : vector<1x128xf32> to vector<8x128xf32>
    %29 = arith.mulf %26, %28 : vector<8x128xf32>
    %c0_13 = arith.constant 0 : index
    %c0_14 = arith.constant 0 : index
    %30 = vector.load %arg4[%c0_13, %c0_14] : memref<1x128xf32, #tpu.memory_space<vmem>>, vector<1x128xf32>
    %31 = vector.broadcast %30 : vector<1x128xf32> to vector<8x128xf32>
    %32 = arith.addf %29, %31 : vector<8x128xf32>
    %cst_15 = arith.constant 0.000000e+00 : f32
    %33 = vector.broadcast %cst_15 : f32 to vector<8x128xf32>
    %34 = arith.maximumf %32, %33 : vector<8x128xf32>
    %35 = arith.truncf %34 : vector<8x128xf32> to vector<8x128xbf16>
    %c0_16 = arith.constant 0 : index
    %c0_17 = arith.constant 0 : index
    %36 = vector.load %arg5[%c0_16, %c0_17] : memref<128x128xbf16, #tpu.memory_space<vmem>>, vector<128x128xbf16>
    %cst_18 = arith.constant dense<0.000000e+00> : vector<8x128xf32>
    %37 = tpu.matmul %35, %36, %cst_18 {dimension_numbers = #tpu.dot_dimension_numbers<[1], [0], [0], [1], [0, 0, 1, 1], [], []>} : vector<8x128xbf16>, vector<128x128xbf16>, vector<8x128xf32> -> vector<8x128xf32>
    %c0_19 = arith.constant 0 : index
    %c0_20 = arith.constant 0 : index
    %38 = vector.load %arg6[%c0_19, %c0_20] : memref<1x128xf32, #tpu.memory_space<vmem>>, vector<1x128xf32>
    %39 = vector.broadcast %38 : vector<1x128xf32> to vector<8x128xf32>
    %40 = arith.addf %37, %39 : vector<8x128xf32>
    %cst_21 = arith.constant dense<0.000000e+00> : vector<8xf32>
    %41 = vector.multi_reduction <add>, %40, %cst_21 [1] : vector<8x128xf32> to vector<8xf32>
    %42 = vector.shape_cast %41 : vector<8xf32> to vector<8x1xf32>
    %cst_22 = arith.constant 3.125000e-02 : f32
    %43 = vector.broadcast %cst_22 : f32 to vector<8x1xf32>
    %44 = arith.mulf %42, %43 : vector<8x1xf32>
    %45 = tpu.iota {dimensions = array<i32: 1>} : vector<8x128xi32>
    %c32_i32 = arith.constant 32 : i32
    %46 = vector.broadcast %c32_i32 : i32 to vector<8x128xi32>
    %47 = arith.cmpi slt, %45, %46 : vector<8x128xi32>
    %48 = vector.broadcast %44 : vector<8x1xf32> to vector<8x128xf32>
    %49 = arith.subf %40, %48 : vector<8x128xf32>
    %cst_23 = arith.constant 0.000000e+00 : f32
    %50 = vector.broadcast %cst_23 : f32 to vector<8x128xf32>
    %51 = arith.select %47, %49, %50 : vector<8x128xi1>, vector<8x128xf32>
    %52 = arith.mulf %51, %51 : vector<8x128xf32>
    %cst_24 = arith.constant dense<0.000000e+00> : vector<8xf32>
    %53 = vector.multi_reduction <add>, %52, %cst_24 [1] : vector<8x128xf32> to vector<8xf32>
    %54 = vector.shape_cast %53 : vector<8xf32> to vector<8x1xf32>
    %cst_25 = arith.constant 3.125000e-02 : f32
    %55 = vector.broadcast %cst_25 : f32 to vector<8x1xf32>
    %56 = arith.mulf %54, %55 : vector<8x1xf32>
    %cst_26 = arith.constant 9.99999974E-6 : f32
    %57 = vector.broadcast %cst_26 : f32 to vector<8x1xf32>
    %58 = arith.addf %56, %57 : vector<8x1xf32>
    %59 = math.rsqrt %58 : vector<8x1xf32>
    %60 = vector.broadcast %59 : vector<8x1xf32> to vector<8x128xf32>
    %61 = arith.mulf %51, %60 : vector<8x128xf32>
    %c0_27 = arith.constant 0 : index
    %c0_28 = arith.constant 0 : index
    %62 = vector.load %arg7[%c0_27, %c0_28] : memref<1x128xf32, #tpu.memory_space<vmem>>, vector<1x128xf32>
    %63 = vector.broadcast %62 : vector<1x128xf32> to vector<8x128xf32>
    %64 = arith.mulf %61, %63 : vector<8x128xf32>
    %c0_29 = arith.constant 0 : index
    %c0_30 = arith.constant 0 : index
    %65 = vector.load %arg8[%c0_29, %c0_30] : memref<1x128xf32, #tpu.memory_space<vmem>>, vector<1x128xf32>
    %66 = vector.broadcast %65 : vector<1x128xf32> to vector<8x128xf32>
    %67 = arith.addf %64, %66 : vector<8x128xf32>
    %cst_31 = arith.constant 0.000000e+00 : f32
    %68 = vector.broadcast %cst_31 : f32 to vector<8x128xf32>
    %69 = arith.maximumf %67, %68 : vector<8x128xf32>
    %70 = arith.truncf %69 : vector<8x128xf32> to vector<8x128xbf16>
    %c0_32 = arith.constant 0 : index
    %c0_33 = arith.constant 0 : index
    %71 = vector.load %arg9[%c0_32, %c0_33] : memref<128x128xbf16, #tpu.memory_space<vmem>>, vector<128x128xbf16>
    %cst_34 = arith.constant dense<0.000000e+00> : vector<8x128xf32>
    %72 = tpu.matmul %70, %71, %cst_34 {dimension_numbers = #tpu.dot_dimension_numbers<[1], [0], [0], [1], [0, 0, 1, 1], [], []>} : vector<8x128xbf16>, vector<128x128xbf16>, vector<8x128xf32> -> vector<8x128xf32>
    %c0_35 = arith.constant 0 : index
    %c0_36 = arith.constant 0 : index
    %73 = vector.load %arg10[%c0_35, %c0_36] : memref<1x128xf32, #tpu.memory_space<vmem>>, vector<1x128xf32>
    %74 = vector.broadcast %73 : vector<1x128xf32> to vector<8x128xf32>
    %75 = arith.addf %72, %74 : vector<8x128xf32>
    %cst_37 = arith.constant dense<0.000000e+00> : vector<8xf32>
    %76 = vector.multi_reduction <add>, %75, %cst_37 [1] : vector<8x128xf32> to vector<8xf32>
    %77 = vector.shape_cast %76 : vector<8xf32> to vector<8x1xf32>
    %cst_38 = arith.constant 1.562500e-02 : f32
    %78 = vector.broadcast %cst_38 : f32 to vector<8x1xf32>
    %79 = arith.mulf %77, %78 : vector<8x1xf32>
    %80 = tpu.iota {dimensions = array<i32: 1>} : vector<8x128xi32>
    %c64_i32_39 = arith.constant 64 : i32
    %81 = vector.broadcast %c64_i32_39 : i32 to vector<8x128xi32>
    %82 = arith.cmpi slt, %80, %81 : vector<8x128xi32>
    %83 = vector.broadcast %79 : vector<8x1xf32> to vector<8x128xf32>
    %84 = arith.subf %75, %83 : vector<8x128xf32>
    %cst_40 = arith.constant 0.000000e+00 : f32
    %85 = vector.broadcast %cst_40 : f32 to vector<8x128xf32>
    %86 = arith.select %82, %84, %85 : vector<8x128xi1>, vector<8x128xf32>
    %87 = arith.mulf %86, %86 : vector<8x128xf32>
    %cst_41 = arith.constant dense<0.000000e+00> : vector<8xf32>
    %88 = vector.multi_reduction <add>, %87, %cst_41 [1] : vector<8x128xf32> to vector<8xf32>
    %89 = vector.shape_cast %88 : vector<8xf32> to vector<8x1xf32>
    %cst_42 = arith.constant 1.562500e-02 : f32
    %90 = vector.broadcast %cst_42 : f32 to vector<8x1xf32>
    %91 = arith.mulf %89, %90 : vector<8x1xf32>
    %cst_43 = arith.constant 9.99999974E-6 : f32
    %92 = vector.broadcast %cst_43 : f32 to vector<8x1xf32>
    %93 = arith.addf %91, %92 : vector<8x1xf32>
    %94 = math.rsqrt %93 : vector<8x1xf32>
    %95 = vector.broadcast %94 : vector<8x1xf32> to vector<8x128xf32>
    %96 = arith.mulf %86, %95 : vector<8x128xf32>
    %c0_44 = arith.constant 0 : index
    %c0_45 = arith.constant 0 : index
    %97 = vector.load %arg11[%c0_44, %c0_45] : memref<1x128xf32, #tpu.memory_space<vmem>>, vector<1x128xf32>
    %98 = vector.broadcast %97 : vector<1x128xf32> to vector<8x128xf32>
    %99 = arith.mulf %96, %98 : vector<8x128xf32>
    %c0_46 = arith.constant 0 : index
    %c0_47 = arith.constant 0 : index
    %100 = vector.load %arg12[%c0_46, %c0_47] : memref<1x128xf32, #tpu.memory_space<vmem>>, vector<1x128xf32>
    %101 = vector.broadcast %100 : vector<1x128xf32> to vector<8x128xf32>
    %102 = arith.addf %99, %101 : vector<8x128xf32>
    %cst_48 = arith.constant 0.000000e+00 : f32
    %103 = vector.broadcast %cst_48 : f32 to vector<8x128xf32>
    %104 = arith.maximumf %102, %103 : vector<8x128xf32>
    %105 = arith.truncf %104 : vector<8x128xf32> to vector<8x128xbf16>
    %c0_49 = arith.constant 0 : index
    %c0_50 = arith.constant 0 : index
    %106 = vector.load %arg13[%c0_49, %c0_50] : memref<128x640xbf16, #tpu.memory_space<vmem>>, vector<128x640xbf16>
    %cst_51 = arith.constant dense<0.000000e+00> : vector<8x640xf32>
    %107 = tpu.matmul %105, %106, %cst_51 {dimension_numbers = #tpu.dot_dimension_numbers<[1], [0], [0], [1], [0, 0, 1, 1], [], []>} : vector<8x128xbf16>, vector<128x640xbf16>, vector<8x640xf32> -> vector<8x640xf32>
    %c0_52 = arith.constant 0 : index
    %c0_53 = arith.constant 0 : index
    %108 = vector.load %arg14[%c0_52, %c0_53] : memref<1x640xf32, #tpu.memory_space<vmem>>, vector<1x640xf32>
    %109 = vector.broadcast %108 : vector<1x640xf32> to vector<8x640xf32>
    %110 = arith.addf %107, %109 : vector<8x640xf32>
    %cst_54 = arith.constant dense<0.000000e+00> : vector<8xf32>
    %111 = vector.multi_reduction <add>, %110, %cst_54 [1] : vector<8x640xf32> to vector<8xf32>
    %112 = vector.shape_cast %111 : vector<8xf32> to vector<8x1xf32>
    %cst_55 = arith.constant 0.00173611112 : f32
    %113 = vector.broadcast %cst_55 : f32 to vector<8x1xf32>
    %114 = arith.mulf %112, %113 : vector<8x1xf32>
    %115 = tpu.iota {dimensions = array<i32: 1>} : vector<8x640xi32>
    %c576_i32 = arith.constant 576 : i32
    %116 = vector.broadcast %c576_i32 : i32 to vector<8x640xi32>
    %117 = arith.cmpi slt, %115, %116 : vector<8x640xi32>
    %118 = vector.broadcast %114 : vector<8x1xf32> to vector<8x640xf32>
    %119 = arith.subf %110, %118 : vector<8x640xf32>
    %cst_56 = arith.constant 0.000000e+00 : f32
    %120 = vector.broadcast %cst_56 : f32 to vector<8x640xf32>
    %121 = arith.select %117, %119, %120 : vector<8x640xi1>, vector<8x640xf32>
    %122 = arith.mulf %121, %121 : vector<8x640xf32>
    %cst_57 = arith.constant dense<0.000000e+00> : vector<8xf32>
    %123 = vector.multi_reduction <add>, %122, %cst_57 [1] : vector<8x640xf32> to vector<8xf32>
    %124 = vector.shape_cast %123 : vector<8xf32> to vector<8x1xf32>
    %cst_58 = arith.constant 0.00173611112 : f32
    %125 = vector.broadcast %cst_58 : f32 to vector<8x1xf32>
    %126 = arith.mulf %124, %125 : vector<8x1xf32>
    %cst_59 = arith.constant 9.99999974E-6 : f32
    %127 = vector.broadcast %cst_59 : f32 to vector<8x1xf32>
    %128 = arith.addf %126, %127 : vector<8x1xf32>
    %129 = math.rsqrt %128 : vector<8x1xf32>
    %130 = vector.broadcast %129 : vector<8x1xf32> to vector<8x640xf32>
    %131 = arith.mulf %121, %130 : vector<8x640xf32>
    %c0_60 = arith.constant 0 : index
    %c0_61 = arith.constant 0 : index
    %132 = vector.load %arg15[%c0_60, %c0_61] : memref<1x640xf32, #tpu.memory_space<vmem>>, vector<1x640xf32>
    %133 = vector.broadcast %132 : vector<1x640xf32> to vector<8x640xf32>
    %134 = arith.mulf %131, %133 : vector<8x640xf32>
    %c0_62 = arith.constant 0 : index
    %c0_63 = arith.constant 0 : index
    %135 = vector.load %arg16[%c0_62, %c0_63] : memref<1x640xf32, #tpu.memory_space<vmem>>, vector<1x640xf32>
    %136 = vector.broadcast %135 : vector<1x640xf32> to vector<8x640xf32>
    %137 = arith.addf %134, %136 : vector<8x640xf32>
    %cst_64 = arith.constant 0.000000e+00 : f32
    %138 = vector.broadcast %cst_64 : f32 to vector<8x640xf32>
    %139 = arith.maximumf %137, %138 : vector<8x640xf32>
    %140 = arith.truncf %139 : vector<8x640xf32> to vector<8x640xbf16>
    %c0_65 = arith.constant 0 : index
    %c0_66 = arith.constant 0 : index
    %141 = vector.load %arg17[%c0_65, %c0_66] : memref<8x640xbf16, #tpu.memory_space<vmem>>, vector<8x640xbf16>
    tpu.vector_store %arg17[%c0_65, %c0_66], %140 {strides = array<i32>} : memref<8x640xbf16, #tpu.memory_space<vmem>>, vector<8x640xbf16>,
    return
  }
}

module attributes {stable_mosaic.version = 11 : i64} {
  func.func @_conv_relu_bn_kernel(%arg0: memref<392x256xbf16, #tpu.memory_space<vmem>>, %arg1: memref<256x128xbf16, #tpu.memory_space<vmem>>, %arg2: memref<1x128xf32, #tpu.memory_space<vmem>>, %arg3: memref<1x128xf32, #tpu.memory_space<vmem>>, %arg4: memref<392x128xbf16, #tpu.memory_space<vmem>>) attributes {dimension_semantics = [], scalar_prefetch = 0 : i64, scratch_operands = 0 : i64, tpu.core_type = #tpu.core_type<tc>} {
    %c0 = arith.constant 0 : index
    %c0_0 = arith.constant 0 : index
    %0 = vector.load %arg0[%c0, %c0_0] : memref<392x256xbf16, #tpu.memory_space<vmem>>, vector<392x256xbf16>
    %c0_1 = arith.constant 0 : index
    %c0_2 = arith.constant 0 : index
    %1 = vector.load %arg1[%c0_1, %c0_2] : memref<256x128xbf16, #tpu.memory_space<vmem>>, vector<256x128xbf16>
    %cst = arith.constant dense<0.000000e+00> : vector<392x128xf32>
    %2 = tpu.matmul %0, %1, %cst {dimension_numbers = #tpu.dot_dimension_numbers<[1], [0], [0], [1], [0, 0, 1, 1], [], []>} : vector<392x256xbf16>, vector<256x128xbf16>, vector<392x128xf32> -> vector<392x128xf32>
    %cst_3 = arith.constant 0.000000e+00 : f32
    %3 = vector.broadcast %cst_3 : f32 to vector<392x128xf32>
    %4 = arith.maximumf %2, %3 : vector<392x128xf32>
    %cst_4 = arith.constant dense<0.000000e+00> : vector<128xf32>
    %5 = vector.multi_reduction <add>, %4, %cst_4 [0] : vector<392x128xf32> to vector<128xf32>
    %6 = vector.shape_cast %5 : vector<128xf32> to vector<1x128xf32>
    %cst_5 = arith.constant 0.00255102036 : f32
    %7 = vector.broadcast %cst_5 : f32 to vector<1x128xf32>
    %8 = arith.mulf %6, %7 : vector<1x128xf32>
    %9 = vector.broadcast %8 : vector<1x128xf32> to vector<392x128xf32>
    %10 = arith.subf %4, %9 : vector<392x128xf32>
    %11 = arith.mulf %10, %10 : vector<392x128xf32>
    %cst_6 = arith.constant dense<0.000000e+00> : vector<128xf32>
    %12 = vector.multi_reduction <add>, %11, %cst_6 [0] : vector<392x128xf32> to vector<128xf32>
    %13 = vector.shape_cast %12 : vector<128xf32> to vector<1x128xf32>
    %cst_7 = arith.constant 0.00255102036 : f32
    %14 = vector.broadcast %cst_7 : f32 to vector<1x128xf32>
    %15 = arith.mulf %13, %14 : vector<1x128xf32>
    %cst_8 = arith.constant 9.99999974E-6 : f32
    %16 = vector.broadcast %cst_8 : f32 to vector<1x128xf32>
    %17 = arith.addf %15, %16 : vector<1x128xf32>
    %18 = math.rsqrt %17 : vector<1x128xf32>
    %19 = vector.broadcast %18 : vector<1x128xf32> to vector<392x128xf32>
    %20 = arith.mulf %10, %19 : vector<392x128xf32>
    %c0_9 = arith.constant 0 : index
    %c0_10 = arith.constant 0 : index
    %21 = vector.load %arg2[%c0_9, %c0_10] : memref<1x128xf32, #tpu.memory_space<vmem>>, vector<1x128xf32>
    %22 = vector.broadcast %21 : vector<1x128xf32> to vector<392x128xf32>
    %23 = arith.mulf %20, %22 : vector<392x128xf32>
    %c0_11 = arith.constant 0 : index
    %c0_12 = arith.constant 0 : index
    %24 = vector.load %arg3[%c0_11, %c0_12] : memref<1x128xf32, #tpu.memory_space<vmem>>, vector<1x128xf32>
    %25 = vector.broadcast %24 : vector<1x128xf32> to vector<392x128xf32>
    %26 = arith.addf %23, %25 : vector<392x128xf32>
    %27 = arith.truncf %26 : vector<392x128xf32> to vector<392x128xbf16>
    %c0_13 = arith.constant 0 : index
    %c0_14 = arith.constant 0 : index
    %28 = vector.load %arg4[%c0_13, %c0_14] : memref<392x128xbf16, #tpu.memory_space<vmem>>, vector<392x128xbf16>
    tpu.vector_store %arg4[%c0_13, %c0_14], %27 {strides = array<i32>} : memref<392x128xbf16, #tpu.memory_space<vmem>>, vector<392x128xbf16>,
    return
  }
}

module attributes {stable_mosaic.version = 11 : i64} {
  func.func @_conv_relu_bn_kernel(%arg0: i32, %arg1: memref<256x128xbf16, #tpu.memory_space<vmem>>, %arg2: memref<128x128xbf16, #tpu.memory_space<vmem>>, %arg3: memref<1x128xf32, #tpu.memory_space<vmem>>, %arg4: memref<1x128xf32, #tpu.memory_space<vmem>>, %arg5: memref<256x128xf32, #tpu.memory_space<vmem>>) attributes {dimension_semantics = [#tpu.dimension_semantics<parallel>], iteration_bounds = array<i64: 2>, scalar_prefetch = 0 : i64, scratch_operands = 0 : i64, tpu.core_type = #tpu.core_type<tc>, window_params = [{transform_indices = @transform_0, window_bounds = array<i64: 256, 128>}, {pipeline_mode = #tpu.pipeline_mode<synchronous>, transform_indices = @transform_1, window_bounds = array<i64: 128, 128>}, {pipeline_mode = #tpu.pipeline_mode<synchronous>, transform_indices = @transform_2, window_bounds = array<i64: 1, 128>}, {pipeline_mode = #tpu.pipeline_mode<synchronous>, transform_indices = @transform_3, window_bounds = array<i64: 1, 128>}, {transform_indices = @transform_4, window_bounds = array<i64: 256, 128>}]} {
    %c0 = arith.constant 0 : index
    %c0_0 = arith.constant 0 : index
    %0 = vector.load %arg1[%c0, %c0_0] : memref<256x128xbf16, #tpu.memory_space<vmem>>, vector<256x128xbf16>
    %c0_1 = arith.constant 0 : index
    %c0_2 = arith.constant 0 : index
    %1 = vector.load %arg2[%c0_1, %c0_2] : memref<128x128xbf16, #tpu.memory_space<vmem>>, vector<128x128xbf16>
    %cst = arith.constant dense<0.000000e+00> : vector<256x128xf32>
    %2 = tpu.matmul %0, %1, %cst {dimension_numbers = #tpu.dot_dimension_numbers<[1], [0], [0], [1], [0, 0, 1, 1], [], []>} : vector<256x128xbf16>, vector<128x128xbf16>, vector<256x128xf32> -> vector<256x128xf32>
    %cst_3 = arith.constant 0.000000e+00 : f32
    %3 = vector.broadcast %cst_3 : f32 to vector<256x128xf32>
    %4 = arith.maximumf %2, %3 : vector<256x128xf32>
    %c0_4 = arith.constant 0 : index
    %c0_5 = arith.constant 0 : index
    %5 = vector.load %arg5[%c0_4, %c0_5] : memref<256x128xf32, #tpu.memory_space<vmem>>, vector<256x128xf32>
    tpu.vector_store %arg5[%c0_4, %c0_5], %4 {strides = array<i32>} : memref<256x128xf32, #tpu.memory_space<vmem>>, vector<256x128xf32>,
    return
  }
  func.func @transform_0(%arg0: i32) -> (i32, i32) {
    %c0_i32 = arith.constant 0 : i32
    %c0_i32_0 = arith.constant 0 : i32
    return %arg0, %c0_i32 : i32, i32
  }
  func.func @transform_1(%arg0: i32) -> (i32, i32) {
    %c0_i32 = arith.constant 0 : i32
    %c0_i32_0 = arith.constant 0 : i32
    %c0_i32_1 = arith.constant 0 : i32
    return %c0_i32, %c0_i32_0 : i32, i32
  }
  func.func @transform_2(%arg0: i32) -> (i32, i32) {
    %c0_i32 = arith.constant 0 : i32
    %c0_i32_0 = arith.constant 0 : i32
    %c0_i32_1 = arith.constant 0 : i32
    return %c0_i32, %c0_i32_0 : i32, i32
  }
  func.func @transform_3(%arg0: i32) -> (i32, i32) {
    %c0_i32 = arith.constant 0 : i32
    %c0_i32_0 = arith.constant 0 : i32
    %c0_i32_1 = arith.constant 0 : i32
    return %c0_i32, %c0_i32_0 : i32, i32
  }
  func.func @transform_4(%arg0: i32) -> (i32, i32) {
    %c0_i32 = arith.constant 0 : i32
    %c0_i32_0 = arith.constant 0 : i32
    return %arg0, %c0_i32 : i32, i32
  }
}

</mosaic_0001>

<bundles_post_ra>
// kernel: autoencoder_forward.5
= control target key start
LH: loop header
LB: loop body
LE: loop exit
PB: predicated region body
PF: predicated region fallthrough
CT: control target
= control target key end

     0   :  { %v1659_v0 = vmov 0.0   ;;  %vm1660_vm0 = vmmov 0   ;;  %s2483_s1 = inlined_call_operand.vmem [shape: bf16[128,128], index: 1, kind: input, shape index: {}]   ;;  %s2484_s0 = inlined_call_operand.vmem [shape: bf16[392,128], index: 0, kind: input, shape index: {}]   ;;  %s2485_s2 = inlined_call_operand.vmem [shape: f32[1,128], index: 2, kind: input, shape index: {}]   ;;  %s2486_s3 = inlined_call_operand.vmem [shape: f32[1,128], index: 3, kind: input, shape index: {}]   ;;  %s2487_s4 = inlined_call_operand.vmem [shape: bf16[392,128], index: 4, kind: output, shape index: {}]  }
   0x1   :  { %1490 = vmatprep.subr.bf16.mxu0 %v1659_v0  ;;  %v1624_v1 = vld [vmem:[%s2483_s1] sm:$0xff]   ;;  %1506 = vmatprep.mubr.msk.bf16.mxu0 %vm1660_vm0, %v1659_v0  ;;  %v1625_v2 = vld [vmem:[%s2483_s1 + $0x8] sm:$0xff]   ;;  %v1626_v3 = vld [vmem:[%s2483_s1 + $0x10] sm:$0xff]  }
   0x2   :  { %1606 = vmatprep.subr.bf16.mxu1 %v1659_v0  ;;  %1558 = vmatprep.mubr.msk.bf16.mxu1 %vm1660_vm0, %v1659_v0  ;;  %v1627_v4 = vld [vmem:[%s2483_s1 + $0x18] sm:$0xff]   ;;  %v1628_v5 = vld [vmem:[%s2483_s1 + $0x20] sm:$0xff]   ;;  %v1629_v6 = vld [vmem:[%s2483_s1 + $0x28] sm:$0xff]  }
   0x3   :  { %1491 = vmatpush3.bf16.msra.mxu0 %v1624_v1  ;;  %1614 = vmatpush3.bf16.msra.mxu1 %v1624_v1  ;;  %v1630_v7 = vld [vmem:[%s2483_s1 + $0x30] sm:$0xff]   ;;  %v1631_v8 = vld [vmem:[%s2483_s1 + $0x38] sm:$0xff]   ;;  %v1632_v9 = vld [vmem:[%s2484_s0] sm:$0xff]  }
   0x4   :  { %1492 = vmatprep.subr.bf16.mxu0 %v1659_v0  ;;  %1607 = vmatprep.subr.bf16.mxu1 %v1659_v0  ;;  %v1639_v10 = vld [vmem:[%s2484_s0 + $0x68] sm:$0xff]   ;;  %v1641_v12 = vld [vmem:[%s2484_s0 + $0x70] sm:$0xff]   ;;  %v1643_v14 = vld [vmem:[%s2484_s0 + $0x78] sm:$0xff]  }
   0x5   :  { %v1633_v11 = vld [vmem:[%s2484_s0 + $0x8] sm:$0xff]   ;;  %v1634_v13 = vld [vmem:[%s2484_s0 + $0x10] sm:$0xff]   ;;  %v1635_v15 = vld [vmem:[%s2484_s0 + $0x18] sm:$0xff]  }
   0x6   :  { %v1645_v16 = vld [vmem:[%s2484_s0 + $0x80] sm:$0xff]   ;;  %v1647_v18 = vld [vmem:[%s2484_s0 + $0x88] sm:$0xff]   ;;  %v1649_v20 = vld [vmem:[%s2484_s0 + $0x90] sm:$0xff]  }
   0x7   :  { %1493 = vmatpush3.bf16.msra.mxu0 %v1625_v2  ;;  %1615 = vmatpush3.bf16.msra.mxu1 %v1625_v2  ;;  %v1636_v17 = vld [vmem:[%s2484_s0 + $0x20] sm:$0xff]   ;;  %v1637_v19 = vld [vmem:[%s2484_s0 + $0x28] sm:$0xff]   ;;  %v1638_v21 = vld [vmem:[%s2484_s0 + $0x30] sm:$0xff]  }
   0x8   :  { %1494 = vmatprep.subr.bf16.mxu0 %v1659_v0  ;;  %1608 = vmatprep.subr.bf16.mxu1 %v1659_v0  ;;  %v1651_v22 = vld [vmem:[%s2484_s0 + $0x98] sm:$0xff]   ;;  %v1652_v24 = vld [vmem:[%s2484_s0 + $0xa0] sm:$0xff]   ;;  %v1653_v26 = vld [vmem:[%s2484_s0 + $0xa8] sm:$0xff]  }
   0x9   :  { %v1640_v23 = vld [vmem:[%s2484_s0 + $0x38] sm:$0xff]   ;;  %v1642_v25 = vld [vmem:[%s2484_s0 + $0x40] sm:$0xff]   ;;  %v1644_v27 = vld [vmem:[%s2484_s0 + $0x48] sm:$0xff]  }
   0xa   :  { %v1654_v28 = vld [vmem:[%s2484_s0 + $0xb0] sm:$0xff]   ;;  %v1655_v30 = vld [vmem:[%s2484_s0 + $0xb8] sm:$0xff]   ;;  %v1656_v32 = vld [vmem:[%s2484_s0 + $0xc0] ss:$0 sps:$4 sm:$0xff]  }
   0xb   :  { %1495 = vmatpush3.bf16.msra.mxu0 %v1626_v3  ;;  %1616 = vmatpush3.bf16.msra.mxu1 %v1626_v3  ;;  %v1646_v29 = vld [vmem:[%s2484_s0 + $0x50] sm:$0xff]   ;;  %v1648_v31 = vld [vmem:[%s2484_s0 + $0x58] sm:$0xff]   ;;  %v1650_v33 = vld [vmem:[%s2484_s0 + $0x60] sm:$0xff]  }
   0xc   :  { %1496 = vmatprep.subr.bf16.mxu0 %v1659_v0  ;;  %1609 = vmatprep.subr.bf16.mxu1 %v1659_v0 }
   0xf   :  { %1497 = vmatpush3.bf16.msra.mxu0 %v1627_v4  ;;  %1617 = vmatpush3.bf16.msra.mxu1 %v1627_v4 }
  0x10   :  { %1498 = vmatprep.subr.bf16.mxu0 %v1659_v0  ;;  %1610 = vmatprep.subr.bf16.mxu1 %v1659_v0 }
  0x13   :  { %1499 = vmatpush3.bf16.msra.mxu0 %v1628_v5  ;;  %1618 = vmatpush3.bf16.msra.mxu1 %v1628_v5 }
  0x14   :  { %1500 = vmatprep.subr.bf16.mxu0 %v1659_v0  ;;  %1611 = vmatprep.subr.bf16.mxu1 %v1659_v0 }
  0x17   :  { %1501 = vmatpush3.bf16.msra.mxu0 %v1629_v6  ;;  %1619 = vmatpush3.bf16.msra.mxu1 %v1629_v6 }
  0x18   :  { %1502 = vmatprep.subr.bf16.mxu0 %v1659_v0  ;;  %1612 = vmatprep.subr.bf16.mxu1 %v1659_v0 }
  0x1b   :  { %1503 = vmatpush3.bf16.msra.mxu0 %v1630_v7  ;;  %1620 = vmatpush3.bf16.msra.mxu1 %v1630_v7 }
  0x1c   :  { %1504 = vmatprep.subr.bf16.mxu0 %v1659_v0  ;;  %1613 = vmatprep.subr.bf16.mxu1 %v1659_v0 }
  0x1f   :  { %1505 = vmatpush3.bf16.msra.mxu0 %v1631_v8  ;;  %1621 = vmatpush3.bf16.msra.mxu1 %v1631_v8 }
  0x22   :  { %1507 = vmatmul.mubr.bf16.vlgmr.msra.gmra.mrb[0].mxu0 %v1632_v9  ;;  %1559 = vmatmul.mubr.bf16.vlgmr.msra.gmra.mrb[0].mxu1 %v1639_v10 }
  0x23   :  { %1510 = vmatprep.mubr.msk.bf16.mxu0 %vm1660_vm0, %v1659_v0  ;;  %1562 = vmatprep.mubr.msk.bf16.mxu1 %vm1660_vm0, %v1659_v0 }
  0x2a   :  { %1511 = vmatmul.mubr.bf16.gmra.mrb[4].mxu0 %v1633_v11  ;;  %1563 = vmatmul.mubr.bf16.gmra.mrb[4].mxu1 %v1641_v12 }
  0x2b   :  { %1514 = vmatprep.mubr.msk.bf16.mxu0 %vm1660_vm0, %v1659_v0  ;;  %1566 = vmatprep.mubr.msk.bf16.mxu1 %vm1660_vm0, %v1659_v0 }
  0x32   :  { %1515 = vmatmul.mubr.bf16.gmra.mrb[8].mxu0 %v1634_v13  ;;  %1567 = vmatmul.mubr.bf16.gmra.mrb[8].mxu1 %v1643_v14 }
  0x33   :  { %1518 = vmatprep.mubr.msk.bf16.mxu0 %vm1660_vm0, %v1659_v0  ;;  %1570 = vmatprep.mubr.msk.bf16.mxu1 %vm1660_vm0, %v1659_v0 }
  0x3a   :  { %1519 = vmatmul.mubr.bf16.gmra.mrb[12].mxu0 %v1635_v15  ;;  %1571 = vmatmul.mubr.bf16.gmra.mrb[12].mxu1 %v1645_v16 }
  0x3b   :  { %1522 = vmatprep.mubr.msk.bf16.mxu0 %vm1660_vm0, %v1659_v0  ;;  %1574 = vmatprep.mubr.msk.bf16.mxu1 %vm1660_vm0, %v1659_v0 }
  0x42   :  { %1523 = vmatmul.mubr.bf16.gmra.mrb[16].mxu0 %v1636_v17  ;;  %1575 = vmatmul.mubr.bf16.gmra.mrb[16].mxu1 %v1647_v18 }
  0x43   :  { %1526 = vmatprep.mubr.msk.bf16.mxu0 %vm1660_vm0, %v1659_v0  ;;  %1578 = vmatprep.mubr.msk.bf16.mxu1 %vm1660_vm0, %v1659_v0 }
  0x4a   :  { %1527 = vmatmul.mubr.bf16.gmra.mrb[20].mxu0 %v1637_v19  ;;  %1579 = vmatmul.mubr.bf16.gmra.mrb[20].mxu1 %v1649_v20 }
  0x4b   :  { %1530 = vmatprep.mubr.msk.bf16.mxu0 %vm1660_vm0, %v1659_v0  ;;  %1582 = vmatprep.mubr.msk.bf16.mxu1 %vm1660_vm0, %v1659_v0 }
  0x52   :  { %1531 = vmatmul.mubr.bf16.gmra.mrb[24].mxu0 %v1638_v21  ;;  %1583 = vmatmul.mubr.bf16.gmra.mrb[24].mxu1 %v1651_v22 }
  0x53   :  { %1534 = vmatprep.mubr.msk.bf16.mxu0 %vm1660_vm0, %v1659_v0  ;;  %1586 = vmatprep.mubr.msk.bf16.mxu1 %vm1660_vm0, %v1659_v0 }
  0x5a   :  { %1535 = vmatmul.mubr.bf16.gmra.mrb[28].mxu0 %v1640_v23  ;;  %1587 = vmatmul.mubr.bf16.gmra.mrb[28].mxu1 %v1652_v24 }
  0x5b   :  { %1538 = vmatprep.mubr.msk.bf16.mxu0 %vm1660_vm0, %v1659_v0  ;;  %1590 = vmatprep.mubr.msk.bf16.mxu1 %vm1660_vm0, %v1659_v0 }
  0x62   :  { %1539 = vmatmul.mubr.bf16.gmra.mrb[32].mxu0 %v1642_v25  ;;  %1591 = vmatmul.mubr.bf16.gmra.mrb[32].mxu1 %v1653_v26 }
  0x63   :  { %1542 = vmatprep.mubr.msk.bf16.mxu0 %vm1660_vm0, %v1659_v0  ;;  %1594 = vmatprep.mubr.msk.bf16.mxu1 %vm1660_vm0, %v1659_v0 }
  0x6a   :  { %1543 = vmatmul.mubr.bf16.gmra.mrb[36].mxu0 %v1644_v27  ;;  %1595 = vmatmul.mubr.bf16.gmra.mrb[36].mxu1 %v1654_v28 }
  0x6b   :  { %1546 = vmatprep.mubr.msk.bf16.mxu0 %vm1660_vm0, %v1659_v0  ;;  %1598 = vmatprep.mubr.msk.bf16.mxu1 %vm1660_vm0, %v1659_v0 }
  0x72   :  { %1547 = vmatmul.mubr.bf16.gmra.mrb[40].mxu0 %v1646_v29  ;;  %1599 = vmatmul.mubr.bf16.gmra.mrb[40].mxu1 %v1655_v30 }
  0x73   :  { %1550 = vmatprep.mubr.msk.bf16.mxu0 %vm1660_vm0, %v1659_v0  ;;  %1602 = vmatprep.mubr.msk.bf16.mxu1 %vm1660_vm0, %v1659_v0 }
  0x7a   :  { %1551 = vmatmul.mubr.bf16.gmra.mrb[44].mxu0 %v1648_v31  ;;  %1603 = vmatmul.mubr.bf16.gmra.mrb[44].mxu1 %v1656_v32 }
  0x7b   :  { %1554 = vmatprep.mubr.msk.bf16.mxu0 %vm1660_vm0, %v1659_v0 }
  0x82   :  { %1555 = vmatmul.mubr.bf16.gmra.mrb[48].mxu0 %v1650_v33 }
  0xf5   :  { %v1851_v34 = vpop.f32.mrb[0].mxu0  ;;  %v1853_v35 = vpop.f32.mrb[0].mxu1 }
  0xf6   :  { %2520 = vst [vmem:[#allocation2_spill] sm:$0xff] %v1853_v35  ;;  %v1508_v36 = vpop.f32.mrb[1].mxu0  ;;  %v1560_v37 = vpop.f32.mrb[1].mxu1  ;;  %v2512_v3 = vmax.f32 %v1851_v34, 0.0 }
  0xf7   :  { %v1855_v38 = vpop.f32.mrb[2].mxu0  ;;  %v1857_v39 = vpop.f32.mrb[2].mxu1 }
  0xf8   :  { %v1509_v40 = vpop.f32.mrb[3].mxu0  ;;  %v1561_v41 = vpop.f32.mrb[3].mxu1  ;;  %v2511_v0 = vmax.f32 %v1855_v38, 0.0 }
  0xfa   :  { %v560_v5 = vadd.f32 %v2511_v0, %v2512_v3 }
  0xfd   :  { %v1859_v42 = vpop.f32.mrb[4].mxu0  ;;  %v1861_v43 = vpop.f32.mrb[4].mxu1 }
  0xfe   :  { %v1512_v44 = vpop.f32.mrb[5].mxu0  ;;  %v1564_v45 = vpop.f32.mrb[5].mxu1  ;;  %v2509_v4 = vmax.f32 %v1859_v42, 0.0 }
  0xff   :  { %v1863_v46 = vpop.f32.mrb[6].mxu0  ;;  %v1865_v47 = vpop.f32.mrb[6].mxu1 }
 0x100   :  { %v1513_v48 = vpop.f32.mrb[7].mxu0  ;;  %v1565_v49 = vpop.f32.mrb[7].mxu1  ;;  %v561_v8 = vadd.f32 %v560_v5, %v2509_v4  ;;  %v2505_v9 = vmax.f32 %v1863_v46, 0.0 }
 0x102   :  { %v562_v17 = vadd.f32 %v561_v8, %v2505_v9 }
 0x105   :  { %v1867_v50 = vpop.f32.mrb[8].mxu0  ;;  %v1869_v51 = vpop.f32.mrb[8].mxu1 }
 0x106   :  { %v1516_v52 = vpop.f32.mrb[9].mxu0  ;;  %v1568_v53 = vpop.f32.mrb[9].mxu1  ;;  %v2504_v14 = vmax.f32 %v1867_v50, 0.0 }
 0x107   :  { %v1871_v54 = vpop.f32.mrb[10].mxu0  ;;  %v1873_v55 = vpop.f32.mrb[10].mxu1 }
 0x108   :  { %v1517_v56 = vpop.f32.mrb[11].mxu0  ;;  %v1569_v57 = vpop.f32.mrb[11].mxu1  ;;  %v563_v18 = vadd.f32 %v562_v17, %v2504_v14  ;;  %v2503_v19 = vmax.f32 %v1871_v54, 0.0 }
 0x10a   :  { %v564_v27 = vadd.f32 %v563_v18, %v2503_v19 }
 0x10d   :  { %v1875_v58 = vpop.f32.mrb[12].mxu0  ;;  %v1877_v59 = vpop.f32.mrb[12].mxu1 }
 0x10e   :  { %v1520_v60 = vpop.f32.mrb[13].mxu0  ;;  %v1572_v61 = vpop.f32.mrb[13].mxu1  ;;  %v2500_v22 = vmax.f32 %v1875_v58, 0.0  ;;  %v543_v3 = vmax.f32 %v1877_v59, 0.0 }
 0x10f   :  { %v1879_v62 = vpop.f32.mrb[14].mxu0  ;;  %v1881_v63 = vpop.f32.mrb[14].mxu1 }
 0x110   :  { %v1521_v1 = vpop.f32.mrb[15].mxu0  ;;  %v1573_v2 = vpop.f32.mrb[15].mxu1  ;;  %v565_v30 = vadd.f32 %v564_v27, %v2500_v22  ;;  %v2499_v31 = vmax.f32 %v1879_v62, 0.0 }
 0x112   :  { %v566_v37 = vadd.f32 %v565_v30, %v2499_v31 }
 0x115   :  { %v1890_v6 = vpop.f32.mrb[16].mxu0  ;;  %v1892_v7 = vpop.f32.mrb[16].mxu1 }
 0x116   :  { %v1524_v10 = vpop.f32.mrb[17].mxu0  ;;  %v1576_v11 = vpop.f32.mrb[17].mxu1  ;;  %v2498_v32 = vmax.f32 %v1890_v6, 0.0 }
 0x117   :  { %v1897_v12 = vpop.f32.mrb[18].mxu0  ;;  %v1899_v13 = vpop.f32.mrb[18].mxu1 }
 0x118   :  { %v1525_v15 = vpop.f32.mrb[19].mxu0  ;;  %v1577_v16 = vpop.f32.mrb[19].mxu1  ;;  %v567_v48 = vadd.f32 %v566_v37, %v2498_v32  ;;  %v2495_v49 = vmax.f32 %v1897_v12, 0.0 }
 0x11a   :  { %v568_v57 = vadd.f32 %v567_v48, %v2495_v49 }
 0x11d   :  { %v1907_v20 = vpop.f32.mrb[20].mxu0  ;;  %v1909_v21 = vpop.f32.mrb[20].mxu1 }
 0x11e   :  { %v1528_v23 = vpop.f32.mrb[21].mxu0  ;;  %v1580_v24 = vpop.f32.mrb[21].mxu1  ;;  %v2494_v56 = vmax.f32 %v1907_v20, 0.0 }
 0x11f   :  { %v1912_v25 = vpop.f32.mrb[22].mxu0  ;;  %v1914_v26 = vpop.f32.mrb[22].mxu1 }
 0x120   :  { %v1529_v28 = vpop.f32.mrb[23].mxu0  ;;  %v1581_v29 = vpop.f32.mrb[23].mxu1  ;;  %v569_v1 = vadd.f32 %v568_v57, %v2494_v56  ;;  %v2491_v2 = vmax.f32 %v1912_v25, 0.0 }
 0x122   :  { %v570_v18 = vadd.f32 %v569_v1, %v2491_v2 }
 0x125   :  { %v1922_v33 = vpop.f32.mrb[24].mxu0  ;;  %v1924_v36 = vpop.f32.mrb[24].mxu1 }
 0x126   :  { %v1532_v40 = vpop.f32.mrb[25].mxu0  ;;  %v1584_v41 = vpop.f32.mrb[25].mxu1  ;;  %v2490_v15 = vmax.f32 %v1922_v33, 0.0 }
 0x127   :  { %v1928_v44 = vpop.f32.mrb[26].mxu0  ;;  %v1930_v45 = vpop.f32.mrb[26].mxu1 }
 0x128   :  { %v1533_v52 = vpop.f32.mrb[27].mxu0  ;;  %v1585_v53 = vpop.f32.mrb[27].mxu1  ;;  %v571_v23 = vadd.f32 %v570_v18, %v2490_v15  ;;  %v2489_v24 = vmax.f32 %v1928_v44, 0.0 }
 0x12a   :  { %v572_v48 = vadd.f32 %v571_v23, %v2489_v24 }
 0x12d   :  { %v1938_v60 = vpop.f32.mrb[28].mxu0  ;;  %v1940_v61 = vpop.f32.mrb[28].mxu1 }
 0x12e   :  { %v1536_v5 = vpop.f32.mrb[29].mxu0  ;;  %v1588_v8 = vpop.f32.mrb[29].mxu1  ;;  %v2488_v29 = vmax.f32 %v1938_v60, 0.0 }
 0x12f   :  { %v1945_v10 = vpop.f32.mrb[30].mxu0  ;;  %v1947_v11 = vpop.f32.mrb[30].mxu1 }
 0x130   :  { %v1537_v16 = vpop.f32.mrb[31].mxu0  ;;  %v1589_v17 = vpop.f32.mrb[31].mxu1  ;;  %v573_v57 = vadd.f32 %v572_v48, %v2488_v29  ;;  %v2492_v1 = vmax.f32 %v1945_v10, 0.0 }
 0x132   :  { %v574_v17 = vadd.f32 %v573_v57, %v2492_v1 }
 0x135   :  { %v1955_v27 = vpop.f32.mrb[32].mxu0  ;;  %v1957_v28 = vpop.f32.mrb[32].mxu1 }
 0x136   :  { %v1540_v30 = vpop.f32.mrb[33].mxu0  ;;  %v1592_v37 = vpop.f32.mrb[33].mxu1  ;;  %v2493_v5 = vmax.f32 %v1955_v27, 0.0 }
 0x137   :  { %v1960_v40 = vpop.f32.mrb[34].mxu0  ;;  %v1962_v41 = vpop.f32.mrb[34].mxu1 }
 0x138   :  { %v1541_v52 = vpop.f32.mrb[35].mxu0  ;;  %v1593_v53 = vpop.f32.mrb[35].mxu1  ;;  %v575_v48 = vadd.f32 %v574_v17, %v2493_v5 }
 0x139   :  { %v2496_v52 = vmax.f32 %v1960_v40, 0.0 }
 0x13b   :  { %v576_v15 = vadd.f32 %v575_v48, %v2496_v52 }
 0x13d   :  { %v1970_v8 = vpop.f32.mrb[36].mxu0  ;;  %v1972_v16 = vpop.f32.mrb[36].mxu1 }
 0x13e   :  { %v1544_v18 = vpop.f32.mrb[37].mxu0  ;;  %v1596_v30 = vpop.f32.mrb[37].mxu1  ;;  %v2497_v24 = vmax.f32 %v1970_v8, 0.0 }
 0x13f   :  { %v1976_v37 = vpop.f32.mrb[38].mxu0  ;;  %v1978_v23 = vpop.f32.mrb[38].mxu1 }
 0x140   :  { %v1545_v53 = vpop.f32.mrb[39].mxu0  ;;  %v1597_v29 = vpop.f32.mrb[39].mxu1  ;;  %v577_v18 = vadd.f32 %v576_v15, %v2497_v24  ;;  %v2501_v30 = vmax.f32 %v1976_v37, 0.0 }
 0x142   :  { %v578_v48 = vadd.f32 %v577_v18, %v2501_v30 }
 0x145   :  { %v1986_v2 = vpop.f32.mrb[40].mxu0  ;;  %v1988_v57 = vpop.f32.mrb[40].mxu1 }
 0x146   :  { %v1548_v1 = vpop.f32.mrb[41].mxu0  ;;  %v1600_v17 = vpop.f32.mrb[41].mxu1  ;;  %v2502_v29 = vmax.f32 %v1986_v2, 0.0 }
 0x147   :  { %v1993_v5 = vpop.f32.mrb[42].mxu0  ;;  %v1995_v53 = vpop.f32.mrb[42].mxu1 }
 0x148   :  { %v1549_v56 = vpop.f32.mrb[43].mxu0  ;;  %v1601_v49 = vpop.f32.mrb[43].mxu1  ;;  %v579_v52 = vadd.f32 %v578_v48, %v2502_v29  ;;  %v2508_v15 = vmax.f32 %v1993_v5, 0.0 }
 0x14a   :  { %v580_v49 = vadd.f32 %v579_v52, %v2508_v15  ;;  %v540_v15 = vmax.f32 %v1865_v47, 0.0  ;;  %v547_v47 = vmax.f32 %v1909_v21, 0.0 }
 0x14d   :  { %v2003_v24 = vpop.f32.mrb[44].mxu0  ;;  %v2005_v1 = vpop.f32.mrb[44].mxu1 }
 0x14e   :  { %v2506_v17 = vmax.f32 %v2003_v24, 0.0  ;;  %v1552_v32 = vpop.f32.mrb[45].mxu0  ;;  %v1604_v31 = vpop.f32.mrb[45].mxu1 }
 0x14f   :  { %v2008_v22 = vpop.f32.mrb[46].mxu0  ;;  %v508_v56 = vpop.f32.mrb[46].mxu1 }
 0x150   :  { %v1553_v18 = vpop.f32.mrb[47].mxu0  ;;  %v1605_v30 = vpop.f32.mrb[47].mxu1  ;;  %v581_v48 = vadd.f32 %v580_v49, %v2506_v17  ;;  %v2507_v29 = vmax.f32 %v2008_v22, 0.0  ;;  %v2514_v49 = vmax.f32 %v1853_v35, 0.0  ;;  %v538_v17 = vmax.f32 %v1857_v39, 0.0 }
 0x151   :  { %v544_v39 = vmax.f32 %v1881_v63, 0.0 }
 0x152   :  { %v582_v14 = vadd.f32 %v581_v48, %v2507_v29 }
 0x155   :  { %v2015_v19 = vpop.f32.mrb[48].mxu0 }
 0x156   :  { %v2510_v31 = vmax.f32 %v2015_v19, 0.0  ;;  %v1556_v32 = vpop.f32.mrb[49].mxu0 }
 0x157   :  { %v2020_v9 = vpop.f32.mrb[50].mxu0  ;;  %v539_v32 = vmax.f32 %v1861_v43, 0.0  ;;  %v546_v43 = vmax.f32 %v1899_v13, 0.0 }
 0x158   :  { %2521 = vst [vmem:[#allocation3_spill] sm:$0xff] %v2020_v9  ;;  %v583_v52 = vadd.f32 %v582_v14, %v2510_v31  ;;  %v2513_v30 = vmax.f32 %v2020_v9, 0.0  ;;  %v1557_v56 = vpop.f32.mrb[51].mxu0  ;;  %v541_v14 = vmax.f32 %v1869_v51, 0.0  ;;  %v548_v51 = vmax.f32 %v1914_v26, 0.0 }
 0x159   :  { %v542_v56 = vmax.f32 %v1873_v55, 0.0  ;;  %v549_v55 = vmax.f32 %v1924_v36, 0.0 }
 0x15a   :  { %v584_v18 = vadd.f32 %v583_v52, %v2513_v30 }
 0x15c   :  { %v585_v48 = vadd.f32 %v584_v18, %v2514_v49  ;;  %v545_v18 = vmax.f32 %v1892_v7, 0.0 }
 0x15e   :  { %v586_v29 = vadd.f32 %v585_v48, %v538_v17 }
 0x160   :  { %v587_v4 = vadd.f32 %v586_v29, %v539_v32 }
 0x162   :  { %v588_v31 = vadd.f32 %v587_v4, %v540_v15 }
 0x164   :  { %v589_v0 = vadd.f32 %v588_v31, %v541_v14 }
 0x166   :  { %v590_v52 = vadd.f32 %v589_v0, %v542_v56  ;;  %v550_v0 = vmax.f32 %v1930_v45, 0.0  ;;  %v557_v45 = vmax.f32 %v1988_v57, 0.0 }
 0x168   :  { %v591_v30 = vadd.f32 %v590_v52, %v543_v3  ;;  %v551_v52 = vmax.f32 %v1940_v61, 0.0  ;;  %v558_v61 = vmax.f32 %v1995_v53, 0.0 }
 0x16a   :  { %v592_v49 = vadd.f32 %v591_v30, %v544_v39  ;;  %v552_v30 = vmax.f32 %v1947_v11, 0.0  ;;  %v559_v11 = vmax.f32 %v2005_v1, 0.0 }
 0x16c   :  { %v593_v48 = vadd.f32 %v592_v49, %v545_v18  ;;  %v553_v49 = vmax.f32 %v1957_v28, 0.0 }
 0x16e   :  { %v594_v29 = vadd.f32 %v593_v48, %v546_v43  ;;  %v554_v48 = vmax.f32 %v1962_v41, 0.0 }
 0x170   :  { %v595_v4 = vadd.f32 %v594_v29, %v547_v47  ;;  %v555_v29 = vmax.f32 %v1972_v16, 0.0 }
 0x172   :  { %v596_v31 = vadd.f32 %v595_v4, %v548_v51  ;;  %v556_v4 = vmax.f32 %v1978_v23, 0.0 }
 0x174   :  { %v597_v59 = vadd.f32 %v596_v31, %v549_v55 }
 0x176   :  { %v598_v63 = vadd.f32 %v597_v59, %v550_v0 }
 0x178   :  { %v599_v7 = vadd.f32 %v598_v63, %v551_v52 }
 0x17a   :  { %v600_v13 = vadd.f32 %v599_v7, %v552_v30 }
 0x17c   :  { %v601_v21 = vadd.f32 %v600_v13, %v553_v49 }
 0x17e   :  { %v602_v26 = vadd.f32 %v601_v21, %v554_v48 }
 0x180   :  { %v603_v36 = vadd.f32 %v602_v26, %v555_v29 }
 0x182   :  { %v604_v31 = vadd.f32 %v603_v36, %v556_v4 }
 0x184   :  { %v605_v59 = vadd.f32 %v604_v31, %v557_v45 }
 0x186   :  { %v606_v63 = vadd.f32 %v605_v59, %v558_v61 }
 0x188   :  { %v607_v7 = vadd.f32 %v606_v63, %v559_v11 }
 0x18a   :  { %v608_v28 = vrot.slane %v607_v7, 4 }
 0x18c   :  { %v609_v13 = vadd.f32 %v608_v28, %v607_v7  ;;  %v2530_v7 = vmax.f32 %v1871_v54, 0.0 }
 0x18e   :  { %v610_v35 = vrot.slane %v609_v13, 2 }
 0x190   :  { %v611_v41 = vadd.f32 %v610_v35, %v609_v13 }
 0x192   :  { %v612_v21 = vrot.slane %v611_v41, 1 }
 0x194   :  { %v613_v9 = vadd.f32 %v612_v21, %v611_v41  ;;  %v2531_v41 = vmax.f32 %v1875_v58, 0.0 }
 0x196   :  { %v2052_v16 = vmul.f32 0.0025510204, %v613_v9 }
 0x198   :  { %v2055_v23 = vsub.f32 %v538_v17, %v2052_v16  ;;  %v2058_v57 = vsub.f32 %v539_v32, %v2052_v16  ;;  %v2061_v53 = vsub.f32 %v540_v15, %v2052_v16  ;;  %v2064_v1 = vsub.f32 %v541_v14, %v2052_v16 }
 0x199   :  { %v2067_v26 = vsub.f32 %v542_v56, %v2052_v16  ;;  %v2070_v35 = vsub.f32 %v543_v3, %v2052_v16  ;;  %v2073_v9 = vsub.f32 %v544_v39, %v2052_v16  ;;  %v2076_v17 = vsub.f32 %v545_v18, %v2052_v16 }
 0x19a   :  { %v2079_v32 = vsub.f32 %v546_v43, %v2052_v16  ;;  %v2082_v15 = vsub.f32 %v547_v47, %v2052_v16  ;;  %v2085_v14 = vsub.f32 %v548_v51, %v2052_v16  ;;  %v2088_v56 = vsub.f32 %v549_v55, %v2052_v16 }
 0x19b   :  { %v2091_v3 = vsub.f32 %v550_v0, %v2052_v16  ;;  %v2094_v39 = vsub.f32 %v551_v52, %v2052_v16  ;;  %v2097_v18 = vsub.f32 %v552_v30, %v2052_v16  ;;  %v2100_v43 = vsub.f32 %v553_v49, %v2052_v16 }
 0x19c   :  { %v2103_v47 = vsub.f32 %v554_v48, %v2052_v16  ;;  %v2106_v51 = vsub.f32 %v555_v29, %v2052_v16  ;;  %v2109_v55 = vsub.f32 %v556_v4, %v2052_v16  ;;  %v2112_v0 = vsub.f32 %v557_v45, %v2052_v16 }
 0x19d   :  { %v2115_v52 = vsub.f32 %v558_v61, %v2052_v16  ;;  %v2118_v30 = vsub.f32 %v559_v11, %v2052_v16  ;;  %v2525_v49 = vmax.f32 %v1851_v34, 0.0  ;;  %v2526_v29 = vmax.f32 %v1855_v38, 0.0 }
 0x19e   :  { %2522 = vst [vmem:[#allocation4_spill] sm:$0xff] %v2106_v51  ;;  %2523 = vst [vmem:[#allocation5_spill] sm:$0xff] %v2109_v55  ;;  %v2527_v4 = vmax.f32 %v1859_v42, 0.0  ;;  %v2528_v34 = vmax.f32 %v1863_v46, 0.0  ;;  %v2529_v38 = vmax.f32 %v1867_v50, 0.0  ;;  %v2154_v28 = vsub.f32 %v2530_v7, %v2052_v16 }
 0x19f   :  { %2524 = vst [vmem:[#allocation6_spill] sm:$0xff] %v2112_v0  ;;  %v2123_v48 = vsub.f32 %v2525_v49, %v2052_v16  ;;  %v2128_v36 = vsub.f32 %v2526_v29, %v2052_v16  ;;  %v2161_v21 = vsub.f32 %v2531_v41, %v2052_v16  ;;  %v2532_v29 = vmax.f32 %v1879_v62, 0.0 }
 0x1a0   :  { %v2133_v31 = vsub.f32 %v2527_v4, %v2052_v16  ;;  %v2142_v61 = vsub.f32 %v2528_v34, %v2052_v16  ;;  %v2147_v11 = vsub.f32 %v2529_v38, %v2052_v16  ;;  %v669_v54 = vmul.f32 %v2154_v28, %v2154_v28 }
 0x1a1   :  { %v664_v45 = vmul.f32 %v2123_v48, %v2123_v48  ;;  %v665_v59 = vmul.f32 %v2128_v36, %v2128_v36  ;;  %v2168_v4 = vsub.f32 %v2532_v29, %v2052_v16  ;;  %v670_v58 = vmul.f32 %v2161_v21, %v2161_v21 }
 0x1a2   :  { %v666_v42 = vmul.f32 %v2133_v31, %v2133_v31  ;;  %v667_v13 = vmul.f32 %v2142_v61, %v2142_v61  ;;  %v668_v50 = vmul.f32 %v2147_v11, %v2147_v11 }
 0x1a3   :  { %v713_v63 = vadd.f32 %v665_v59, %v664_v45  ;;  %v2533_v59 = vmax.f32 %v1890_v6, 0.0  ;;  %v671_v62 = vmul.f32 %v2168_v4, %v2168_v4 }
 0x1a5   :  { %v714_v46 = vadd.f32 %v713_v63, %v666_v42  ;;  %v2175_v34 = vsub.f32 %v2533_v59, %v2052_v16  ;;  %v2534_v42 = vmax.f32 %v1897_v12, 0.0 }
 0x1a7   :  { %v715_v49 = vadd.f32 %v714_v46, %v667_v13  ;;  %v2182_v63 = vsub.f32 %v2534_v42, %v2052_v16  ;;  %v2535_v13 = vmax.f32 %v1907_v20, 0.0  ;;  %v672_v6 = vmul.f32 %v2175_v34, %v2175_v34 }
 0x1a9   :  { %v716_v45 = vadd.f32 %v715_v49, %v668_v50  ;;  %v2189_v46 = vsub.f32 %v2535_v13, %v2052_v16  ;;  %v2536_v50 = vmax.f32 %v1912_v25, 0.0  ;;  %v673_v12 = vmul.f32 %v2182_v63, %v2182_v63 }
 0x1ab   :  { %v717_v38 = vadd.f32 %v716_v45, %v669_v54  ;;  %v2196_v49 = vsub.f32 %v2536_v50, %v2052_v16  ;;  %v2537_v54 = vmax.f32 %v1922_v33, 0.0  ;;  %v674_v20 = vmul.f32 %v2189_v46, %v2189_v46 }
 0x1ad   :  { %v718_v7 = vadd.f32 %v717_v38, %v670_v58  ;;  %v2203_v45 = vsub.f32 %v2537_v54, %v2052_v16  ;;  %v2538_v58 = vmax.f32 %v1928_v44, 0.0  ;;  %v675_v25 = vmul.f32 %v2196_v49, %v2196_v49 }
 0x1af   :  { %v719_v41 = vadd.f32 %v718_v7, %v671_v62  ;;  %v2210_v38 = vsub.f32 %v2538_v58, %v2052_v16  ;;  %v2539_v62 = vmax.f32 %v1938_v60, 0.0  ;;  %v676_v33 = vmul.f32 %v2203_v45, %v2203_v45 }
 0x1b1   :  { %v720_v29 = vadd.f32 %v719_v41, %v672_v6  ;;  %v2217_v7 = vsub.f32 %v2539_v62, %v2052_v16  ;;  %v2540_v6 = vmax.f32 %v1945_v10, 0.0  ;;  %v677_v44 = vmul.f32 %v2210_v38, %v2210_v38 }
 0x1b3   :  { %v721_v59 = vadd.f32 %v720_v29, %v673_v12  ;;  %v2224_v41 = vsub.f32 %v2540_v6, %v2052_v16  ;;  %v2541_v12 = vmax.f32 %v1955_v27, 0.0  ;;  %v678_v60 = vmul.f32 %v2217_v7, %v2217_v7 }
 0x1b5   :  { %v722_v42 = vadd.f32 %v721_v59, %v674_v20  ;;  %v2231_v29 = vsub.f32 %v2541_v12, %v2052_v16  ;;  %v2542_v20 = vmax.f32 %v1960_v40, 0.0  ;;  %v679_v10 = vmul.f32 %v2224_v41, %v2224_v41 }
 0x1b7   :  { %v723_v13 = vadd.f32 %v722_v42, %v675_v25  ;;  %v2238_v59 = vsub.f32 %v2542_v20, %v2052_v16  ;;  %v2543_v25 = vmax.f32 %v1970_v8, 0.0  ;;  %v680_v27 = vmul.f32 %v2231_v29, %v2231_v29 }
 0x1b9   :  { %v724_v50 = vadd.f32 %v723_v13, %v676_v33  ;;  %v2245_v42 = vsub.f32 %v2543_v25, %v2052_v16  ;;  %v2544_v33 = vmax.f32 %v1976_v37, 0.0  ;;  %v681_v40 = vmul.f32 %v2238_v59, %v2238_v59 }
 0x1bb   :  { %v725_v54 = vadd.f32 %v724_v50, %v677_v44  ;;  %v2252_v13 = vsub.f32 %v2544_v33, %v2052_v16  ;;  %v2545_v44 = vmax.f32 %v1986_v2, 0.0  ;;  %v682_v8 = vmul.f32 %v2245_v42, %v2245_v42 }
 0x1bd   :  { %v726_v58 = vadd.f32 %v725_v54, %v678_v60  ;;  %v2259_v50 = vsub.f32 %v2545_v44, %v2052_v16  ;;  %v2546_v60 = vmax.f32 %v1993_v5, 0.0  ;;  %v683_v37 = vmul.f32 %v2252_v13, %v2252_v13 }
 0x1bf   :  { %v727_v62 = vadd.f32 %v726_v58, %v679_v10  ;;  %v2266_v54 = vsub.f32 %v2546_v60, %v2052_v16  ;;  %v2547_v10 = vmax.f32 %v2003_v24, 0.0  ;;  %v684_v2 = vmul.f32 %v2259_v50, %v2259_v50 }
 0x1c1   :  { %v728_v6 = vadd.f32 %v727_v62, %v680_v27  ;;  %v2273_v58 = vsub.f32 %v2547_v10, %v2052_v16  ;;  %v2548_v27 = vmax.f32 %v2008_v22, 0.0  ;;  %v685_v5 = vmul.f32 %v2266_v54, %v2266_v54 }
 0x1c3   :  { %v729_v12 = vadd.f32 %v728_v6, %v681_v40  ;;  %v2280_v62 = vsub.f32 %v2548_v27, %v2052_v16  ;;  %v2549_v40 = vmax.f32 %v2015_v19, 0.0  ;;  %v686_v24 = vmul.f32 %v2273_v58, %v2273_v58 }
 0x1c5   :  { %v730_v20 = vadd.f32 %v729_v12, %v682_v8  ;;  %v2287_v6 = vsub.f32 %v2549_v40, %v2052_v16  ;;  %v2550_v8 = vld [vmem:[#allocation3_spill] sm:$0xff]  ;;  %v687_v22 = vmul.f32 %v2280_v62, %v2280_v62 }
 0x1c6   :  { %v2551_v12 = vmax.f32 %v2550_v8, 0.0 }
 0x1c7   :  { %v731_v25 = vadd.f32 %v730_v20, %v683_v37  ;;  %v2552_v20 = vld [vmem:[#allocation2_spill] sm:$0xff]  ;;  %v688_v19 = vmul.f32 %v2287_v6, %v2287_v6 }
 0x1c8   :  { %v2294_v60 = vsub.f32 %v2551_v12, %v2052_v16  ;;  %v2553_v10 = vmax.f32 %v2552_v20, 0.0  ;;  %v693_v12 = vmul.f32 %v2061_v53, %v2061_v53 }
 0x1c9   :  { %v732_v33 = vadd.f32 %v731_v25, %v684_v2 }
 0x1ca   :  { %v2301_v2 = vsub.f32 %v2553_v10, %v2052_v16  ;;  %v689_v27 = vmul.f32 %v2294_v60, %v2294_v60  ;;  %v692_v16 = vmul.f32 %v2058_v57, %v2058_v57  ;;  %v695_v10 = vmul.f32 %v2067_v26, %v2067_v26 }
 0x1cb   :  { %v733_v44 = vadd.f32 %v732_v33, %v685_v5 }
 0x1cc   :  { %v690_v33 = vmul.f32 %v2301_v2, %v2301_v2 }
 0x1cd   :  { %v734_v37 = vadd.f32 %v733_v44, %v686_v24  ;;  %v691_v24 = vmul.f32 %v2055_v23, %v2055_v23 }
 0x1cf   :  { %v735_v25 = vadd.f32 %v734_v37, %v687_v22  ;;  %v694_v37 = vmul.f32 %v2064_v1, %v2064_v1 }
 0x1d1   :  { %v736_v5 = vadd.f32 %v735_v25, %v688_v19  ;;  %v696_v25 = vmul.f32 %v2070_v35, %v2070_v35 }
 0x1d3   :  { %v737_v40 = vadd.f32 %v736_v5, %v689_v27  ;;  %v697_v5 = vmul.f32 %v2073_v9, %v2073_v9 }
 0x1d5   :  { %v738_v44 = vadd.f32 %v737_v40, %v690_v33  ;;  %v698_v40 = vmul.f32 %v2076_v17, %v2076_v17 }
 0x1d7   :  { %v739_v8 = vadd.f32 %v738_v44, %v691_v24  ;;  %v699_v44 = vmul.f32 %v2079_v32, %v2079_v32 }
 0x1d9   :  { %v740_v22 = vadd.f32 %v739_v8, %v692_v16  ;;  %v700_v8 = vmul.f32 %v2082_v15, %v2082_v15 }
 0x1db   :  { %v741_v20 = vadd.f32 %v740_v22, %v693_v12  ;;  %v701_v22 = vmul.f32 %v2085_v14, %v2085_v14 }
 0x1dd   :  { %v742_v19 = vadd.f32 %v741_v20, %v694_v37  ;;  %v702_v20 = vmul.f32 %v2088_v56, %v2088_v56 }
 0x1df   :  { %v743_v27 = vadd.f32 %v742_v19, %v695_v10  ;;  %v703_v19 = vmul.f32 %v2091_v3, %v2091_v3 }
 0x1e1   :  { %v744_v33 = vadd.f32 %v743_v27, %v696_v25  ;;  %v704_v27 = vmul.f32 %v2094_v39, %v2094_v39 }
 0x1e3   :  { %v745_v24 = vadd.f32 %v744_v33, %v697_v5  ;;  %v705_v33 = vmul.f32 %v2097_v18, %v2097_v18 }
 0x1e5   :  { %v746_v16 = vadd.f32 %v745_v24, %v698_v40  ;;  %v706_v24 = vmul.f32 %v2100_v43, %v2100_v43 }
 0x1e7   :  { %v747_v12 = vadd.f32 %v746_v16, %v699_v44  ;;  %v707_v16 = vmul.f32 %v2103_v47, %v2103_v47 }
 0x1e9   :  { %v748_v37 = vadd.f32 %v747_v12, %v700_v8  ;;  %v708_v12 = vmul.f32 %v2106_v51, %v2106_v51 }
 0x1eb   :  { %v749_v10 = vadd.f32 %v748_v37, %v701_v22  ;;  %v709_v37 = vmul.f32 %v2109_v55, %v2109_v55 }
 0x1ed   :  { %v750_v25 = vadd.f32 %v749_v10, %v702_v20  ;;  %v710_v10 = vmul.f32 %v2112_v0, %v2112_v0 }
 0x1ef   :  { %v751_v5 = vadd.f32 %v750_v25, %v703_v19  ;;  %v711_v25 = vmul.f32 %v2115_v52, %v2115_v52 }
 0x1f1   :  { %v752_v40 = vadd.f32 %v751_v5, %v704_v27  ;;  %v712_v5 = vmul.f32 %v2118_v30, %v2118_v30 }
 0x1f3   :  { %v753_v44 = vadd.f32 %v752_v40, %v705_v33 }
 0x1f5   :  { %v754_v8 = vadd.f32 %v753_v44, %v706_v24 }
 0x1f7   :  { %v755_v22 = vadd.f32 %v754_v8, %v707_v16 }
 0x1f9   :  { %v756_v20 = vadd.f32 %v755_v22, %v708_v12 }
 0x1fb   :  { %v757_v19 = vadd.f32 %v756_v20, %v709_v37 }
 0x1fd   :  { %v758_v27 = vadd.f32 %v757_v19, %v710_v10 }
 0x1ff   :  { %v759_v33 = vadd.f32 %v758_v27, %v711_v25 }
 0x201   :  { %v760_v40 = vadd.f32 %v759_v33, %v712_v5 }
 0x203   :  { %v761_v24 = vrot.slane %v760_v40, 4 }
 0x205   :  { %v762_v44 = vadd.f32 %v761_v24, %v760_v40  ;;  %v2555_v40 = vld [vmem:[#allocation5_spill] sm:$0xff]  ;;  %v2556_v24 = vld [vmem:[#allocation6_spill] sm:$0xff] }
 0x207   :  { %v763_v16 = vrot.slane %v762_v44, 2 }
 0x209   :  { %v764_v8 = vadd.f32 %v763_v16, %v762_v44 }
 0x20b   :  { %v765_v51 = vrot.slane %v764_v8, 1 }
 0x20d   :  { %v766_v55 = vadd.f32 %v765_v51, %v764_v8 }
 0x20f   :  { %v767_v12 = vmul.f32 0.0025510204, %v766_v55 }
 0x211   :  { %v768_v22 = vadd.f32 1e-05, %v767_v12 }
 0x213   :  { %1657 = vrsqrt.f32 %v768_v22 }
 0x21d   :  { %v1658_v0 = vpop.eup %1657 }
 0x21e   :  { %v770_v37 = vmul.f32 %v1658_v0, %v2123_v48  ;;  %v771_v20 = vmul.f32 %v1658_v0, %v2128_v36  ;;  %v772_v10 = vmul.f32 %v1658_v0, %v2133_v31  ;;  %v773_v19 = vmul.f32 %v1658_v0, %v2142_v61 }
 0x21f   :  { %v774_v25 = vmul.f32 %v1658_v0, %v2147_v11  ;;  %v775_v27 = vmul.f32 %v1658_v0, %v2154_v28  ;;  %v776_v5 = vmul.f32 %v1658_v0, %v2161_v21  ;;  %v777_v51 = vmul.f32 %v1658_v0, %v2168_v4 }
 0x220   :  { %v778_v55 = vmul.f32 %v1658_v0, %v2175_v34  ;;  %v779_v33 = vmul.f32 %v1658_v0, %v2182_v63  ;;  %v780_v48 = vmul.f32 %v1658_v0, %v2189_v46  ;;  %v781_v36 = vmul.f32 %v1658_v0, %v2196_v49 }
 0x221   :  { %v782_v31 = vmul.f32 %v1658_v0, %v2203_v45  ;;  %v783_v61 = vmul.f32 %v1658_v0, %v2210_v38  ;;  %v784_v11 = vmul.f32 %v1658_v0, %v2217_v7  ;;  %v785_v28 = vmul.f32 %v1658_v0, %v2224_v41 }
 0x222   :  { %v786_v21 = vmul.f32 %v1658_v0, %v2231_v29  ;;  %v787_v4 = vmul.f32 %v1658_v0, %v2238_v59  ;;  %v788_v34 = vmul.f32 %v1658_v0, %v2245_v42  ;;  %v789_v63 = vmul.f32 %v1658_v0, %v2252_v13 }
 0x223   :  { %v790_v46 = vmul.f32 %v1658_v0, %v2259_v50  ;;  %v791_v49 = vmul.f32 %v1658_v0, %v2266_v54  ;;  %v792_v45 = vmul.f32 %v1658_v0, %v2273_v58  ;;  %v793_v38 = vmul.f32 %v1658_v0, %v2280_v62 }
 0x224   :  { %v794_v7 = vmul.f32 %v1658_v0, %v2287_v6  ;;  %v795_v41 = vmul.f32 %v1658_v0, %v2294_v60  ;;  %v796_v29 = vmul.f32 %v1658_v0, %v2301_v2  ;;  %v797_v59 = vmul.f32 %v1658_v0, %v2055_v23 }
 0x225   :  { %v798_v42 = vmul.f32 %v1658_v0, %v2058_v57  ;;  %v799_v13 = vmul.f32 %v1658_v0, %v2061_v53  ;;  %v800_v50 = vmul.f32 %v1658_v0, %v2064_v1  ;;  %v801_v54 = vmul.f32 %v1658_v0, %v2067_v26  ;;  %v1214_v1 = vld [vmem:[%s2485_s2] ss:$0 sm:$0xff] }
 0x226   :  { %v802_v58 = vmul.f32 %v1658_v0, %v2070_v35  ;;  %v803_v62 = vmul.f32 %v1658_v0, %v2073_v9  ;;  %v804_v6 = vmul.f32 %v1658_v0, %v2076_v17  ;;  %v805_v60 = vmul.f32 %v1658_v0, %v2079_v32  ;;  %v2554_v32 = vld [vmem:[#allocation4_spill] sm:$0xff] }
 0x227   :  { %v806_v2 = vmul.f32 %v1658_v0, %v2082_v15  ;;  %v807_v23 = vmul.f32 %v1658_v0, %v2085_v14  ;;  %v808_v57 = vmul.f32 %v1658_v0, %v2088_v56  ;;  %v809_v53 = vmul.f32 %v1658_v0, %v2091_v3 }
 0x228   :  { %v810_v26 = vmul.f32 %v1658_v0, %v2094_v39  ;;  %v811_v35 = vmul.f32 %v1658_v0, %v2097_v18  ;;  %v812_v9 = vmul.f32 %v1658_v0, %v2100_v43  ;;  %v813_v17 = vmul.f32 %v1658_v0, %v2103_v47 }
 0x229   :  { %v814_v15 = vmul.f32 %v1658_v0, %v2554_v32  ;;  %v815_v14 = vmul.f32 %v1658_v0, %v2555_v40  ;;  %v816_v56 = vmul.f32 %v1658_v0, %v2556_v24  ;;  %v817_v3 = vmul.f32 %v1658_v0, %v2115_v52 }
 0x22a   :  { %v818_v44 = vmul.f32 %v1658_v0, %v2118_v30  ;;  %v826_v16 = vmul.f32 %v1214_v1, %v770_v37  ;;  %v827_v8 = vmul.f32 %v1214_v1, %v771_v20  ;;  %v828_v12 = vmul.f32 %v1214_v1, %v772_v10 }
 0x22b   :  { %v829_v39 = vmul.f32 %v1214_v1, %v773_v19  ;;  %v830_v22 = vmul.f32 %v1214_v1, %v774_v25  ;;  %v831_v18 = vmul.f32 %v1214_v1, %v775_v27  ;;  %v832_v43 = vmul.f32 %v1214_v1, %v776_v5 }
 0x22c   :  { %v833_v47 = vmul.f32 %v1214_v1, %v777_v51  ;;  %v834_v32 = vmul.f32 %v1214_v1, %v778_v55  ;;  %v835_v40 = vmul.f32 %v1214_v1, %v779_v33  ;;  %v836_v24 = vmul.f32 %v1214_v1, %v780_v48 }
 0x22d   :  { %v837_v52 = vmul.f32 %v1214_v1, %v781_v36  ;;  %v838_v0 = vmul.f32 %v1214_v1, %v782_v31  ;;  %v839_v30 = vmul.f32 %v1214_v1, %v783_v61  ;;  %v840_v37 = vmul.f32 %v1214_v1, %v784_v11 }
 0x22e   :  { %v841_v20 = vmul.f32 %v1214_v1, %v785_v28  ;;  %v842_v10 = vmul.f32 %v1214_v1, %v786_v21  ;;  %v843_v19 = vmul.f32 %v1214_v1, %v787_v4  ;;  %v844_v25 = vmul.f32 %v1214_v1, %v788_v34 }
 0x22f   :  { %v845_v27 = vmul.f32 %v1214_v1, %v789_v63  ;;  %v846_v5 = vmul.f32 %v1214_v1, %v790_v46  ;;  %v847_v51 = vmul.f32 %v1214_v1, %v791_v49  ;;  %v848_v55 = vmul.f32 %v1214_v1, %v792_v45 }
 0x230   :  { %v849_v33 = vmul.f32 %v1214_v1, %v793_v38  ;;  %v850_v48 = vmul.f32 %v1214_v1, %v794_v7  ;;  %v851_v36 = vmul.f32 %v1214_v1, %v795_v41  ;;  %v852_v31 = vmul.f32 %v1214_v1, %v796_v29  ;;  %v1215_v41 = vld [vmem:[%s2486_s3] ss:$0 sm:$0xff] }
 0x231   :  { %v853_v61 = vmul.f32 %v1214_v1, %v797_v59  ;;  %v854_v11 = vmul.f32 %v1214_v1, %v798_v42  ;;  %v855_v28 = vmul.f32 %v1214_v1, %v799_v13  ;;  %v856_v21 = vmul.f32 %v1214_v1, %v800_v50 }
 0x232   :  { %v857_v4 = vmul.f32 %v1214_v1, %v801_v54  ;;  %v858_v34 = vmul.f32 %v1214_v1, %v802_v58  ;;  %v859_v63 = vmul.f32 %v1214_v1, %v803_v62  ;;  %v860_v46 = vmul.f32 %v1214_v1, %v804_v6 }
 0x233   :  { %v861_v49 = vmul.f32 %v1214_v1, %v805_v60  ;;  %v862_v45 = vmul.f32 %v1214_v1, %v806_v2  ;;  %v863_v38 = vmul.f32 %v1214_v1, %v807_v23  ;;  %v864_v7 = vmul.f32 %v1214_v1, %v808_v57 }
 0x234   :  { %v865_v29 = vmul.f32 %v1214_v1, %v809_v53  ;;  %v866_v59 = vmul.f32 %v1214_v1, %v810_v26  ;;  %v867_v42 = vmul.f32 %v1214_v1, %v811_v35  ;;  %v868_v13 = vmul.f32 %v1214_v1, %v812_v9 }
 0x235   :  { %v869_v50 = vmul.f32 %v1214_v1, %v813_v17  ;;  %v870_v54 = vmul.f32 %v1214_v1, %v814_v15  ;;  %v871_v58 = vmul.f32 %v1214_v1, %v815_v14  ;;  %v872_v62 = vmul.f32 %v1214_v1, %v816_v56 }
 0x236   :  { %v873_v6 = vmul.f32 %v1214_v1, %v817_v3  ;;  %v874_v60 = vmul.f32 %v1214_v1, %v818_v44  ;;  %v882_v2 = vadd.f32 %v1215_v41, %v826_v16  ;;  %v883_v23 = vadd.f32 %v1215_v41, %v827_v8 }
 0x237   :  { %v884_v57 = vadd.f32 %v1215_v41, %v828_v12  ;;  %v885_v53 = vadd.f32 %v1215_v41, %v829_v39  ;;  %v886_v26 = vadd.f32 %v1215_v41, %v830_v22  ;;  %v887_v35 = vadd.f32 %v1215_v41, %v831_v18 }
 0x238   :  { %v888_v9 = vadd.f32 %v1215_v41, %v832_v43  ;;  %v889_v17 = vadd.f32 %v1215_v41, %v833_v47  ;;  %v890_v15 = vadd.f32 %v1215_v41, %v834_v32  ;;  %v891_v14 = vadd.f32 %v1215_v41, %v835_v40 }
 0x239   :  { %v892_v56 = vadd.f32 %v1215_v41, %v836_v24  ;;  %v893_v3 = vadd.f32 %v1215_v41, %v837_v52  ;;  %v894_v1 = vadd.f32 %v1215_v41, %v838_v0  ;;  %v895_v44 = vadd.f32 %v1215_v41, %v839_v30 }
 0x23a   :  { %v896_v16 = vadd.f32 %v1215_v41, %v840_v37  ;;  %v897_v8 = vadd.f32 %v1215_v41, %v841_v20  ;;  %v898_v12 = vadd.f32 %v1215_v41, %v842_v10  ;;  %v899_v39 = vadd.f32 %v1215_v41, %v843_v19 }
 0x23b   :  { %v900_v22 = vadd.f32 %v1215_v41, %v844_v25  ;;  %v901_v18 = vadd.f32 %v1215_v41, %v845_v27  ;;  %v902_v43 = vadd.f32 %v1215_v41, %v846_v5  ;;  %v903_v47 = vadd.f32 %v1215_v41, %v847_v51 }
 0x23c   :  { %v904_v32 = vadd.f32 %v1215_v41, %v848_v55  ;;  %v905_v40 = vadd.f32 %v1215_v41, %v849_v33  ;;  %v906_v24 = vadd.f32 %v1215_v41, %v850_v48  ;;  %v907_v52 = vadd.f32 %v1215_v41, %v851_v36 }
 0x23d   :  { %v908_v0 = vadd.f32 %v1215_v41, %v852_v31  ;;  %v909_v30 = vadd.f32 %v1215_v41, %v853_v61  ;;  %v910_v37 = vadd.f32 %v1215_v41, %v854_v11  ;;  %v911_v20 = vadd.f32 %v1215_v41, %v855_v28 }
 0x23e   :  { %v912_v10 = vadd.f32 %v1215_v41, %v856_v21  ;;  %v913_v19 = vadd.f32 %v1215_v41, %v857_v4  ;;  %v914_v25 = vadd.f32 %v1215_v41, %v858_v34  ;;  %v915_v27 = vadd.f32 %v1215_v41, %v859_v63 }
 0x23f   :  { %v916_v5 = vadd.f32 %v1215_v41, %v860_v46  ;;  %v917_v51 = vadd.f32 %v1215_v41, %v861_v49  ;;  %v918_v55 = vadd.f32 %v1215_v41, %v862_v45  ;;  %v919_v33 = vadd.f32 %v1215_v41, %v863_v38 }
 0x240   :  { %v920_v48 = vadd.f32 %v1215_v41, %v864_v7  ;;  %v921_v36 = vadd.f32 %v1215_v41, %v865_v29  ;;  %v922_v31 = vadd.f32 %v1215_v41, %v866_v59  ;;  %v923_v61 = vadd.f32 %v1215_v41, %v867_v42 }
 0x241   :  { %v924_v11 = vadd.f32 %v1215_v41, %v868_v13  ;;  %v925_v28 = vadd.f32 %v1215_v41, %v869_v50  ;;  %v926_v21 = vadd.f32 %v1215_v41, %v870_v54  ;;  %v927_v4 = vadd.f32 %v1215_v41, %v871_v58 }
 0x242   :  { %v928_v34 = vadd.f32 %v1215_v41, %v872_v62  ;;  %v929_v63 = vadd.f32 %v1215_v41, %v873_v6  ;;  %v930_v46 = vadd.f32 %v1215_v41, %v874_v60  ;;  %v1317_v49 = vpack.c.bf16 %v883_v23, %v882_v2 }
 0x243   :  { %v1322_v45 = vpack.c.bf16 %v885_v53, %v884_v57  ;;  %v1327_v38 = vpack.c.bf16 %v887_v35, %v886_v26  ;;  %v1332_v7 = vpack.c.bf16 %v889_v17, %v888_v9  ;;  %v1337_v29 = vpack.c.bf16 %v891_v14, %v890_v15 }
 0x244   :  { %v1313_v59 = vpack.c.bf16 %v930_v46, %v930_v46  ;;  %1318 = vst [vmem:[%s2487_s4] sm:$0xff] %v1317_v49   ;;  %v1342_v42 = vpack.c.bf16 %v893_v3, %v892_v56  ;;  %v1347_v13 = vpack.c.bf16 %v895_v44, %v894_v1  ;;  %v1352_v50 = vpack.c.bf16 %v897_v8, %v896_v16 }
 0x245   :  { %1434 = vst [vmem:[%s2487_s4 + $0x8] sm:$0xff] %v1322_v45   ;;  %1435 = vst [vmem:[%s2487_s4 + $0x10] sm:$0xff] %v1327_v38   ;;  %v1357_v41 = vpack.c.bf16 %v899_v39, %v898_v12  ;;  %v1362_v54 = vpack.c.bf16 %v901_v18, %v900_v22  ;;  %v1367_v58 = vpack.c.bf16 %v903_v47, %v902_v43 }
 0x246   :  { %1436 = vst [vmem:[%s2487_s4 + $0x18] sm:$0xff] %v1332_v7   ;;  %1437 = vst [vmem:[%s2487_s4 + $0x20] sm:$0xff] %v1337_v29   ;;  %v1372_v62 = vpack.c.bf16 %v905_v40, %v904_v32  ;;  %v1377_v6 = vpack.c.bf16 %v907_v52, %v906_v24  ;;  %v1382_v60 = vpack.c.bf16 %v909_v30, %v908_v0 }
 0x247   :  { %1438 = vst [vmem:[%s2487_s4 + $0x28] sm:$0xff] %v1342_v42   ;;  %1439 = vst [vmem:[%s2487_s4 + $0x30] sm:$0xff] %v1347_v13   ;;  %v1387_v2 = vpack.c.bf16 %v911_v20, %v910_v37  ;;  %v1392_v23 = vpack.c.bf16 %v913_v19, %v912_v10  ;;  %v1397_v57 = vpack.c.bf16 %v915_v27, %v914_v25 }
 0x248   :  { %1440 = vst [vmem:[%s2487_s4 + $0x38] sm:$0xff] %v1352_v50   ;;  %1176 = vst [vmem:[%s2487_s4 + $0xc0] sm:$0xf] %v1313_v59  ;;  %v1402_v53 = vpack.c.bf16 %v917_v51, %v916_v5  ;;  %v1407_v26 = vpack.c.bf16 %v919_v33, %v918_v55  ;;  %v1412_v35 = vpack.c.bf16 %v921_v36, %v920_v48 }
 0x249   :  { %1441 = vst [vmem:[%s2487_s4 + $0x40] sm:$0xff] %v1357_v41   ;;  %1442 = vst [vmem:[%s2487_s4 + $0x48] sm:$0xff] %v1362_v54   ;;  %v1417_v9 = vpack.c.bf16 %v923_v61, %v922_v31  ;;  %v1422_v17 = vpack.c.bf16 %v925_v28, %v924_v11  ;;  %v1427_v15 = vpack.c.bf16 %v927_v4, %v926_v21 }
 0x24a   :  { %1443 = vst [vmem:[%s2487_s4 + $0x50] sm:$0xff] %v1367_v58   ;;  %1444 = vst [vmem:[%s2487_s4 + $0x58] sm:$0xff] %v1372_v62   ;;  %v1432_v14 = vpack.c.bf16 %v929_v63, %v928_v34 }
 0x24b   :  { %1445 = vst [vmem:[%s2487_s4 + $0x60] sm:$0xff] %v1377_v6   ;;  %1446 = vst [vmem:[%s2487_s4 + $0x68] sm:$0xff] %v1382_v60  }
 0x24c   :  { %1447 = vst [vmem:[%s2487_s4 + $0x70] sm:$0xff] %v1387_v2   ;;  %1448 = vst [vmem:[%s2487_s4 + $0x78] sm:$0xff] %v1392_v23  }
 0x24d   :  { %1449 = vst [vmem:[%s2487_s4 + $0x80] sm:$0xff] %v1397_v57   ;;  %1450 = vst [vmem:[%s2487_s4 + $0x88] sm:$0xff] %v1402_v53  }
 0x24e   :  { %1451 = vst [vmem:[%s2487_s4 + $0x90] sm:$0xff] %v1407_v26   ;;  %1452 = vst [vmem:[%s2487_s4 + $0x98] sm:$0xff] %v1412_v35  }
 0x24f   :  { %1453 = vst [vmem:[%s2487_s4 + $0xa0] sm:$0xff] %v1417_v9   ;;  %1454 = vst [vmem:[%s2487_s4 + $0xa8] sm:$0xff] %v1422_v17  }
 0x250   :  { %1455 = vst [vmem:[%s2487_s4 + $0xb0] sm:$0xff] %v1427_v15   ;;  %1456 = vst [vmem:[%s2487_s4 + $0xb8] sm:$0xff] %v1432_v14  }

// kernel: autoencoder_forward.6
= control target key start
LH: loop header
LB: loop body
LE: loop exit
PB: predicated region body
PF: predicated region fallthrough
CT: control target
= control target key end

     0   :  { %v384_v0 = vmov 0.0   ;;  %vm385_vm0 = vmmov 0   ;;  %s470_s2 = inlined_call_operand.vmem [shape: f32[1,128], index: 2, kind: input, shape index: {}]   ;;  %s471_s3 = inlined_call_operand.vmem [shape: f32[1,128], index: 3, kind: input, shape index: {}]   ;;  %s472_s1 = inlined_call_operand.vmem [shape: bf16[128,128], index: 1, kind: input, shape index: {}]   ;;  %s473_s0 = inlined_call_operand.vmem [shape: bf16[72,128], index: 0, kind: input, shape index: {}]   ;;  %s474_s4 = inlined_call_operand.vmem [shape: bf16[72,128], index: 4, kind: output, shape index: {}]  }
   0x1   :  { %317 = vmatprep.subr.bf16.mxu0 %v384_v0  ;;  %v371_v1 = vld [vmem:[%s472_s1] sm:$0xff]   ;;  %353 = vmatprep.subr.bf16.mxu1 %v384_v0  ;;  %v372_v2 = vld [vmem:[%s472_s1 + $0x8] sm:$0xff]   ;;  %v373_v3 = vld [vmem:[%s472_s1 + $0x10] sm:$0xff]  }
   0x2   :  { %333 = vmatprep.mubr.msk.bf16.mxu0 %vm385_vm0, %v384_v0  ;;  %345 = vmatprep.mubr.msk.bf16.mxu1 %vm385_vm0, %v384_v0  ;;  %v374_v4 = vld [vmem:[%s472_s1 + $0x18] sm:$0xff]   ;;  %v375_v5 = vld [vmem:[%s472_s1 + $0x20] sm:$0xff]   ;;  %v376_v6 = vld [vmem:[%s472_s1 + $0x28] sm:$0xff]  }
   0x3   :  { %318 = vmatpush3.bf16.msra.mxu0 %v371_v1  ;;  %361 = vmatpush3.bf16.msra.mxu1 %v371_v1  ;;  %v377_v7 = vld [vmem:[%s472_s1 + $0x30] sm:$0xff]   ;;  %v378_v8 = vld [vmem:[%s472_s1 + $0x38] sm:$0xff]   ;;  %v379_v9 = vld [vmem:[%s473_s0] sm:$0xff]  }
   0x4   :  { %319 = vmatprep.subr.bf16.mxu0 %v384_v0  ;;  %354 = vmatprep.subr.bf16.mxu1 %v384_v0  ;;  %v380_v10 = vld [vmem:[%s473_s0 + $0x18] sm:$0xff]   ;;  %v381_v11 = vld [vmem:[%s473_s0 + $0x8] sm:$0xff]   ;;  %v382_v12 = vld [vmem:[%s473_s0 + $0x20] ss:$0 sps:$4 sm:$0xff]  }
   0x5   :  { %v383_v13 = vld [vmem:[%s473_s0 + $0x10] sm:$0xff]  }
   0x7   :  { %320 = vmatpush3.bf16.msra.mxu0 %v372_v2  ;;  %362 = vmatpush3.bf16.msra.mxu1 %v372_v2 }
   0x8   :  { %321 = vmatprep.subr.bf16.mxu0 %v384_v0  ;;  %355 = vmatprep.subr.bf16.mxu1 %v384_v0 }
   0xb   :  { %322 = vmatpush3.bf16.msra.mxu0 %v373_v3  ;;  %363 = vmatpush3.bf16.msra.mxu1 %v373_v3 }
   0xc   :  { %323 = vmatprep.subr.bf16.mxu0 %v384_v0  ;;  %356 = vmatprep.subr.bf16.mxu1 %v384_v0 }
   0xf   :  { %324 = vmatpush3.bf16.msra.mxu0 %v374_v4  ;;  %364 = vmatpush3.bf16.msra.mxu1 %v374_v4 }
  0x10   :  { %325 = vmatprep.subr.bf16.mxu0 %v384_v0  ;;  %357 = vmatprep.subr.bf16.mxu1 %v384_v0 }
  0x13   :  { %326 = vmatpush3.bf16.msra.mxu0 %v375_v5  ;;  %365 = vmatpush3.bf16.msra.mxu1 %v375_v5 }
  0x14   :  { %327 = vmatprep.subr.bf16.mxu0 %v384_v0  ;;  %358 = vmatprep.subr.bf16.mxu1 %v384_v0 }
  0x17   :  { %328 = vmatpush3.bf16.msra.mxu0 %v376_v6  ;;  %366 = vmatpush3.bf16.msra.mxu1 %v376_v6 }
  0x18   :  { %329 = vmatprep.subr.bf16.mxu0 %v384_v0  ;;  %359 = vmatprep.subr.bf16.mxu1 %v384_v0 }
  0x1b   :  { %330 = vmatpush3.bf16.msra.mxu0 %v377_v7  ;;  %367 = vmatpush3.bf16.msra.mxu1 %v377_v7 }
  0x1c   :  { %331 = vmatprep.subr.bf16.mxu0 %v384_v0  ;;  %360 = vmatprep.subr.bf16.mxu1 %v384_v0 }
  0x1f   :  { %332 = vmatpush3.bf16.msra.mxu0 %v378_v8  ;;  %368 = vmatpush3.bf16.msra.mxu1 %v378_v8 }
  0x22   :  { %334 = vmatmul.mubr.bf16.vlgmr.msra.gmra.mrb[0].mxu0 %v379_v9  ;;  %346 = vmatmul.mubr.bf16.vlgmr.msra.gmra.mrb[0].mxu1 %v380_v10 }
  0x23   :  { %337 = vmatprep.mubr.msk.bf16.mxu0 %vm385_vm0, %v384_v0  ;;  %349 = vmatprep.mubr.msk.bf16.mxu1 %vm385_vm0, %v384_v0 }
  0x2a   :  { %338 = vmatmul.mubr.bf16.gmra.mrb[4].mxu0 %v381_v11  ;;  %350 = vmatmul.mubr.bf16.gmra.mrb[4].mxu1 %v382_v12 }
  0x2b   :  { %341 = vmatprep.mubr.msk.bf16.mxu0 %vm385_vm0, %v384_v0 }
  0x32   :  { %342 = vmatmul.mubr.bf16.gmra.mrb[8].mxu0 %v383_v13 }
  0xf5   :  { %v153_v14 = vpop.f32.mrb[0].mxu0  ;;  %v177_v15 = vpop.f32.mrb[0].mxu1 }
  0xf6   :  { %v335_v16 = vpop.f32.mrb[1].mxu0  ;;  %v197_v17 = vmax.f32 %v177_v15, 0.0  ;;  %v347_v18 = vpop.f32.mrb[1].mxu1  ;;  %v191_v21 = vmax.f32 %v153_v14, 0.0 }
  0xf7   :  { %v156_v19 = vpop.f32.mrb[2].mxu0  ;;  %v180_v20 = vpop.f32.mrb[2].mxu1 }
  0xf8   :  { %v192_v22 = vmax.f32 %v156_v19, 0.0  ;;  %v336_v23 = vpop.f32.mrb[3].mxu0  ;;  %v198_v24 = vmax.f32 %v180_v20, 0.0  ;;  %v348_v25 = vpop.f32.mrb[3].mxu1 }
  0xfa   :  { %v284_v26 = vpack.c.bf16 %v192_v22, %v191_v21  ;;  %v299_v27 = vpack.c.bf16 %v198_v24, %v197_v17 }
  0xfc   :  { %285 = vst [vmem:[%s474_s4] sm:$0xff] %v284_v26   ;;  %303 = vst [vmem:[%s474_s4 + $0x18] sm:$0xff] %v299_v27  }
  0xfd   :  { %v161_v28 = vpop.f32.mrb[4].mxu0  ;;  %v185_v29 = vpop.f32.mrb[4].mxu1 }
  0xfe   :  { %v339_v30 = vpop.f32.mrb[5].mxu0  ;;  %v199_v31 = vmax.f32 %v185_v29, 0.0  ;;  %v351_v32 = vpop.f32.mrb[5].mxu1  ;;  %v193_v35 = vmax.f32 %v161_v28, 0.0 }
  0xff   :  { %v164_v33 = vpop.f32.mrb[6].mxu0  ;;  %v188_v34 = vpop.f32.mrb[6].mxu1 }
 0x100   :  { %v194_v36 = vmax.f32 %v164_v33, 0.0  ;;  %v340_v37 = vpop.f32.mrb[7].mxu0  ;;  %v280_v38 = vpack.c.bf16 %v199_v31, %v199_v31  ;;  %v352_v39 = vpop.f32.mrb[7].mxu1 }
 0x102   :  { %v289_v40 = vpack.c.bf16 %v194_v36, %v193_v35  ;;  %245 = vst [vmem:[%s474_s4 + $0x20] sm:$0xf] %v280_v38 }
 0x104   :  { %301 = vst [vmem:[%s474_s4 + $0x8] sm:$0xff] %v289_v40  }
 0x105   :  { %v169_v41 = vpop.f32.mrb[8].mxu0 }
 0x106   :  { %v343_v42 = vpop.f32.mrb[9].mxu0  ;;  %v195_v44 = vmax.f32 %v169_v41, 0.0 }
 0x107   :  { %v172_v43 = vpop.f32.mrb[10].mxu0 }
 0x108   :  { %v196_v45 = vmax.f32 %v172_v43, 0.0  ;;  %v344_v46 = vpop.f32.mrb[11].mxu0 }
 0x10a   :  { %v294_v47 = vpack.c.bf16 %v196_v45, %v195_v44 }
 0x10c   :  { %302 = vst [vmem:[%s474_s4 + $0x10] sm:$0xff] %v294_v47  }

// kernel: autoencoder_forward.7
= control target key start
LH: loop header
LB: loop body
LE: loop exit
PB: predicated region body
PF: predicated region fallthrough
CT: control target
= control target key end

     0   :  { %v1792_v35 = vmov 0.0   ;;  %vm1793_vm0 = vmmov 0   ;;  %s2308_s1 = inlined_call_operand.vmem [shape: bf16[640,128], index: 1, kind: input, shape index: {}]   ;;  %s2309_s0 = inlined_call_operand.vmem [shape: bf16[8,640], index: 0, kind: input, shape index: {}]   ;;  %s2310_s2 = inlined_call_operand.vmem [shape: f32[1,128], index: 2, kind: input, shape index: {}, may-alias: {2,4,6,8,10,12}]   ;;  %s2311_s5 = inlined_call_operand.vmem [shape: bf16[128,128], index: 5, kind: input, shape index: {}]   ;;  %s2312_s3 = inlined_call_operand.vmem [shape: f32[1,128], index: 3, kind: input, shape index: {}, may-alias: {3,11}]   ;;  %s2313_s4 = inlined_call_operand.vmem [shape: f32[1,128], index: 4, kind: input, shape index: {}, may-alias: {2,4,6,8,10,12}]   ;;  %s2314_s6 = inlined_call_operand.vmem [shape: f32[1,128], index: 6, kind: input, shape index: {}, may-alias: {2,4,6,8,10,12}]   ;;  %s2315_s9 = inlined_call_operand.vmem [shape: bf16[128,128], index: 9, kind: input, shape index: {}]   ;;  %s2316_s7 = inlined_call_operand.vmem [shape: f32[1,128], index: 7, kind: input, shape index: {}]   ;;  %s2317_s8 = inlined_call_operand.vmem [shape: f32[1,128], index: 8, kind: input, shape index: {}, may-alias: {2,4,6,8,10,12}]   ;;  %s2318_s10 = inlined_call_operand.vmem [shape: f32[1,128], index: 10, kind: input, shape index: {}, may-alias: {2,4,6,8,10,12}]   ;;  %s2319_s13 = inlined_call_operand.vmem [shape: bf16[128,640], index: 13, kind: input, shape index: {}]   ;;  %s2320_s11 = inlined_call_operand.vmem [shape: f32[1,128], index: 11, kind: input, shape index: {}, may-alias: {3,11}]   ;;  %s2321_s12 = inlined_call_operand.vmem [shape: f32[1,128], index: 12, kind: input, shape index: {}, may-alias: {2,4,6,8,10,12}]   ;;  %s2322_s14 = inlined_call_operand.vmem [shape: f32[1,640], index: 14, kind: input, shape index: {}, may-alias: {14,16}]   ;;  %s2323_s15 = inlined_call_operand.vmem [shape: f32[1,640], index: 15, kind: input, shape index: {}]   ;;  %s2324_s16 = inlined_call_operand.vmem [shape: f32[1,640], index: 16, kind: input, shape index: {}, may-alias: {14,16}]   ;;  %s2325_s17 = inlined_call_operand.vmem [shape: bf16[8,640], index: 17, kind: output, shape index: {}]  }
   0x1   :  { %2328 = sst [smem:[#allocation2_spill]] %s2308_s1  ;;  %v1388_v49 = vld [vmem:[%s2310_s2] ss:$0 sm:$0xff] }
   0x2   :  { %2329 = sst [smem:[#allocation3_spill]] %s2309_s0  ;;  %s2330_s26 = sld [smem:[#allocation2_spill]] }
   0x3   :  { %s2331_s19 = sld [smem:[#allocation3_spill]] }
   0x8   :  { %v1667_v0 = vld [vmem:[%s2330_s26 + $0x40] sm:$0xff]   ;;  %v1671_v4 = vld [vmem:[%s2330_s26 + $0x48] sm:$0xff]   ;;  %v1675_v8 = vld [vmem:[%s2330_s26 + $0x50] sm:$0xff]  }
   0x9   :  { %v1668_v1 = vld [vmem:[%s2330_s26] sm:$0xff]   ;;  %1504 = vmatprep.subr.bf16.mxu0 %v1667_v0  ;;  %v1672_v5 = vld [vmem:[%s2330_s26 + $0x8] sm:$0xff]   ;;  %v1676_v9 = vld [vmem:[%s2330_s26 + $0x10] sm:$0xff]  }
   0xa   :  { %v1669_v2 = vld [vmem:[%s2330_s26 + $0xc0] sm:$0xff]   ;;  %1505 = vmatpush3.bf16.msra.mxu0 %v1668_v1  ;;  %v1673_v6 = vld [vmem:[%s2330_s26 + $0xc8] sm:$0xff]   ;;  %v1677_v10 = vld [vmem:[%s2330_s26 + $0xd0] sm:$0xff]  }
   0xb   :  { %v1670_v3 = vld [vmem:[%s2330_s26 + $0x80] sm:$0xff]   ;;  %1526 = vmatprep.subr.bf16.mxu1 %v1669_v2  ;;  %1506 = vmatprep.subr.bf16.mxu0 %v1671_v4  ;;  %v1674_v7 = vld [vmem:[%s2330_s26 + $0x88] sm:$0xff]   ;;  %v1678_v11 = vld [vmem:[%s2330_s26 + $0x90] sm:$0xff]   ;;  %v528_v4 = vlaneseq }
   0xc   :  { %1527 = vmatpush3.bf16.msra.mxu1 %v1670_v3  ;;  %v1679_v12 = vld [vmem:[%s2330_s26 + $0x58] sm:$0xff]   ;;  %v1683_v16 = vld [vmem:[%s2330_s26 + $0x60] sm:$0xff]   ;;  %v1687_v20 = vld [vmem:[%s2330_s26 + $0x68] sm:$0xff]  }
   0xd   :  { %1528 = vmatprep.subr.bf16.mxu1 %v1673_v6  ;;  %v1680_v13 = vld [vmem:[%s2330_s26 + $0x18] sm:$0xff]   ;;  %v1684_v17 = vld [vmem:[%s2330_s26 + $0x20] sm:$0xff]   ;;  %v1688_v21 = vld [vmem:[%s2330_s26 + $0x28] sm:$0xff]  }
   0xe   :  { %1507 = vmatpush3.bf16.msra.mxu0 %v1672_v5  ;;  %v1681_v14 = vld [vmem:[%s2330_s26 + $0xd8] sm:$0xff]   ;;  %v1685_v18 = vld [vmem:[%s2330_s26 + $0xe0] sm:$0xff]   ;;  %v1689_v22 = vld [vmem:[%s2330_s26 + $0xe8] sm:$0xff]   ;;  %v2042_v5 = vand.u32 127, %v528_v4 }
   0xf   :  { %1508 = vmatprep.subr.bf16.mxu0 %v1675_v8  ;;  %v1682_v15 = vld [vmem:[%s2330_s26 + $0x98] sm:$0xff]   ;;  %v1686_v19 = vld [vmem:[%s2330_s26 + $0xa0] sm:$0xff]   ;;  %v1690_v23 = vld [vmem:[%s2330_s26 + $0xa8] sm:$0xff]  }
  0x10   :  { %1529 = vmatpush3.bf16.msra.mxu1 %v1674_v7  ;;  %v1691_v24 = vld [vmem:[%s2330_s26 + $0x70] sm:$0xff]   ;;  %v1695_v28 = vld [vmem:[%s2330_s26 + $0x78] sm:$0xff]   ;;  %v57_v31 = vld [vmem:[%s2331_s19] sm:$0xff]  ;;  %vm530_vm1 = vcmp.lt.s32.totalorder %v2042_v5, 64  ;;  %vm672_vm2 = vcmp.lt.s32.totalorder %v2042_v5, 32 }
  0x11   :  { %1530 = vmatprep.subr.bf16.mxu1 %v1677_v10  ;;  %v1692_v25 = vld [vmem:[%s2330_s26 + $0x30] sm:$0xff]   ;;  %v1696_v29 = vld [vmem:[%s2330_s26 + $0x38] sm:$0xff]   ;;  %v1389_v32 = vcombine.low %v57_v31, %v57_v31  ;;  %v1390_v33 = vcombine.high %v57_v31, %v57_v31  ;;  %v58_v36 = vld [vmem:[%s2331_s19 + $0x8] sm:$0xff] }
  0x12   :  { %1509 = vmatpush3.bf16.msra.mxu0 %v1676_v9  ;;  %v1693_v26 = vld [vmem:[%s2330_s26 + $0xf0] sm:$0xff]   ;;  %v1697_v30 = vld [vmem:[%s2330_s26 + $0xf8] sm:$0xff]   ;;  %v1391_v37 = vcombine.low %v58_v36, %v58_v36  ;;  %v1392_v38 = vcombine.high %v58_v36, %v58_v36  ;;  %v1704_v39 = vld [vmem:[%s2330_s26 + $0x100] sm:$0xff]  }
  0x13   :  { %1510 = vmatprep.subr.bf16.mxu0 %v1679_v12  ;;  %v1694_v27 = vld [vmem:[%s2330_s26 + $0xb0] sm:$0xff]   ;;  %v1701_v34 = vld [vmem:[%s2330_s26 + $0xb8] sm:$0xff]   ;;  %437 = vmatprep.mubr.bf16.mxu0 %v1390_v33  ;;  %v1705_v40 = vld [vmem:[%s2330_s26 + $0x108] sm:$0xff]  }
  0x14   :  { %1531 = vmatpush3.bf16.msra.mxu1 %v1678_v11  ;;  %477 = vmatprep.mubr.bf16.mxu1 %v1392_v38  ;;  %v1706_v41 = vld [vmem:[%s2330_s26 + $0x110] sm:$0xff]   ;;  %v1707_v42 = vld [vmem:[%s2330_s26 + $0x118] sm:$0xff]   ;;  %v1708_v43 = vld [vmem:[%s2330_s26 + $0x120] sm:$0xff]  }
  0x15   :  { %1532 = vmatprep.subr.bf16.mxu1 %v1681_v14  ;;  %v1709_v44 = vld [vmem:[%s2330_s26 + $0x128] sm:$0xff]   ;;  %v1710_v45 = vld [vmem:[%s2330_s26 + $0x130] sm:$0xff]   ;;  %v1711_v46 = vld [vmem:[%s2330_s26 + $0x138] sm:$0xff]  }
  0x16   :  { %1511 = vmatpush3.bf16.msra.mxu0 %v1680_v13  ;;  %v1700_v47 = vld [vmem:[%s2331_s19 + $0x10] ss:$0 sps:$4 sm:$0xff]   ;;  %v1712_v2 = vld [vmem:[%s2311_s5] sm:$0xff]   ;;  %v1713_v3 = vld [vmem:[%s2311_s5 + $0x8] sm:$0xff]  }
  0x17   :  { %1512 = vmatprep.subr.bf16.mxu0 %v1683_v16  ;;  %v1714_v11 = vld [vmem:[%s2311_s5 + $0x10] sm:$0xff]   ;;  %v1715_v12 = vld [vmem:[%s2311_s5 + $0x18] sm:$0xff]   ;;  %v1716_v13 = vld [vmem:[%s2311_s5 + $0x20] sm:$0xff]  }
  0x18   :  { %1533 = vmatpush3.bf16.msra.mxu1 %v1682_v15  ;;  %v1717_v14 = vld [vmem:[%s2311_s5 + $0x28] sm:$0xff]   ;;  %v1718_v15 = vld [vmem:[%s2311_s5 + $0x30] sm:$0xff]   ;;  %v1719_v16 = vld [vmem:[%s2311_s5 + $0x38] sm:$0xff]  }
  0x19   :  { %1534 = vmatprep.subr.bf16.mxu1 %v1685_v18  ;;  %v1721_v36 = vld [vmem:[%s2315_s9 + $0x8] sm:$0xff]  }
  0x1a   :  { %1513 = vmatpush3.bf16.msra.mxu0 %v1684_v17 }
  0x1b   :  { %1514 = vmatprep.subr.bf16.mxu0 %v1687_v20 }
  0x1c   :  { %1535 = vmatpush3.bf16.msra.mxu1 %v1686_v19 }
  0x1d   :  { %1536 = vmatprep.subr.bf16.mxu1 %v1689_v22 }
  0x1e   :  { %1515 = vmatpush3.bf16.msra.mxu0 %v1688_v21  ;;  %v1434_v21 = vld [vmem:[%s2312_s3] ss:$0 sm:$0xff] }
  0x1f   :  { %1516 = vmatprep.subr.bf16.mxu0 %v1691_v24 }
  0x20   :  { %1537 = vmatpush3.bf16.msra.mxu1 %v1690_v23  ;;  %v1435_v23 = vld [vmem:[%s2313_s4] ss:$0 sm:$0xff] }
  0x21   :  { %1538 = vmatprep.subr.bf16.mxu1 %v1693_v26 }
  0x22   :  { %1517 = vmatpush3.bf16.msra.mxu0 %v1692_v25 }
  0x23   :  { %1518 = vmatprep.subr.bf16.mxu0 %v1695_v28  ;;  %v1436_v28 = vld [vmem:[%s2314_s6] ss:$0 sm:$0xff] }
  0x24   :  { %1539 = vmatpush3.bf16.msra.mxu1 %v1694_v27 }
  0x25   :  { %1540 = vmatprep.subr.bf16.mxu1 %v1697_v30 }
  0x26   :  { %1519 = vmatpush3.bf16.msra.mxu0 %v1696_v29 }
  0x27   :  { %1584 = vmatprep.subr.bf16.mxu0 %v1792_v35 }
  0x28   :  { %1541 = vmatpush3.bf16.msra.mxu1 %v1701_v34  ;;  %v1720_v34 = vld [vmem:[%s2315_s9] sm:$0xff]  }
  0x29   :  { %438 = vmatmul.mubr.bf16.vlgmr.msra.gmra.mrb[0].mxu0 %v1389_v32  ;;  %1604 = vmatprep.subr.bf16.mxu1 %v1792_v35 }
  0x2a   :  { %1585 = vmatpush3.bf16.msra.mxu0 %v1704_v39  ;;  %1600 = vmatprep.mubr.msk.bf16.mxu0 %vm1793_vm0, %v1792_v35 }
  0x2b   :  { %478 = vmatmul.mubr.bf16.vlgmr.msra.gmra.mrb[0].mxu1 %v1391_v37  ;;  %1586 = vmatprep.subr.bf16.mxu0 %v1792_v35 }
  0x2c   :  { %1620 = vmatprep.mubr.msk.bf16.mxu1 %vm1793_vm0, %v1792_v35  ;;  %1605 = vmatpush3.bf16.msra.mxu1 %v1712_v2  ;;  %v1730_v2 = vld [vmem:[%s2319_s13 + $0x4] ss:$20 sps:$4 sm:$0xff]  }
  0x2d   :  { %1606 = vmatprep.subr.bf16.mxu1 %v1792_v35 }
  0x2e   :  { %1587 = vmatpush3.bf16.msra.mxu0 %v1705_v40 }
  0x2f   :  { %1588 = vmatprep.subr.bf16.mxu0 %v1792_v35 }
  0x30   :  { %1607 = vmatpush3.bf16.msra.mxu1 %v1713_v3  ;;  %v1731_v3 = vld [vmem:[%s2319_s13 + $0x8] ss:$20 sps:$4 sm:$0xff]  }
  0x31   :  { %1608 = vmatprep.subr.bf16.mxu1 %v1792_v35 }
  0x32   :  { %1589 = vmatpush3.bf16.msra.mxu0 %v1706_v41 }
  0x33   :  { %1590 = vmatprep.subr.bf16.mxu0 %v1792_v35 }
  0x34   :  { %1609 = vmatpush3.bf16.msra.mxu1 %v1714_v11 }
  0x35   :  { %1610 = vmatprep.subr.bf16.mxu1 %v1792_v35 }
  0x36   :  { %1591 = vmatpush3.bf16.msra.mxu0 %v1707_v42  ;;  %v1722_v42 = vld [vmem:[%s2315_s9 + $0x10] sm:$0xff]  }
  0x37   :  { %1592 = vmatprep.subr.bf16.mxu0 %v1792_v35 }
  0x38   :  { %1611 = vmatpush3.bf16.msra.mxu1 %v1715_v12 }
  0x39   :  { %1612 = vmatprep.subr.bf16.mxu1 %v1792_v35 }
  0x3a   :  { %1593 = vmatpush3.bf16.msra.mxu0 %v1708_v43  ;;  %v1723_v43 = vld [vmem:[%s2315_s9 + $0x18] sm:$0xff]  }
  0x3b   :  { %1594 = vmatprep.subr.bf16.mxu0 %v1792_v35 }
  0x3c   :  { %1613 = vmatpush3.bf16.msra.mxu1 %v1716_v13 }
  0x3d   :  { %1614 = vmatprep.subr.bf16.mxu1 %v1792_v35 }
  0x3e   :  { %1595 = vmatpush3.bf16.msra.mxu0 %v1709_v44  ;;  %v1724_v44 = vld [vmem:[%s2315_s9 + $0x20] sm:$0xff]  }
  0x3f   :  { %1596 = vmatprep.subr.bf16.mxu0 %v1792_v35 }
  0x40   :  { %1615 = vmatpush3.bf16.msra.mxu1 %v1717_v14 }
  0x41   :  { %1616 = vmatprep.subr.bf16.mxu1 %v1792_v35 }
  0x42   :  { %1597 = vmatpush3.bf16.msra.mxu0 %v1710_v45  ;;  %v1725_v45 = vld [vmem:[%s2315_s9 + $0x28] sm:$0xff]  }
  0x43   :  { %1598 = vmatprep.subr.bf16.mxu0 %v1792_v35 }
  0x44   :  { %1617 = vmatpush3.bf16.msra.mxu1 %v1718_v15 }
  0x45   :  { %1618 = vmatprep.subr.bf16.mxu1 %v1792_v35 }
  0x46   :  { %1599 = vmatpush3.bf16.msra.mxu0 %v1711_v46  ;;  %v1726_v46 = vld [vmem:[%s2315_s9 + $0x30] sm:$0xff]  }
  0x47   :  { %1624 = vmatprep.subr.bf16.mxu0 %v1792_v35 }
  0x48   :  { %1619 = vmatpush3.bf16.msra.mxu1 %v1719_v16  ;;  %v1742_v16 = vld [vmem:[%s2319_s13 + $0x54] ss:$20 sps:$4 sm:$0xff]  }
  0x49   :  { %1601 = vmatmul.mubr.bf16.vlgmr.msra.gmra.mrb[4].mxu0 %v1700_v47  ;;  %v1727_v47 = vld [vmem:[%s2315_s9 + $0x38] sm:$0xff]   ;;  %1124 = vmatprep.subr.bf16.mxu1 %v1730_v2 }
  0x4a   :  { %1640 = vmatprep.mubr.msk.bf16.mxu0 %vm1793_vm0, %v1792_v35  ;;  %1625 = vmatpush3.bf16.msra.mxu0 %v1720_v34  ;;  %v1794_v34 = vmov 0  }
  0x4b   :  { %1626 = vmatprep.subr.bf16.mxu0 %v1792_v35 }
  0x4e   :  { %1627 = vmatpush3.bf16.msra.mxu0 %v1721_v36  ;;  %v1764_v36 = vld [vmem:[%s2319_s13 + $0xf0] ss:$20 sps:$4 sm:$0xff]  }
  0x4f   :  { %1628 = vmatprep.subr.bf16.mxu0 %v1792_v35 }
  0x52   :  { %1629 = vmatpush3.bf16.msra.mxu0 %v1722_v42 }
  0x53   :  { %1630 = vmatprep.subr.bf16.mxu0 %v1792_v35 }
  0x56   :  { %1631 = vmatpush3.bf16.msra.mxu0 %v1723_v43 }
  0x57   :  { %1632 = vmatprep.subr.bf16.mxu0 %v1792_v35 }
  0x5a   :  { %1633 = vmatpush3.bf16.msra.mxu0 %v1724_v44 }
  0x5b   :  { %1634 = vmatprep.subr.bf16.mxu0 %v1792_v35 }
  0x5e   :  { %1635 = vmatpush3.bf16.msra.mxu0 %v1725_v45 }
  0x5f   :  { %1636 = vmatprep.subr.bf16.mxu0 %v1792_v35 }
  0x62   :  { %1637 = vmatpush3.bf16.msra.mxu0 %v1726_v46  ;;  %v1456_v46 = vld [vmem:[%s2320_s11] ss:$0 sm:$0xff] }
  0x63   :  { %1638 = vmatprep.subr.bf16.mxu0 %v1792_v35 }
  0x66   :  { %1639 = vmatpush3.bf16.msra.mxu0 %v1727_v47 }
  0xfc   :  { %v1520_v48 = vpop.f32.mrb[0].mxu0 }
  0xfd   :  { %v1521_v50 = vpop.f32.mrb[1].mxu0 }
  0xfe   :  { %v1522_v51 = vadd.f32 %v1521_v50, %v1520_v48  ;;  %v1523_v52 = vpop.f32.mrb[2].mxu0  ;;  %v1542_v53 = vpop.f32.mrb[0].mxu1 }
  0xff   :  { %v1524_v54 = vpop.f32.mrb[3].mxu0  ;;  %v1543_v55 = vpop.f32.mrb[1].mxu1  ;;  %v1445_v52 = vld [vmem:[%s2316_s7] ss:$0 sm:$0xff] }
 0x100   :  { %v440_v56 = vadd.f32 %v1522_v51, %v1388_v49  ;;  %v1544_v57 = vadd.f32 %v1543_v55, %v1542_v53  ;;  %v1545_v58 = vpop.f32.mrb[2].mxu1  ;;  %v1446_v54 = vld [vmem:[%s2317_s8] ss:$0 sm:$0xff] }
 0x101   :  { %v1546_v59 = vpop.f32.mrb[3].mxu1 }
 0x102   :  { %v480_v60 = vadd.f32 %v1544_v57, %v440_v56  ;;  %v1447_v59 = vld [vmem:[%s2318_s10] ss:$0 sm:$0xff] }
 0x11c   :  { %v519_v61 = vpop.f32.mrb[4].mxu0 }
 0x11d   :  { %v520_v62 = vadd.f32 %v519_v61, %v480_v60  ;;  %v1602_v63 = vpop.f32.mrb[5].mxu0 }
 0x11e   :  { %v522_v0 = vpop.f32.mrb[6].mxu0 }
 0x11f   :  { %v1603_v1 = vpop.f32.mrb[7].mxu0  ;;  %525 = vadd.xlane.f32.xlu0 %v520_v62 }
 0x120   :  { %v1728_v1 = vld [vmem:[%s2319_s13] ss:$20 sps:$4 sm:$0xff]  }
 0x1ac   :  { %v526_v6 = vpop.xlane.xlu0 %525 }
 0x1ad   :  { %v527_v7 = vmul.f32 0.015625, %v526_v6  ;;  %v1733_v6 = vld [vmem:[%s2319_s13 + $0xc] ss:$20 sps:$4 sm:$0xff]  }
 0x1ae   :  { %1165 = vmatprep.subr.bf16.mxu0 %v1733_v6 }
 0x1af   :  { %v531_v8 = vsub.f32 %v520_v62, %v527_v7  ;;  %v1734_v7 = vld [vmem:[%s2319_s13 + $0x28] ss:$20 sps:$4 sm:$0xff]  }
 0x1b1   :  { %v532_v9 = vsel %vm530_vm1, %v531_v8, 0.0  ;;  %v1736_v8 = vld [vmem:[%s2319_s13 + $0x2c] ss:$20 sps:$4 sm:$0xff]  }
 0x1b2   :  { %v533_v10 = vmul.f32 %v532_v9, %v532_v9 }
 0x1b4   :  { %534 = vadd.xlane.f32.xlu0 %v533_v10  ;;  %v1739_v10 = vld [vmem:[%s2319_s13 + $0x34] ss:$20 sps:$4 sm:$0xff]  }
 0x241   :  { %v535_v17 = vpop.xlane.xlu0 %534 }
 0x242   :  { %v536_v18 = vmul.f32 0.015625, %v535_v17  ;;  %v1740_v17 = vld [vmem:[%s2319_s13 + $0x50] ss:$20 sps:$4 sm:$0xff]  }
 0x244   :  { %v537_v19 = vadd.f32 1e-05, %v536_v18  ;;  %v1745_v18 = vld [vmem:[%s2319_s13 + $0x5c] ss:$20 sps:$4 sm:$0xff]  }
 0x246   :  { %1784 = vrsqrt.f32 %v537_v19  ;;  %v1743_v19 = vld [vmem:[%s2319_s13 + $0x58] ss:$20 sps:$4 sm:$0xff]  }
 0x250   :  { %v1785_v20 = vpop.eup %1784 }
 0x251   :  { %v539_v22 = vmul.f32 %v1785_v20, %v532_v9  ;;  %v1737_v9 = vld [vmem:[%s2319_s13 + $0x30] ss:$20 sps:$4 sm:$0xff]  }
 0x252   :  { %v1748_v20 = vld [vmem:[%s2319_s13 + $0x7c] ss:$20 sps:$4 sm:$0xff]  }
 0x253   :  { %v547_v24 = vmul.f32 %v1434_v21, %v539_v22  ;;  %v1746_v21 = vld [vmem:[%s2319_s13 + $0x78] ss:$20 sps:$4 sm:$0xff]  }
 0x254   :  { %v1751_v22 = vld [vmem:[%s2319_s13 + $0x84] ss:$20 sps:$4 sm:$0xff]  }
 0x255   :  { %v555_v25 = vadd.f32 %v1435_v23, %v547_v24  ;;  %v1749_v23 = vld [vmem:[%s2319_s13 + $0x80] ss:$20 sps:$4 sm:$0xff]   ;;  %v1754_v24 = vld [vmem:[%s2319_s13 + $0xa4] ss:$20 sps:$4 sm:$0xff]  }
 0x257   :  { %v556_v26 = vmax.f32 %v555_v25, 0.0  ;;  %v1752_v25 = vld [vmem:[%s2319_s13 + $0xa0] ss:$20 sps:$4 sm:$0xff]  }
 0x259   :  { %v557_v27 = vpack.c.bf16 %v556_v26, %v556_v26  ;;  %v1757_v26 = vld [vmem:[%s2319_s13 + $0xac] ss:$20 sps:$4 sm:$0xff]  }
 0x25b   :  { %1621 = vmatmul.mubr.bf16.vlgmr.msra.gmra.mrb[4].mxu1 %v557_v27  ;;  %v1755_v27 = vld [vmem:[%s2319_s13 + $0xa8] ss:$20 sps:$4 sm:$0xff]  }
 0x25c   :  { %1125 = vmatpush1.bf16.msra.mxu1 %v1728_v1  ;;  %1156 = vmatprep.mubr.bf16.mxu1 %v1794_v34 }
 0x25d   :  { %1126 = vmatprep.subr.bf16.mxu1 %v1736_v8 }
 0x260   :  { %1127 = vmatpush1.bf16.msra.mxu1 %v1734_v7 }
 0x261   :  { %1128 = vmatprep.subr.bf16.mxu1 %v1742_v16 }
 0x264   :  { %1129 = vmatpush1.bf16.msra.mxu1 %v1740_v17 }
 0x265   :  { %1130 = vmatprep.subr.bf16.mxu1 %v1748_v20 }
 0x268   :  { %1131 = vmatpush1.bf16.msra.mxu1 %v1746_v21 }
 0x269   :  { %1132 = vmatprep.subr.bf16.mxu1 %v1754_v24 }
 0x26c   :  { %1133 = vmatpush1.bf16.msra.mxu1 %v1752_v25 }
 0x32e   :  { %v663_v29 = vpop.f32.mrb[4].mxu1 }
 0x32f   :  { %v664_v30 = vadd.f32 %v1436_v28, %v663_v29  ;;  %v1622_v31 = vpop.f32.mrb[5].mxu1  ;;  %v1760_v28 = vld [vmem:[%s2319_s13 + $0xcc] ss:$20 sps:$4 sm:$0xff]   ;;  %v1763_v29 = vld [vmem:[%s2319_s13 + $0xd4] ss:$20 sps:$4 sm:$0xff]  }
 0x330   :  { %v666_v32 = vpop.f32.mrb[6].mxu1  ;;  %1134 = vmatprep.subr.bf16.mxu1 %v1760_v28  ;;  %v1761_v31 = vld [vmem:[%s2319_s13 + $0xd0] ss:$20 sps:$4 sm:$0xff]  }
 0x331   :  { %669 = vadd.xlane.f32.xlu1 %v664_v30  ;;  %v1623_v33 = vpop.f32.mrb[7].mxu1  ;;  %v1766_v32 = vld [vmem:[%s2319_s13 + $0xf4] ss:$20 sps:$4 sm:$0xff]  }
 0x332   :  { %v1769_v33 = vld [vmem:[%s2319_s13 + $0xfc] ss:$20 sps:$4 sm:$0xff]  }
 0x3be   :  { %v670_v37 = vpop.xlane.xlu1 %669 }
 0x3bf   :  { %v671_v38 = vmul.f32 0.03125, %v670_v37  ;;  %v1767_v37 = vld [vmem:[%s2319_s13 + $0xf8] ss:$20 sps:$4 sm:$0xff]  }
 0x3c1   :  { %v673_v39 = vsub.f32 %v664_v30, %v671_v38  ;;  %v1758_v30 = vld [vmem:[%s2319_s13 + $0xc8] ss:$20 sps:$4 sm:$0xff]  }
 0x3c2   :  { %1135 = vmatpush1.bf16.msra.mxu1 %v1758_v30  ;;  %v1772_v38 = vld [vmem:[%s2319_s13 + $0x11c] ss:$20 sps:$4 sm:$0xff]  }
 0x3c3   :  { %v674_v40 = vsel %vm672_vm2, %v673_v39, 0.0  ;;  %1136 = vmatprep.subr.bf16.mxu1 %v1766_v32  ;;  %v1775_v39 = vld [vmem:[%s2319_s13 + $0x124] ss:$20 sps:$4 sm:$0xff]   ;;  %v1256_v32 = vadd.s32 512, %v2042_v5 }
 0x3c4   :  { %v675_v41 = vmul.f32 %v674_v40, %v674_v40 }
 0x3c5   :  { %vm1261_vm3 = vcmp.lt.s32.totalorder %v1256_v32, 576 }
 0x3c6   :  { %676 = vadd.xlane.f32.xlu1 %v675_v41  ;;  %1137 = vmatpush1.bf16.msra.mxu1 %v1764_v36  ;;  %v1773_v41 = vld [vmem:[%s2319_s13 + $0x120] ss:$20 sps:$4 sm:$0xff]  }
 0x3c7   :  { %1138 = vmatprep.subr.bf16.mxu1 %v1772_v38 }
 0x453   :  { %v677_v48 = vpop.xlane.xlu1 %676 }
 0x454   :  { %v678_v49 = vmul.f32 0.03125, %v677_v48  ;;  %v1457_v48 = vld [vmem:[%s2321_s12] ss:$0 sm:$0xff] }
 0x456   :  { %v679_v50 = vadd.f32 1e-05, %v678_v49 }
 0x458   :  { %1786 = vrsqrt.f32 %v679_v50 }
 0x462   :  { %v1787_v51 = vpop.eup %1786 }
 0x463   :  { %v681_v53 = vmul.f32 %v1787_v51, %v674_v40  ;;  %v1770_v40 = vld [vmem:[%s2319_s13 + $0x118] ss:$20 sps:$4 sm:$0xff]  }
 0x464   :  { %1139 = vmatpush1.bf16.msra.mxu1 %v1770_v40 }
 0x465   :  { %v689_v55 = vmul.f32 %v1445_v52, %v681_v53  ;;  %1644 = vmatprep.subr.bf16.mxu1 %v1792_v35  ;;  %v1776_v52 = vld [vmem:[%s2319_s13 + $0x10] ss:$20 sps:$4 sm:$0xff]  }
 0x467   :  { %v697_v56 = vadd.f32 %v1446_v54, %v689_v55  ;;  %v1777_v54 = vld [vmem:[%s2319_s13 + $0x38] ss:$20 sps:$4 sm:$0xff]   ;;  %v1778_v55 = vld [vmem:[%s2319_s13 + $0x60] ss:$20 sps:$4 sm:$0xff]  }
 0x469   :  { %v698_v57 = vmax.f32 %v697_v56, 0.0  ;;  %v1779_v56 = vld [vmem:[%s2319_s13 + $0x88] ss:$20 sps:$4 sm:$0xff]  }
 0x46b   :  { %v699_v58 = vpack.c.bf16 %v698_v57, %v698_v57  ;;  %v1780_v57 = vld [vmem:[%s2319_s13 + $0xb0] ss:$20 sps:$4 sm:$0xff]  }
 0x46d   :  { %1641 = vmatmul.mubr.bf16.vlgmr.msra.gmra.mrb[8].mxu0 %v699_v58  ;;  %v1781_v58 = vld [vmem:[%s2319_s13 + $0xd8] ss:$20 sps:$4 sm:$0xff]  }
 0x46e   :  { %1166 = vmatpush1.bf16.msra.mxu0 %v1731_v3  ;;  %1197 = vmatprep.mubr.bf16.mxu0 %v1794_v34 }
 0x46f   :  { %1167 = vmatprep.subr.bf16.mxu0 %v1739_v10 }
 0x472   :  { %1168 = vmatpush1.bf16.msra.mxu0 %v1737_v9 }
 0x473   :  { %1169 = vmatprep.subr.bf16.mxu0 %v1745_v18 }
 0x476   :  { %1170 = vmatpush1.bf16.msra.mxu0 %v1743_v19 }
 0x477   :  { %1171 = vmatprep.subr.bf16.mxu0 %v1751_v22 }
 0x47a   :  { %1172 = vmatpush1.bf16.msra.mxu0 %v1749_v23 }
 0x47b   :  { %1173 = vmatprep.subr.bf16.mxu0 %v1757_v26 }
 0x47e   :  { %1174 = vmatpush1.bf16.msra.mxu0 %v1755_v27 }
 0x47f   :  { %1175 = vmatprep.subr.bf16.mxu0 %v1763_v29 }
 0x482   :  { %1176 = vmatpush1.bf16.msra.mxu0 %v1761_v31 }
 0x483   :  { %1177 = vmatprep.subr.bf16.mxu0 %v1769_v33 }
 0x486   :  { %1178 = vmatpush1.bf16.msra.mxu0 %v1767_v37 }
 0x487   :  { %1179 = vmatprep.subr.bf16.mxu0 %v1775_v39 }
 0x48a   :  { %1180 = vmatpush1.bf16.msra.mxu0 %v1773_v41 }
 0x540   :  { %v805_v60 = vpop.f32.mrb[8].mxu0 }
 0x541   :  { %v806_v61 = vadd.f32 %v1447_v59, %v805_v60  ;;  %v1642_v62 = vpop.f32.mrb[9].mxu0  ;;  %v1782_v59 = vld [vmem:[%s2319_s13 + $0x100] ss:$20 sps:$4 sm:$0xff]   ;;  %v1783_v60 = vld [vmem:[%s2319_s13 + $0x128] ss:$20 sps:$4 sm:$0xff]  }
 0x542   :  { %v808_v63 = vpop.f32.mrb[10].mxu0 }
 0x543   :  { %811 = vadd.xlane.f32.xlu0 %v806_v61  ;;  %v1643_v0 = vpop.f32.mrb[11].mxu0  ;;  %v889_v63 = vld [vmem:[%s2322_s14] sm:$0x1f] }
 0x5d0   :  { %v812_v11 = vpop.xlane.xlu0 %811 }
 0x5d1   :  { %v813_v12 = vmul.f32 0.015625, %v812_v11 }
 0x5d3   :  { %v814_v13 = vsub.f32 %v806_v61, %v813_v12  ;;  %v892_v61 = vshrl.u32 %v528_v4, 7 }
 0x5d5   :  { %v2146_v14 = vsel %vm530_vm1, %v814_v13, 0.0  ;;  %v2264_v62 = vsub.s32 2, %v892_v61  ;;  %v2269_v0 = vsub.s32 1, %v892_v61  ;;  %v2271_v1 = vsub.s32 3, %v892_v61 }
 0x5d6   :  { %v816_v15 = vmul.f32 %v2146_v14, %v2146_v14  ;;  %v2276_v16 = vsub.s32 0, %v892_v61  ;;  %v2279_v20 = vsub.s32 4, %v892_v61 }
 0x5d7   :  { %v902_v2 = vrot.slane %v889_v63, %v2264_v62  ;;  %v898_v3 = vrot.slane %v889_v63, %v2269_v0 }
 0x5d8   :  { %817 = vadd.xlane.f32.xlu1 %v816_v15  ;;  %v894_v17 = vrot.slane %v889_v63, %v2276_v16  ;;  %v910_v22 = vrot.slane %v889_v63, %v2279_v20 }
 0x665   :  { %v818_v42 = vpop.xlane.xlu1 %817 }
 0x666   :  { %v819_v43 = vmul.f32 0.015625, %v818_v42 }
 0x668   :  { %v820_v44 = vadd.f32 1e-05, %v819_v43 }
 0x66a   :  { %1788 = vrsqrt.f32 %v820_v44 }
 0x674   :  { %v1789_v45 = vpop.eup %1788 }
 0x675   :  { %v822_v47 = vmul.f32 %v1789_v45, %v2146_v14 }
 0x677   :  { %v830_v49 = vmul.f32 %v1456_v46, %v822_v47 }
 0x679   :  { %v838_v50 = vadd.f32 %v1457_v48, %v830_v49 }
 0x67b   :  { %v839_v51 = vmax.f32 %v838_v50, 0.0 }
 0x67d   :  { %v840_v53 = vpack.c.bf16 %v839_v51, %v839_v51  ;;  %v1291_v51 = vld [vmem:[%s2323_s15] sm:$0x1f] }
 0x67f   :  { %1157 = vmatmul.mubr.bf16.vlgmr.msra.gmra.mrb[8].mxu1 %v840_v53  ;;  %1198 = vmatmul.mubr.bf16.vlgmr.msra.gmra.mrb[12].mxu0 %v840_v53 }
 0x680   :  { %1645 = vmatpush3.bf16.msra.mxu1 %v1776_v52  ;;  %1660 = vmatprep.mubr.msk.bf16.mxu1 %vm1793_vm0, %v1792_v35  ;;  %v1323_v52 = vld [vmem:[%s2324_s16] sm:$0x1f] }
 0x681   :  { %1646 = vmatprep.subr.bf16.mxu1 %v1792_v35  ;;  %v1340_v61 = vrot.slane %v1323_v52, %v2271_v1 }
 0x684   :  { %1647 = vmatpush3.bf16.msra.mxu1 %v1777_v54  ;;  %v1328_v54 = vrot.slane %v1323_v52, %v2276_v16 }
 0x685   :  { %1648 = vmatprep.subr.bf16.mxu1 %v1792_v35 }
 0x688   :  { %1649 = vmatpush3.bf16.msra.mxu1 %v1778_v55  ;;  %v1304_v55 = vrot.slane %v1291_v51, %v2264_v62 }
 0x689   :  { %1650 = vmatprep.subr.bf16.mxu1 %v1792_v35 }
 0x68c   :  { %1651 = vmatpush3.bf16.msra.mxu1 %v1779_v56  ;;  %v1300_v56 = vrot.slane %v1291_v51, %v2269_v0 }
 0x68d   :  { %1652 = vmatprep.subr.bf16.mxu1 %v1792_v35 }
 0x690   :  { %1653 = vmatpush3.bf16.msra.mxu1 %v1780_v57  ;;  %v1308_v57 = vrot.slane %v1291_v51, %v2271_v1 }
 0x691   :  { %1654 = vmatprep.subr.bf16.mxu1 %v1792_v35 }
 0x694   :  { %1655 = vmatpush3.bf16.msra.mxu1 %v1781_v58 }
 0x695   :  { %1656 = vmatprep.subr.bf16.mxu1 %v1792_v35 }
 0x698   :  { %1657 = vmatpush3.bf16.msra.mxu1 %v1782_v59  ;;  %v1336_v59 = vrot.slane %v1323_v52, %v2264_v62 }
 0x699   :  { %1658 = vmatprep.subr.bf16.mxu1 %v1792_v35  ;;  %v906_v35 = vrot.slane %v889_v63, %v2271_v1  ;;  %v1312_v63 = vrot.slane %v1291_v51, %v2279_v20 }
 0x69c   :  { %1659 = vmatpush3.bf16.msra.mxu1 %v1783_v60  ;;  %v1332_v60 = vrot.slane %v1323_v52, %v2269_v0 }
 0x69f   :  { %1661 = vmatmul.mubr.bf16.vlgmr.msra.gmra.mrb[12].mxu1 %v840_v53  ;;  %v1296_v53 = vrot.slane %v1291_v51, %v2276_v16 }
 0x752   :  { %v1158_v6 = vpop.f32.mrb[8].mxu1  ;;  %v1199_v7 = vpop.f32.mrb[12].mxu0 }
 0x753   :  { %v1200_v8 = vadd.f32 %v1199_v7, %v902_v2  ;;  %v1160_v4 = vpop.f32.mrb[9].mxu1  ;;  %v1201_v9 = vpop.f32.mrb[13].mxu0  ;;  %v1159_v18 = vadd.f32 %v1158_v6, %v894_v17  ;;  %v1344_v7 = vrot.slane %v1323_v52, %v2279_v20 }
 0x754   :  { %v1161_v10 = vadd.f32 %v1160_v4, %v898_v3  ;;  %v1202_v11 = vadd.f32 %v1201_v9, %v906_v35  ;;  %v1162_v12 = vpop.f32.mrb[10].mxu1  ;;  %v1203_v13 = vpop.f32.mrb[14].mxu0 }
 0x755   :  { %v1163_v14 = vpop.f32.mrb[11].mxu1  ;;  %v1204_v15 = vpop.f32.mrb[15].mxu0 }
 0x756   :  { %v1246_v19 = vadd.f32 %v1161_v10, %v1159_v18 }
 0x758   :  { %v1247_v21 = vadd.f32 %v1246_v19, %v1200_v8 }
 0x75a   :  { %v1248_v24 = vadd.f32 %v1247_v21, %v1202_v11 }
 0x772   :  { %v1240_v23 = vpop.f32.mrb[12].mxu1 }
 0x773   :  { %v1241_v25 = vadd.f32 %v1240_v23, %v910_v22  ;;  %v1662_v26 = vpop.f32.mrb[13].mxu1 }
 0x774   :  { %v1243_v27 = vpop.f32.mrb[14].mxu1 }
 0x775   :  { %v1663_v28 = vpop.f32.mrb[15].mxu1  ;;  %v1249_v29 = vadd.f32 %v1248_v24, %v1241_v25 }
 0x777   :  { %1250 = vadd.xlane.f32.xlu0 %v1249_v29 }
 0x804   :  { %v1251_v30 = vpop.xlane.xlu0 %1250 }
 0x805   :  { %v1252_v31 = vmul.f32 0.0017361111, %v1251_v30 }
 0x807   :  { %v1262_v33 = vsub.f32 %v1159_v18, %v1252_v31  ;;  %v1263_v34 = vsub.f32 %v1161_v10, %v1252_v31  ;;  %v1264_v36 = vsub.f32 %v1200_v8, %v1252_v31  ;;  %v1266_v37 = vsub.f32 %v1241_v25, %v1252_v31 }
 0x808   :  { %v1265_v38 = vsub.f32 %v1202_v11, %v1252_v31 }
 0x809   :  { %v1272_v39 = vmul.f32 %v1262_v33, %v1262_v33  ;;  %v1273_v40 = vmul.f32 %v1263_v34, %v1263_v34  ;;  %v1274_v41 = vmul.f32 %v1264_v36, %v1264_v36  ;;  %v1271_v43 = vsel %vm1261_vm3, %v1266_v37, 0.0 }
 0x80a   :  { %v1275_v44 = vmul.f32 %v1265_v38, %v1265_v38  ;;  %v1276_v46 = vmul.f32 %v1271_v43, %v1271_v43 }
 0x80b   :  { %v1277_v42 = vadd.f32 %v1273_v40, %v1272_v39 }
 0x80d   :  { %v1278_v45 = vadd.f32 %v1277_v42, %v1274_v41 }
 0x80f   :  { %v1279_v47 = vadd.f32 %v1278_v45, %v1275_v44 }
 0x811   :  { %v1280_v48 = vadd.f32 %v1279_v47, %v1276_v46 }
 0x813   :  { %1281 = vadd.xlane.f32.xlu1 %v1280_v48 }
 0x8a0   :  { %v1282_v49 = vpop.xlane.xlu1 %1281 }
 0x8a1   :  { %v1283_v50 = vmul.f32 0.0017361111, %v1282_v49 }
 0x8a3   :  { %v1284_v5 = vadd.f32 1e-05, %v1283_v50 }
 0x8a5   :  { %1790 = vrsqrt.f32 %v1284_v5 }
 0x8af   :  { %v1791_v58 = vpop.eup %1790 }
 0x8b0   :  { %v1286_v2 = vmul.f32 %v1791_v58, %v1262_v33  ;;  %v1287_v3 = vmul.f32 %v1791_v58, %v1263_v34  ;;  %v1288_v35 = vmul.f32 %v1791_v58, %v1264_v36  ;;  %v1289_v6 = vmul.f32 %v1791_v58, %v1265_v38 }
 0x8b1   :  { %v1290_v8 = vmul.f32 %v1791_v58, %v1271_v43 }
 0x8b2   :  { %v1318_v4 = vmul.f32 %v1296_v53, %v1286_v2  ;;  %v1319_v9 = vmul.f32 %v1300_v56, %v1287_v3  ;;  %v1320_v10 = vmul.f32 %v1304_v55, %v1288_v35  ;;  %v1321_v11 = vmul.f32 %v1308_v57, %v1289_v6 }
 0x8b3   :  { %v1322_v12 = vmul.f32 %v1312_v63, %v1290_v8 }
 0x8b4   :  { %v1350_v13 = vadd.f32 %v1328_v54, %v1318_v4  ;;  %v1351_v62 = vadd.f32 %v1332_v60, %v1319_v9  ;;  %v1352_v14 = vadd.f32 %v1336_v59, %v1320_v10  ;;  %v1353_v0 = vadd.f32 %v1340_v61, %v1321_v11 }
 0x8b5   :  { %v1354_v15 = vadd.f32 %v1344_v7, %v1322_v12 }
 0x8b6   :  { %v1355_v1 = vmax.f32 %v1350_v13, 0.0  ;;  %v1356_v16 = vmax.f32 %v1351_v62, 0.0  ;;  %v1357_v17 = vmax.f32 %v1352_v14, 0.0  ;;  %v1358_v18 = vmax.f32 %v1353_v0, 0.0 }
 0x8b7   :  { %v1359_v19 = vmax.f32 %v1354_v15, 0.0 }
 0x8b8   :  { %v1501_v21 = vpack.c.bf16 %v1356_v16, %v1355_v1  ;;  %v1502_v22 = vpack.c.bf16 %v1358_v18, %v1357_v17 }
 0x8b9   :  { %v1503_v23 = vpack.c.bf16 %v1359_v19, %v1359_v19 }
 0x8ba   :  { %1381 = vst [vmem:[%s2325_s17] sm:$0xff] %v1501_v21  ;;  %1382 = vst [vmem:[%s2325_s17 + $0x8] sm:$0xff] %v1502_v22 }
 0x8bb   :  { %1383 = vst [vmem:[%s2325_s17 + $0x10] sm:$0xf] %v1503_v23 }

// kernel: autoencoder_forward.8
= control target key start
LH: loop header
LB: loop body
LE: loop exit
PB: predicated region body
PF: predicated region fallthrough
CT: control target
= control target key end

     0   :  { %v1778_v0 = vmov 0   ;;  %s2663_s1 = inlined_call_operand.vmem [shape: bf16[256,128], index: 1, kind: input, shape index: {}]   ;;  %s2664_s0 = inlined_call_operand.vmem [shape: bf16[392,256], index: 0, kind: input, shape index: {}]   ;;  %s2665_s2 = inlined_call_operand.vmem [shape: f32[1,128], index: 2, kind: input, shape index: {}]   ;;  %s2666_s3 = inlined_call_operand.vmem [shape: f32[1,128], index: 3, kind: input, shape index: {}]   ;;  %s2667_s4 = inlined_call_operand.vmem [shape: bf16[392,128], index: 4, kind: output, shape index: {}]  }
   0x1   :  { %442 = vmatprep.subr.bf16.mxu0 %v1778_v0  ;;  %v1686_v1 = vld [vmem:[%s2663_s1] sm:$0xff]   ;;  %1653 = vmatprep.subr.bf16.mxu1 %v1778_v0  ;;  %v1687_v2 = vld [vmem:[%s2663_s1 + $0x8] sm:$0xff]   ;;  %v1688_v3 = vld [vmem:[%s2663_s1 + $0x10] sm:$0xff]  }
   0x2   :  { %443 = vmatpush1.bf16.msra.mxu0 %v1686_v1  ;;  %1669 = vmatpush1.bf16.msra.mxu1 %v1686_v1  ;;  %v1689_v4 = vld [vmem:[%s2663_s1 + $0x18] sm:$0xff]   ;;  %v1690_v5 = vld [vmem:[%s2663_s1 + $0x20] sm:$0xff]   ;;  %v1691_v7 = vld [vmem:[%s2663_s1 + $0x28] sm:$0xff]  }
   0x3   :  { %444 = vmatprep.subr.bf16.mxu0 %v1778_v0  ;;  %1654 = vmatprep.subr.bf16.mxu1 %v1778_v0  ;;  %v1704_v6 = vld [vmem:[%s2664_s0 + $0x4] ss:$8 sps:$4 sm:$0xff]   ;;  %v1692_v8 = vld [vmem:[%s2663_s1 + $0x30] sm:$0xff]   ;;  %v1693_v9 = vld [vmem:[%s2663_s1 + $0x38] sm:$0xff]  }
   0x4   :  { %474 = vmatprep.mubr.bf16.mxu0 %v1704_v6  ;;  %v1725_v10 = vld [vmem:[%s2664_s0 + $0xd4] ss:$8 sps:$4 sm:$0xff]   ;;  %v1694_v11 = vld [vmem:[%s2663_s1 + $0x40] sm:$0xff]   ;;  %v1695_v12 = vld [vmem:[%s2663_s1 + $0x48] sm:$0xff]  }
   0x5   :  { %578 = vmatprep.mubr.bf16.mxu1 %v1725_v10  ;;  %v1696_v13 = vld [vmem:[%s2663_s1 + $0x50] sm:$0xff]   ;;  %v1697_v14 = vld [vmem:[%s2663_s1 + $0x58] sm:$0xff]   ;;  %v1698_v15 = vld [vmem:[%s2663_s1 + $0x60] sm:$0xff]  }
   0x6   :  { %445 = vmatpush1.bf16.msra.mxu0 %v1687_v2  ;;  %1670 = vmatpush1.bf16.msra.mxu1 %v1687_v2  ;;  %v1699_v16 = vld [vmem:[%s2663_s1 + $0x68] sm:$0xff]   ;;  %v1700_v17 = vld [vmem:[%s2663_s1 + $0x70] sm:$0xff]   ;;  %v1701_v18 = vld [vmem:[%s2663_s1 + $0x78] sm:$0xff]  }
   0x7   :  { %446 = vmatprep.subr.bf16.mxu0 %v1778_v0  ;;  %1655 = vmatprep.subr.bf16.mxu1 %v1778_v0  ;;  %v1702_v19 = vld [vmem:[%s2664_s0] ss:$8 sps:$4 sm:$0xff]   ;;  %v1723_v20 = vld [vmem:[%s2664_s0 + $0xd0] ss:$8 sps:$4 sm:$0xff]   ;;  %v1705_v21 = vld [vmem:[%s2664_s0 + $0x14] ss:$8 sps:$4 sm:$0xff]  }
   0x8   :  { %v1729_v22 = vld [vmem:[%s2664_s0 + $0xe4] ss:$8 sps:$4 sm:$0xff]   ;;  %v1707_v23 = vld [vmem:[%s2664_s0 + $0x10] ss:$8 sps:$4 sm:$0xff]   ;;  %v1731_v24 = vld [vmem:[%s2664_s0 + $0xe0] ss:$8 sps:$4 sm:$0xff]  }
   0x9   :  { %v1708_v25 = vld [vmem:[%s2664_s0 + $0x24] ss:$8 sps:$4 sm:$0xff]   ;;  %v1735_v26 = vld [vmem:[%s2664_s0 + $0xf4] ss:$8 sps:$4 sm:$0xff]   ;;  %v1710_v27 = vld [vmem:[%s2664_s0 + $0x20] ss:$8 sps:$4 sm:$0xff]  }
   0xa   :  { %447 = vmatpush1.bf16.msra.mxu0 %v1688_v3  ;;  %1671 = vmatpush1.bf16.msra.mxu1 %v1688_v3  ;;  %v1737_v28 = vld [vmem:[%s2664_s0 + $0xf0] ss:$8 sps:$4 sm:$0xff]   ;;  %v1711_v29 = vld [vmem:[%s2664_s0 + $0x34] ss:$8 sps:$4 sm:$0xff]   ;;  %v1741_v30 = vld [vmem:[%s2664_s0 + $0x104] ss:$8 sps:$4 sm:$0xff]  }
   0xb   :  { %448 = vmatprep.subr.bf16.mxu0 %v1778_v0  ;;  %1656 = vmatprep.subr.bf16.mxu1 %v1778_v0  ;;  %v1713_v31 = vld [vmem:[%s2664_s0 + $0x30] ss:$8 sps:$4 sm:$0xff]   ;;  %v1743_v32 = vld [vmem:[%s2664_s0 + $0x100] ss:$8 sps:$4 sm:$0xff]   ;;  %v1714_v33 = vld [vmem:[%s2664_s0 + $0x44] ss:$8 sps:$4 sm:$0xff]  }
   0xc   :  { %v1747_v34 = vld [vmem:[%s2664_s0 + $0x114] ss:$8 sps:$4 sm:$0xff]   ;;  %v1716_v35 = vld [vmem:[%s2664_s0 + $0x40] ss:$8 sps:$4 sm:$0xff]   ;;  %v1749_v36 = vld [vmem:[%s2664_s0 + $0x110] ss:$8 sps:$4 sm:$0xff]  }
   0xd   :  { %v1717_v37 = vld [vmem:[%s2664_s0 + $0x54] ss:$8 sps:$4 sm:$0xff]   ;;  %v1753_v38 = vld [vmem:[%s2664_s0 + $0x124] ss:$8 sps:$4 sm:$0xff]   ;;  %v1719_v39 = vld [vmem:[%s2664_s0 + $0x50] ss:$8 sps:$4 sm:$0xff]  }
   0xe   :  { %449 = vmatpush1.bf16.msra.mxu0 %v1689_v4  ;;  %1672 = vmatpush1.bf16.msra.mxu1 %v1689_v4  ;;  %v1755_v40 = vld [vmem:[%s2664_s0 + $0x120] ss:$8 sps:$4 sm:$0xff]   ;;  %v1720_v41 = vld [vmem:[%s2664_s0 + $0x64] ss:$8 sps:$4 sm:$0xff]   ;;  %v1759_v42 = vld [vmem:[%s2664_s0 + $0x134] ss:$8 sps:$4 sm:$0xff]  }
   0xf   :  { %450 = vmatprep.subr.bf16.mxu0 %v1778_v0  ;;  %1657 = vmatprep.subr.bf16.mxu1 %v1778_v0  ;;  %v1722_v43 = vld [vmem:[%s2664_s0 + $0x60] ss:$8 sps:$4 sm:$0xff]   ;;  %v1761_v44 = vld [vmem:[%s2664_s0 + $0x130] ss:$8 sps:$4 sm:$0xff]   ;;  %v1726_v45 = vld [vmem:[%s2664_s0 + $0x74] ss:$8 sps:$4 sm:$0xff]  }
  0x10   :  { %v1762_v46 = vld [vmem:[%s2664_s0 + $0x144] ss:$8 sps:$4 sm:$0xff]   ;;  %v1728_v47 = vld [vmem:[%s2664_s0 + $0x70] ss:$8 sps:$4 sm:$0xff]   ;;  %v1764_v48 = vld [vmem:[%s2664_s0 + $0x140] ss:$8 sps:$4 sm:$0xff]  }
  0x11   :  { %v1732_v49 = vld [vmem:[%s2664_s0 + $0x84] ss:$8 sps:$4 sm:$0xff]   ;;  %v1765_v50 = vld [vmem:[%s2664_s0 + $0x154] ss:$8 sps:$4 sm:$0xff]   ;;  %v1734_v51 = vld [vmem:[%s2664_s0 + $0x80] ss:$8 sps:$4 sm:$0xff]  }
  0x12   :  { %451 = vmatpush1.bf16.msra.mxu0 %v1690_v5  ;;  %1673 = vmatpush1.bf16.msra.mxu1 %v1690_v5  ;;  %v1767_v52 = vld [vmem:[%s2664_s0 + $0x150] ss:$8 sps:$4 sm:$0xff]   ;;  %v1738_v53 = vld [vmem:[%s2664_s0 + $0x94] ss:$8 sps:$4 sm:$0xff]   ;;  %v1768_v54 = vld [vmem:[%s2664_s0 + $0x164] ss:$8 sps:$4 sm:$0xff]  }
  0x13   :  { %452 = vmatprep.subr.bf16.mxu0 %v1778_v0  ;;  %1658 = vmatprep.subr.bf16.mxu1 %v1778_v0  ;;  %v1740_v55 = vld [vmem:[%s2664_s0 + $0x90] ss:$8 sps:$4 sm:$0xff]   ;;  %v1770_v56 = vld [vmem:[%s2664_s0 + $0x160] ss:$8 sps:$4 sm:$0xff]   ;;  %v1744_v57 = vld [vmem:[%s2664_s0 + $0xa4] ss:$8 sps:$4 sm:$0xff]  }
  0x14   :  { %v1771_v58 = vld [vmem:[%s2664_s0 + $0x174] ss:$8 sps:$4 sm:$0xff]   ;;  %v66_v59 = vld [vmem:[%s2664_s0 + $0x180] sm:$0xff]  ;;  %v1773_v61 = vld [vmem:[%s2664_s0 + $0x170] ss:$8 sps:$4 sm:$0xff]  }
  0x15   :  { %v1746_v60 = vld [vmem:[%s2664_s0 + $0xa0] ss:$8 sps:$4 sm:$0xff]   ;;  %v1750_v62 = vld [vmem:[%s2664_s0 + $0xb4] ss:$8 sps:$4 sm:$0xff]   ;;  %v1393_v63 = vcombine.high %v66_v59, %v66_v59  ;;  %v1392_v1 = vcombine.low %v66_v59, %v66_v59  ;;  %v1756_v2 = vld [vmem:[%s2664_s0 + $0xc4] ss:$8 sps:$4 sm:$0xff]  }
  0x16   :  { %453 = vmatpush1.bf16.msra.mxu0 %v1691_v7  ;;  %1674 = vmatpush1.bf16.msra.mxu1 %v1691_v7  ;;  %v1758_v3 = vld [vmem:[%s2664_s0 + $0xc0] ss:$8 sps:$4 sm:$0xff]  }
  0x17   :  { %454 = vmatprep.subr.bf16.mxu0 %v1778_v0  ;;  %1659 = vmatprep.subr.bf16.mxu1 %v1778_v0 }
  0x1a   :  { %455 = vmatpush1.bf16.msra.mxu0 %v1692_v8  ;;  %1675 = vmatpush1.bf16.msra.mxu1 %v1692_v8 }
  0x1b   :  { %456 = vmatprep.subr.bf16.mxu0 %v1778_v0  ;;  %1660 = vmatprep.subr.bf16.mxu1 %v1778_v0 }
  0x1e   :  { %457 = vmatpush1.bf16.msra.mxu0 %v1693_v9  ;;  %1676 = vmatpush1.bf16.msra.mxu1 %v1693_v9 }
  0x1f   :  { %458 = vmatprep.subr.bf16.mxu0 %v1778_v0  ;;  %1661 = vmatprep.subr.bf16.mxu1 %v1778_v0 }
  0x22   :  { %459 = vmatpush1.bf16.msra.mxu0 %v1694_v11  ;;  %1677 = vmatpush1.bf16.msra.mxu1 %v1694_v11 }
  0x23   :  { %460 = vmatprep.subr.bf16.mxu0 %v1778_v0  ;;  %1662 = vmatprep.subr.bf16.mxu1 %v1778_v0 }
  0x26   :  { %461 = vmatpush1.bf16.msra.mxu0 %v1695_v12  ;;  %1678 = vmatpush1.bf16.msra.mxu1 %v1695_v12 }
  0x27   :  { %462 = vmatprep.subr.bf16.mxu0 %v1778_v0  ;;  %1663 = vmatprep.subr.bf16.mxu1 %v1778_v0 }
  0x2a   :  { %463 = vmatpush1.bf16.msra.mxu0 %v1696_v13  ;;  %1679 = vmatpush1.bf16.msra.mxu1 %v1696_v13 }
  0x2b   :  { %464 = vmatprep.subr.bf16.mxu0 %v1778_v0  ;;  %1664 = vmatprep.subr.bf16.mxu1 %v1778_v0 }
  0x2e   :  { %465 = vmatpush1.bf16.msra.mxu0 %v1697_v14  ;;  %1680 = vmatpush1.bf16.msra.mxu1 %v1697_v14 }
  0x2f   :  { %466 = vmatprep.subr.bf16.mxu0 %v1778_v0  ;;  %1665 = vmatprep.subr.bf16.mxu1 %v1778_v0 }
  0x32   :  { %467 = vmatpush1.bf16.msra.mxu0 %v1698_v15  ;;  %1681 = vmatpush1.bf16.msra.mxu1 %v1698_v15 }
  0x33   :  { %468 = vmatprep.subr.bf16.mxu0 %v1778_v0  ;;  %1666 = vmatprep.subr.bf16.mxu1 %v1778_v0 }
  0x36   :  { %469 = vmatpush1.bf16.msra.mxu0 %v1699_v16  ;;  %1682 = vmatpush1.bf16.msra.mxu1 %v1699_v16 }
  0x37   :  { %470 = vmatprep.subr.bf16.mxu0 %v1778_v0  ;;  %1667 = vmatprep.subr.bf16.mxu1 %v1778_v0 }
  0x3a   :  { %471 = vmatpush1.bf16.msra.mxu0 %v1700_v17  ;;  %1683 = vmatpush1.bf16.msra.mxu1 %v1700_v17 }
  0x3b   :  { %472 = vmatprep.subr.bf16.mxu0 %v1778_v0  ;;  %1668 = vmatprep.subr.bf16.mxu1 %v1778_v0  ;;  %v1752_v0 = vld [vmem:[%s2664_s0 + $0xb0] ss:$8 sps:$4 sm:$0xff]  }
  0x3e   :  { %473 = vmatpush1.bf16.msra.mxu0 %v1701_v18  ;;  %1684 = vmatpush1.bf16.msra.mxu1 %v1701_v18 }
  0x41   :  { %475 = vmatmul.mubr.bf16.vlgmr.msra.gmra.mrb[0].mxu0 %v1702_v19  ;;  %579 = vmatmul.mubr.bf16.vlgmr.msra.gmra.mrb[0].mxu1 %v1723_v20 }
  0x42   :  { %482 = vmatprep.mubr.bf16.mxu0 %v1705_v21  ;;  %586 = vmatprep.mubr.bf16.mxu1 %v1729_v22 }
  0x49   :  { %483 = vmatmul.mubr.bf16.gmra.mrb[4].mxu0 %v1707_v23  ;;  %587 = vmatmul.mubr.bf16.gmra.mrb[4].mxu1 %v1731_v24 }
  0x4a   :  { %490 = vmatprep.mubr.bf16.mxu0 %v1708_v25  ;;  %594 = vmatprep.mubr.bf16.mxu1 %v1735_v26 }
  0x51   :  { %491 = vmatmul.mubr.bf16.gmra.mrb[8].mxu0 %v1710_v27  ;;  %595 = vmatmul.mubr.bf16.gmra.mrb[8].mxu1 %v1737_v28 }
  0x52   :  { %498 = vmatprep.mubr.bf16.mxu0 %v1711_v29  ;;  %602 = vmatprep.mubr.bf16.mxu1 %v1741_v30 }
  0x59   :  { %499 = vmatmul.mubr.bf16.gmra.mrb[12].mxu0 %v1713_v31  ;;  %603 = vmatmul.mubr.bf16.gmra.mrb[12].mxu1 %v1743_v32 }
  0x5a   :  { %506 = vmatprep.mubr.bf16.mxu0 %v1714_v33  ;;  %610 = vmatprep.mubr.bf16.mxu1 %v1747_v34 }
  0x61   :  { %507 = vmatmul.mubr.bf16.gmra.mrb[16].mxu0 %v1716_v35  ;;  %611 = vmatmul.mubr.bf16.gmra.mrb[16].mxu1 %v1749_v36 }
  0x62   :  { %514 = vmatprep.mubr.bf16.mxu0 %v1717_v37  ;;  %618 = vmatprep.mubr.bf16.mxu1 %v1753_v38 }
  0x69   :  { %515 = vmatmul.mubr.bf16.gmra.mrb[20].mxu0 %v1719_v39  ;;  %619 = vmatmul.mubr.bf16.gmra.mrb[20].mxu1 %v1755_v40 }
  0x6a   :  { %522 = vmatprep.mubr.bf16.mxu0 %v1720_v41  ;;  %626 = vmatprep.mubr.bf16.mxu1 %v1759_v42 }
  0x71   :  { %523 = vmatmul.mubr.bf16.gmra.mrb[24].mxu0 %v1722_v43  ;;  %627 = vmatmul.mubr.bf16.gmra.mrb[24].mxu1 %v1761_v44 }
  0x72   :  { %530 = vmatprep.mubr.bf16.mxu0 %v1726_v45  ;;  %634 = vmatprep.mubr.bf16.mxu1 %v1762_v46 }
  0x79   :  { %531 = vmatmul.mubr.bf16.gmra.mrb[28].mxu0 %v1728_v47  ;;  %635 = vmatmul.mubr.bf16.gmra.mrb[28].mxu1 %v1764_v48 }
  0x7a   :  { %538 = vmatprep.mubr.bf16.mxu0 %v1732_v49  ;;  %642 = vmatprep.mubr.bf16.mxu1 %v1765_v50 }
  0x81   :  { %539 = vmatmul.mubr.bf16.gmra.mrb[32].mxu0 %v1734_v51  ;;  %643 = vmatmul.mubr.bf16.gmra.mrb[32].mxu1 %v1767_v52 }
  0x82   :  { %546 = vmatprep.mubr.bf16.mxu0 %v1738_v53  ;;  %650 = vmatprep.mubr.bf16.mxu1 %v1768_v54 }
  0x89   :  { %547 = vmatmul.mubr.bf16.gmra.mrb[36].mxu0 %v1740_v55  ;;  %651 = vmatmul.mubr.bf16.gmra.mrb[36].mxu1 %v1770_v56 }
  0x8a   :  { %554 = vmatprep.mubr.bf16.mxu0 %v1744_v57  ;;  %658 = vmatprep.mubr.bf16.mxu1 %v1771_v58 }
  0x91   :  { %555 = vmatmul.mubr.bf16.gmra.mrb[40].mxu0 %v1746_v60  ;;  %659 = vmatmul.mubr.bf16.gmra.mrb[40].mxu1 %v1773_v61 }
  0x92   :  { %562 = vmatprep.mubr.bf16.mxu0 %v1750_v62  ;;  %666 = vmatprep.mubr.bf16.mxu1 %v1393_v63 }
  0x99   :  { %563 = vmatmul.mubr.bf16.gmra.mrb[44].mxu0 %v1752_v0  ;;  %667 = vmatmul.mubr.bf16.gmra.mrb[44].mxu1 %v1392_v1 }
  0x9a   :  { %570 = vmatprep.mubr.bf16.mxu0 %v1756_v2 }
  0xa1   :  { %571 = vmatmul.mubr.bf16.gmra.mrb[48].mxu0 %v1758_v3 }
 0x114   :  { %v2031_v4 = vpop.f32.mrb[0].mxu0  ;;  %v2033_v5 = vpop.f32.mrb[0].mxu1 }
 0x115   :  { %2700 = vst [vmem:[#allocation2_spill] sm:$0xff] %v2033_v5  ;;  %v478_v6 = vpop.f32.mrb[1].mxu0  ;;  %v582_v7 = vpop.f32.mrb[1].mxu1  ;;  %v2692_v37 = vmax.f32 %v2031_v4, 0.0 }
 0x116   :  { %v2035_v8 = vpop.f32.mrb[2].mxu0  ;;  %v2037_v9 = vpop.f32.mrb[2].mxu1 }
 0x117   :  { %v481_v10 = vpop.f32.mrb[3].mxu0  ;;  %v585_v11 = vpop.f32.mrb[3].mxu1  ;;  %v2691_v34 = vmax.f32 %v2035_v8, 0.0 }
 0x119   :  { %v723_v39 = vadd.f32 %v2691_v34, %v2692_v37 }
 0x11c   :  { %v2039_v12 = vpop.f32.mrb[4].mxu0  ;;  %v2041_v13 = vpop.f32.mrb[4].mxu1 }
 0x11d   :  { %v486_v14 = vpop.f32.mrb[5].mxu0  ;;  %v590_v15 = vpop.f32.mrb[5].mxu1  ;;  %v2689_v38 = vmax.f32 %v2039_v12, 0.0 }
 0x11e   :  { %v2043_v16 = vpop.f32.mrb[6].mxu0  ;;  %v2045_v17 = vpop.f32.mrb[6].mxu1 }
 0x11f   :  { %v489_v18 = vpop.f32.mrb[7].mxu0  ;;  %v593_v19 = vpop.f32.mrb[7].mxu1  ;;  %v724_v42 = vadd.f32 %v723_v39, %v2689_v38  ;;  %v2685_v43 = vmax.f32 %v2043_v16, 0.0 }
 0x121   :  { %v725_v51 = vadd.f32 %v724_v42, %v2685_v43 }
 0x124   :  { %v2047_v20 = vpop.f32.mrb[8].mxu0  ;;  %v2049_v21 = vpop.f32.mrb[8].mxu1 }
 0x125   :  { %v494_v22 = vpop.f32.mrb[9].mxu0  ;;  %v598_v23 = vpop.f32.mrb[9].mxu1  ;;  %v2684_v48 = vmax.f32 %v2047_v20, 0.0 }
 0x126   :  { %v2051_v24 = vpop.f32.mrb[10].mxu0  ;;  %v2053_v25 = vpop.f32.mrb[10].mxu1 }
 0x127   :  { %v497_v26 = vpop.f32.mrb[11].mxu0  ;;  %v601_v27 = vpop.f32.mrb[11].mxu1  ;;  %v726_v52 = vadd.f32 %v725_v51, %v2684_v48  ;;  %v2683_v53 = vmax.f32 %v2051_v24, 0.0 }
 0x129   :  { %v727_v61 = vadd.f32 %v726_v52, %v2683_v53 }
 0x12c   :  { %v2055_v28 = vpop.f32.mrb[12].mxu0  ;;  %v2057_v29 = vpop.f32.mrb[12].mxu1 }
 0x12d   :  { %v502_v30 = vpop.f32.mrb[13].mxu0  ;;  %v606_v31 = vpop.f32.mrb[13].mxu1  ;;  %v2680_v56 = vmax.f32 %v2055_v28, 0.0  ;;  %v706_v37 = vmax.f32 %v2057_v29, 0.0 }
 0x12e   :  { %v2059_v32 = vpop.f32.mrb[14].mxu0  ;;  %v2061_v33 = vpop.f32.mrb[14].mxu1 }
 0x12f   :  { %v505_v35 = vpop.f32.mrb[15].mxu0  ;;  %v609_v36 = vpop.f32.mrb[15].mxu1  ;;  %v728_v0 = vadd.f32 %v727_v61, %v2680_v56  ;;  %v2679_v1 = vmax.f32 %v2059_v32, 0.0 }
 0x131   :  { %v729_v7 = vadd.f32 %v728_v0, %v2679_v1 }
 0x134   :  { %v2070_v40 = vpop.f32.mrb[16].mxu0  ;;  %v2072_v41 = vpop.f32.mrb[16].mxu1 }
 0x135   :  { %v510_v44 = vpop.f32.mrb[17].mxu0  ;;  %v614_v45 = vpop.f32.mrb[17].mxu1  ;;  %v2678_v2 = vmax.f32 %v2070_v40, 0.0 }
 0x136   :  { %v2077_v46 = vpop.f32.mrb[18].mxu0  ;;  %v2079_v47 = vpop.f32.mrb[18].mxu1 }
 0x137   :  { %v513_v49 = vpop.f32.mrb[19].mxu0  ;;  %v617_v50 = vpop.f32.mrb[19].mxu1  ;;  %v730_v18 = vadd.f32 %v729_v7, %v2678_v2  ;;  %v2675_v19 = vmax.f32 %v2077_v46, 0.0 }
 0x139   :  { %v731_v27 = vadd.f32 %v730_v18, %v2675_v19 }
 0x13c   :  { %v2087_v54 = vpop.f32.mrb[20].mxu0  ;;  %v2089_v55 = vpop.f32.mrb[20].mxu1 }
 0x13d   :  { %v518_v57 = vpop.f32.mrb[21].mxu0  ;;  %v622_v58 = vpop.f32.mrb[21].mxu1  ;;  %v2674_v26 = vmax.f32 %v2087_v54, 0.0 }
 0x13e   :  { %v2092_v59 = vpop.f32.mrb[22].mxu0  ;;  %v2094_v60 = vpop.f32.mrb[22].mxu1 }
 0x13f   :  { %v521_v62 = vpop.f32.mrb[23].mxu0  ;;  %v625_v63 = vpop.f32.mrb[23].mxu1  ;;  %v732_v35 = vadd.f32 %v731_v27, %v2674_v26  ;;  %v2671_v36 = vmax.f32 %v2092_v59, 0.0 }
 0x141   :  { %v733_v52 = vadd.f32 %v732_v35, %v2671_v36 }
 0x144   :  { %v2102_v3 = vpop.f32.mrb[24].mxu0  ;;  %v2104_v6 = vpop.f32.mrb[24].mxu1 }
 0x145   :  { %v526_v10 = vpop.f32.mrb[25].mxu0  ;;  %v630_v11 = vpop.f32.mrb[25].mxu1  ;;  %v2670_v49 = vmax.f32 %v2102_v3, 0.0 }
 0x146   :  { %v2108_v14 = vpop.f32.mrb[26].mxu0  ;;  %v2110_v15 = vpop.f32.mrb[26].mxu1 }
 0x147   :  { %v529_v22 = vpop.f32.mrb[27].mxu0  ;;  %v633_v23 = vpop.f32.mrb[27].mxu1  ;;  %v734_v57 = vadd.f32 %v733_v52, %v2670_v49  ;;  %v2669_v58 = vmax.f32 %v2108_v14, 0.0 }
 0x149   :  { %v735_v18 = vadd.f32 %v734_v57, %v2669_v58 }
 0x14c   :  { %v2118_v30 = vpop.f32.mrb[28].mxu0  ;;  %v2120_v31 = vpop.f32.mrb[28].mxu1 }
 0x14d   :  { %v534_v39 = vpop.f32.mrb[29].mxu0  ;;  %v638_v42 = vpop.f32.mrb[29].mxu1  ;;  %v2668_v63 = vmax.f32 %v2118_v30, 0.0 }
 0x14e   :  { %v2125_v44 = vpop.f32.mrb[30].mxu0  ;;  %v2127_v45 = vpop.f32.mrb[30].mxu1 }
 0x14f   :  { %v537_v50 = vpop.f32.mrb[31].mxu0  ;;  %v641_v51 = vpop.f32.mrb[31].mxu1  ;;  %v736_v27 = vadd.f32 %v735_v18, %v2668_v63  ;;  %v2672_v35 = vmax.f32 %v2125_v44, 0.0 }
 0x151   :  { %v737_v51 = vadd.f32 %v736_v27, %v2672_v35 }
 0x154   :  { %v2135_v61 = vpop.f32.mrb[32].mxu0  ;;  %v2137_v62 = vpop.f32.mrb[32].mxu1 }
 0x155   :  { %v542_v0 = vpop.f32.mrb[33].mxu0  ;;  %v646_v7 = vpop.f32.mrb[33].mxu1  ;;  %v2673_v39 = vmax.f32 %v2135_v61, 0.0 }
 0x156   :  { %v2140_v10 = vpop.f32.mrb[34].mxu0  ;;  %v2142_v11 = vpop.f32.mrb[34].mxu1 }
 0x157   :  { %v545_v22 = vpop.f32.mrb[35].mxu0  ;;  %v649_v23 = vpop.f32.mrb[35].mxu1  ;;  %v738_v18 = vadd.f32 %v737_v51, %v2673_v39 }
 0x158   :  { %v2676_v22 = vmax.f32 %v2140_v10, 0.0 }
 0x15a   :  { %v739_v49 = vadd.f32 %v738_v18, %v2676_v22 }
 0x15c   :  { %v2150_v42 = vpop.f32.mrb[36].mxu0  ;;  %v2152_v50 = vpop.f32.mrb[36].mxu1 }
 0x15d   :  { %v550_v52 = vpop.f32.mrb[37].mxu0  ;;  %v654_v0 = vpop.f32.mrb[37].mxu1  ;;  %v2677_v58 = vmax.f32 %v2150_v42, 0.0 }
 0x15e   :  { %v2156_v7 = vpop.f32.mrb[38].mxu0  ;;  %v2158_v57 = vpop.f32.mrb[38].mxu1 }
 0x15f   :  { %v553_v23 = vpop.f32.mrb[39].mxu0  ;;  %v657_v63 = vpop.f32.mrb[39].mxu1  ;;  %v740_v52 = vadd.f32 %v739_v49, %v2677_v58  ;;  %v2681_v0 = vmax.f32 %v2156_v7, 0.0 }
 0x161   :  { %v741_v18 = vadd.f32 %v740_v52, %v2681_v0 }
 0x164   :  { %v2166_v36 = vpop.f32.mrb[40].mxu0  ;;  %v2168_v27 = vpop.f32.mrb[40].mxu1 }
 0x165   :  { %v558_v35 = vpop.f32.mrb[41].mxu0  ;;  %v662_v51 = vpop.f32.mrb[41].mxu1  ;;  %v2682_v63 = vmax.f32 %v2166_v36, 0.0 }
 0x166   :  { %v2173_v39 = vpop.f32.mrb[42].mxu0  ;;  %v2175_v23 = vpop.f32.mrb[42].mxu1 }
 0x167   :  { %v561_v26 = vpop.f32.mrb[43].mxu0  ;;  %v665_v19 = vpop.f32.mrb[43].mxu1  ;;  %v742_v22 = vadd.f32 %v741_v18, %v2682_v63  ;;  %v2688_v49 = vmax.f32 %v2173_v39, 0.0 }
 0x169   :  { %v743_v19 = vadd.f32 %v742_v22, %v2688_v49  ;;  %v703_v49 = vmax.f32 %v2045_v17, 0.0  ;;  %v710_v17 = vmax.f32 %v2089_v55, 0.0 }
 0x16c   :  { %v2183_v58 = vpop.f32.mrb[44].mxu0  ;;  %v2185_v35 = vpop.f32.mrb[44].mxu1 }
 0x16d   :  { %v2686_v51 = vmax.f32 %v2183_v58, 0.0  ;;  %v566_v2 = vpop.f32.mrb[45].mxu0  ;;  %v670_v1 = vpop.f32.mrb[45].mxu1 }
 0x16e   :  { %v2188_v56 = vpop.f32.mrb[46].mxu0  ;;  %v671_v26 = vpop.f32.mrb[46].mxu1 }
 0x16f   :  { %v569_v52 = vpop.f32.mrb[47].mxu0  ;;  %v672_v0 = vpop.f32.mrb[47].mxu1  ;;  %v744_v18 = vadd.f32 %v743_v19, %v2686_v51  ;;  %v2687_v63 = vmax.f32 %v2188_v56, 0.0  ;;  %v2694_v19 = vmax.f32 %v2033_v5, 0.0  ;;  %v701_v51 = vmax.f32 %v2037_v9, 0.0 }
 0x170   :  { %v707_v9 = vmax.f32 %v2061_v33, 0.0 }
 0x171   :  { %v745_v48 = vadd.f32 %v744_v18, %v2687_v63 }
 0x174   :  { %v2195_v53 = vpop.f32.mrb[48].mxu0 }
 0x175   :  { %v2690_v1 = vmax.f32 %v2195_v53, 0.0  ;;  %v574_v2 = vpop.f32.mrb[49].mxu0 }
 0x176   :  { %v2200_v43 = vpop.f32.mrb[50].mxu0  ;;  %v702_v2 = vmax.f32 %v2041_v13, 0.0  ;;  %v709_v13 = vmax.f32 %v2079_v47, 0.0 }
 0x177   :  { %2701 = vst [vmem:[#allocation3_spill] sm:$0xff] %v2200_v43  ;;  %v746_v22 = vadd.f32 %v745_v48, %v2690_v1  ;;  %v2693_v0 = vmax.f32 %v2200_v43, 0.0  ;;  %v577_v26 = vpop.f32.mrb[51].mxu0  ;;  %v704_v48 = vmax.f32 %v2049_v21, 0.0  ;;  %v711_v21 = vmax.f32 %v2094_v60, 0.0 }
 0x178   :  { %v705_v26 = vmax.f32 %v2053_v25, 0.0  ;;  %v712_v25 = vmax.f32 %v2104_v6, 0.0 }
 0x179   :  { %v747_v52 = vadd.f32 %v746_v22, %v2693_v0 }
 0x17b   :  { %v748_v18 = vadd.f32 %v747_v52, %v2694_v19  ;;  %v708_v52 = vmax.f32 %v2072_v41, 0.0 }
 0x17d   :  { %v749_v63 = vadd.f32 %v748_v18, %v701_v51 }
 0x17f   :  { %v750_v38 = vadd.f32 %v749_v63, %v702_v2 }
 0x181   :  { %v751_v1 = vadd.f32 %v750_v38, %v703_v49 }
 0x183   :  { %v752_v34 = vadd.f32 %v751_v1, %v704_v48 }
 0x185   :  { %v753_v22 = vadd.f32 %v752_v34, %v705_v26  ;;  %v713_v34 = vmax.f32 %v2110_v15, 0.0  ;;  %v720_v15 = vmax.f32 %v2168_v27, 0.0 }
 0x187   :  { %v754_v0 = vadd.f32 %v753_v22, %v706_v37  ;;  %v714_v22 = vmax.f32 %v2120_v31, 0.0  ;;  %v721_v31 = vmax.f32 %v2175_v23, 0.0 }
 0x189   :  { %v755_v19 = vadd.f32 %v754_v0, %v707_v9  ;;  %v715_v0 = vmax.f32 %v2127_v45, 0.0  ;;  %v722_v45 = vmax.f32 %v2185_v35, 0.0 }
 0x18b   :  { %v756_v18 = vadd.f32 %v755_v19, %v708_v52  ;;  %v716_v19 = vmax.f32 %v2137_v62, 0.0 }
 0x18d   :  { %v757_v63 = vadd.f32 %v756_v18, %v709_v13  ;;  %v717_v18 = vmax.f32 %v2142_v11, 0.0 }
 0x18f   :  { %v758_v38 = vadd.f32 %v757_v63, %v710_v17  ;;  %v718_v63 = vmax.f32 %v2152_v50, 0.0 }
 0x191   :  { %v759_v1 = vadd.f32 %v758_v38, %v711_v21  ;;  %v719_v38 = vmax.f32 %v2158_v57, 0.0 }
 0x193   :  { %v760_v29 = vadd.f32 %v759_v1, %v712_v25 }
 0x195   :  { %v761_v33 = vadd.f32 %v760_v29, %v713_v34 }
 0x197   :  { %v762_v41 = vadd.f32 %v761_v33, %v714_v22 }
 0x199   :  { %v763_v47 = vadd.f32 %v762_v41, %v715_v0 }
 0x19b   :  { %v764_v55 = vadd.f32 %v763_v47, %v716_v19 }
 0x19d   :  { %v765_v60 = vadd.f32 %v764_v55, %v717_v18 }
 0x19f   :  { %v766_v6 = vadd.f32 %v765_v60, %v718_v63 }
 0x1a1   :  { %v767_v1 = vadd.f32 %v766_v6, %v719_v38 }
 0x1a3   :  { %v768_v29 = vadd.f32 %v767_v1, %v720_v15 }
 0x1a5   :  { %v769_v33 = vadd.f32 %v768_v29, %v721_v31 }
 0x1a7   :  { %v770_v41 = vadd.f32 %v769_v33, %v722_v45 }
 0x1a9   :  { %v771_v62 = vrot.slane %v770_v41, 4 }
 0x1ab   :  { %v772_v47 = vadd.f32 %v771_v62, %v770_v41  ;;  %v2710_v41 = vmax.f32 %v2051_v24, 0.0 }
 0x1ad   :  { %v773_v5 = vrot.slane %v772_v47, 2 }
 0x1af   :  { %v774_v11 = vadd.f32 %v773_v5, %v772_v47 }
 0x1b1   :  { %v775_v55 = vrot.slane %v774_v11, 1 }
 0x1b3   :  { %v776_v43 = vadd.f32 %v775_v55, %v774_v11  ;;  %v2711_v11 = vmax.f32 %v2055_v28, 0.0 }
 0x1b5   :  { %v2232_v50 = vmul.f32 0.0025510204, %v776_v43 }
 0x1b7   :  { %v2235_v57 = vsub.f32 %v701_v51, %v2232_v50  ;;  %v2238_v27 = vsub.f32 %v702_v2, %v2232_v50  ;;  %v2241_v23 = vsub.f32 %v703_v49, %v2232_v50  ;;  %v2244_v35 = vsub.f32 %v704_v48, %v2232_v50 }
 0x1b8   :  { %v2247_v60 = vsub.f32 %v705_v26, %v2232_v50  ;;  %v2250_v5 = vsub.f32 %v706_v37, %v2232_v50  ;;  %v2253_v43 = vsub.f32 %v707_v9, %v2232_v50  ;;  %v2256_v51 = vsub.f32 %v708_v52, %v2232_v50 }
 0x1b9   :  { %v2259_v2 = vsub.f32 %v709_v13, %v2232_v50  ;;  %v2262_v49 = vsub.f32 %v710_v17, %v2232_v50  ;;  %v2265_v48 = vsub.f32 %v711_v21, %v2232_v50  ;;  %v2268_v26 = vsub.f32 %v712_v25, %v2232_v50 }
 0x1ba   :  { %v2271_v37 = vsub.f32 %v713_v34, %v2232_v50  ;;  %v2274_v9 = vsub.f32 %v714_v22, %v2232_v50  ;;  %v2277_v52 = vsub.f32 %v715_v0, %v2232_v50  ;;  %v2280_v13 = vsub.f32 %v716_v19, %v2232_v50 }
 0x1bb   :  { %v2283_v17 = vsub.f32 %v717_v18, %v2232_v50  ;;  %v2286_v21 = vsub.f32 %v718_v63, %v2232_v50  ;;  %v2289_v25 = vsub.f32 %v719_v38, %v2232_v50  ;;  %v2292_v34 = vsub.f32 %v720_v15, %v2232_v50 }
 0x1bc   :  { %v2295_v22 = vsub.f32 %v721_v31, %v2232_v50  ;;  %v2298_v0 = vsub.f32 %v722_v45, %v2232_v50  ;;  %v2705_v19 = vmax.f32 %v2031_v4, 0.0  ;;  %v2706_v63 = vmax.f32 %v2035_v8, 0.0 }
 0x1bd   :  { %2702 = vst [vmem:[#allocation4_spill] sm:$0xff] %v2286_v21  ;;  %2703 = vst [vmem:[#allocation5_spill] sm:$0xff] %v2289_v25  ;;  %v2707_v38 = vmax.f32 %v2039_v12, 0.0  ;;  %v2708_v4 = vmax.f32 %v2043_v16, 0.0  ;;  %v2709_v8 = vmax.f32 %v2047_v20, 0.0  ;;  %v2334_v62 = vsub.f32 %v2710_v41, %v2232_v50 }
 0x1be   :  { %2704 = vst [vmem:[#allocation6_spill] sm:$0xff] %v2292_v34  ;;  %v2303_v18 = vsub.f32 %v2705_v19, %v2232_v50  ;;  %v2308_v6 = vsub.f32 %v2706_v63, %v2232_v50  ;;  %v2341_v55 = vsub.f32 %v2711_v11, %v2232_v50  ;;  %v2712_v63 = vmax.f32 %v2059_v32, 0.0 }
 0x1bf   :  { %v2313_v1 = vsub.f32 %v2707_v38, %v2232_v50  ;;  %v2322_v31 = vsub.f32 %v2708_v4, %v2232_v50  ;;  %v2327_v45 = vsub.f32 %v2709_v8, %v2232_v50  ;;  %v832_v24 = vmul.f32 %v2334_v62, %v2334_v62 }
 0x1c0   :  { %v827_v15 = vmul.f32 %v2303_v18, %v2303_v18  ;;  %v828_v29 = vmul.f32 %v2308_v6, %v2308_v6  ;;  %v2348_v38 = vsub.f32 %v2712_v63, %v2232_v50  ;;  %v833_v28 = vmul.f32 %v2341_v55, %v2341_v55 }
 0x1c1   :  { %v829_v12 = vmul.f32 %v2313_v1, %v2313_v1  ;;  %v830_v47 = vmul.f32 %v2322_v31, %v2322_v31  ;;  %v831_v20 = vmul.f32 %v2327_v45, %v2327_v45 }
 0x1c2   :  { %v876_v33 = vadd.f32 %v828_v29, %v827_v15  ;;  %v2713_v29 = vmax.f32 %v2070_v40, 0.0  ;;  %v834_v32 = vmul.f32 %v2348_v38, %v2348_v38 }
 0x1c4   :  { %v877_v16 = vadd.f32 %v876_v33, %v829_v12  ;;  %v2355_v4 = vsub.f32 %v2713_v29, %v2232_v50  ;;  %v2714_v12 = vmax.f32 %v2077_v46, 0.0 }
 0x1c6   :  { %v878_v19 = vadd.f32 %v877_v16, %v830_v47  ;;  %v2362_v33 = vsub.f32 %v2714_v12, %v2232_v50  ;;  %v2715_v47 = vmax.f32 %v2087_v54, 0.0  ;;  %v835_v40 = vmul.f32 %v2355_v4, %v2355_v4 }
 0x1c8   :  { %v879_v15 = vadd.f32 %v878_v19, %v831_v20  ;;  %v2369_v16 = vsub.f32 %v2715_v47, %v2232_v50  ;;  %v2716_v20 = vmax.f32 %v2092_v59, 0.0  ;;  %v836_v46 = vmul.f32 %v2362_v33, %v2362_v33 }
 0x1ca   :  { %v880_v8 = vadd.f32 %v879_v15, %v832_v24  ;;  %v2376_v19 = vsub.f32 %v2716_v20, %v2232_v50  ;;  %v2717_v24 = vmax.f32 %v2102_v3, 0.0  ;;  %v837_v54 = vmul.f32 %v2369_v16, %v2369_v16 }
 0x1cc   :  { %v881_v41 = vadd.f32 %v880_v8, %v833_v28  ;;  %v2383_v15 = vsub.f32 %v2717_v24, %v2232_v50  ;;  %v2718_v28 = vmax.f32 %v2108_v14, 0.0  ;;  %v838_v59 = vmul.f32 %v2376_v19, %v2376_v19 }
 0x1ce   :  { %v882_v11 = vadd.f32 %v881_v41, %v834_v32  ;;  %v2390_v8 = vsub.f32 %v2718_v28, %v2232_v50  ;;  %v2719_v32 = vmax.f32 %v2118_v30, 0.0  ;;  %v839_v3 = vmul.f32 %v2383_v15, %v2383_v15 }
 0x1d0   :  { %v883_v63 = vadd.f32 %v882_v11, %v835_v40  ;;  %v2397_v41 = vsub.f32 %v2719_v32, %v2232_v50  ;;  %v2720_v40 = vmax.f32 %v2125_v44, 0.0  ;;  %v840_v14 = vmul.f32 %v2390_v8, %v2390_v8 }
 0x1d2   :  { %v884_v29 = vadd.f32 %v883_v63, %v836_v46  ;;  %v2404_v11 = vsub.f32 %v2720_v40, %v2232_v50  ;;  %v2721_v46 = vmax.f32 %v2135_v61, 0.0  ;;  %v841_v30 = vmul.f32 %v2397_v41, %v2397_v41 }
 0x1d4   :  { %v885_v12 = vadd.f32 %v884_v29, %v837_v54  ;;  %v2411_v63 = vsub.f32 %v2721_v46, %v2232_v50  ;;  %v2722_v54 = vmax.f32 %v2140_v10, 0.0  ;;  %v842_v44 = vmul.f32 %v2404_v11, %v2404_v11 }
 0x1d6   :  { %v886_v47 = vadd.f32 %v885_v12, %v838_v59  ;;  %v2418_v29 = vsub.f32 %v2722_v54, %v2232_v50  ;;  %v2723_v59 = vmax.f32 %v2150_v42, 0.0  ;;  %v843_v61 = vmul.f32 %v2411_v63, %v2411_v63 }
 0x1d8   :  { %v887_v20 = vadd.f32 %v886_v47, %v839_v3  ;;  %v2425_v12 = vsub.f32 %v2723_v59, %v2232_v50  ;;  %v2724_v3 = vmax.f32 %v2156_v7, 0.0  ;;  %v844_v10 = vmul.f32 %v2418_v29, %v2418_v29 }
 0x1da   :  { %v888_v24 = vadd.f32 %v887_v20, %v840_v14  ;;  %v2432_v47 = vsub.f32 %v2724_v3, %v2232_v50  ;;  %v2725_v14 = vmax.f32 %v2166_v36, 0.0  ;;  %v845_v42 = vmul.f32 %v2425_v12, %v2425_v12 }
 0x1dc   :  { %v889_v28 = vadd.f32 %v888_v24, %v841_v30  ;;  %v2439_v20 = vsub.f32 %v2725_v14, %v2232_v50  ;;  %v2726_v30 = vmax.f32 %v2173_v39, 0.0  ;;  %v846_v7 = vmul.f32 %v2432_v47, %v2432_v47 }
 0x1de   :  { %v890_v32 = vadd.f32 %v889_v28, %v842_v44  ;;  %v2446_v24 = vsub.f32 %v2726_v30, %v2232_v50  ;;  %v2727_v44 = vmax.f32 %v2183_v58, 0.0  ;;  %v847_v36 = vmul.f32 %v2439_v20, %v2439_v20 }
 0x1e0   :  { %v891_v40 = vadd.f32 %v890_v32, %v843_v61  ;;  %v2453_v28 = vsub.f32 %v2727_v44, %v2232_v50  ;;  %v2728_v61 = vmax.f32 %v2188_v56, 0.0  ;;  %v848_v39 = vmul.f32 %v2446_v24, %v2446_v24 }
 0x1e2   :  { %v892_v46 = vadd.f32 %v891_v40, %v844_v10  ;;  %v2460_v32 = vsub.f32 %v2728_v61, %v2232_v50  ;;  %v2729_v10 = vmax.f32 %v2195_v53, 0.0  ;;  %v849_v58 = vmul.f32 %v2453_v28, %v2453_v28 }
 0x1e4   :  { %v893_v54 = vadd.f32 %v892_v46, %v845_v42  ;;  %v2467_v40 = vsub.f32 %v2729_v10, %v2232_v50  ;;  %v2730_v42 = vld [vmem:[#allocation3_spill] sm:$0xff]  ;;  %v850_v56 = vmul.f32 %v2460_v32, %v2460_v32 }
 0x1e5   :  { %v2731_v46 = vmax.f32 %v2730_v42, 0.0 }
 0x1e6   :  { %v894_v59 = vadd.f32 %v893_v54, %v846_v7  ;;  %v2732_v54 = vld [vmem:[#allocation2_spill] sm:$0xff]  ;;  %v851_v53 = vmul.f32 %v2467_v40, %v2467_v40 }
 0x1e7   :  { %v2474_v30 = vsub.f32 %v2731_v46, %v2232_v50  ;;  %v2733_v44 = vmax.f32 %v2732_v54, 0.0  ;;  %v856_v46 = vmul.f32 %v2241_v23, %v2241_v23 }
 0x1e8   :  { %v895_v3 = vadd.f32 %v894_v59, %v847_v36 }
 0x1e9   :  { %v2481_v36 = vsub.f32 %v2733_v44, %v2232_v50  ;;  %v852_v61 = vmul.f32 %v2474_v30, %v2474_v30  ;;  %v855_v50 = vmul.f32 %v2238_v27, %v2238_v27  ;;  %v858_v44 = vmul.f32 %v2247_v60, %v2247_v60 }
 0x1ea   :  { %v896_v14 = vadd.f32 %v895_v3, %v848_v39 }
 0x1eb   :  { %v853_v3 = vmul.f32 %v2481_v36, %v2481_v36 }
 0x1ec   :  { %v897_v7 = vadd.f32 %v896_v14, %v849_v58  ;;  %v854_v58 = vmul.f32 %v2235_v57, %v2235_v57 }
 0x1ee   :  { %v898_v59 = vadd.f32 %v897_v7, %v850_v56  ;;  %v857_v7 = vmul.f32 %v2244_v35, %v2244_v35 }
 0x1f0   :  { %v899_v39 = vadd.f32 %v898_v59, %v851_v53  ;;  %v859_v59 = vmul.f32 %v2250_v5, %v2250_v5 }
 0x1f2   :  { %v900_v10 = vadd.f32 %v899_v39, %v852_v61  ;;  %v860_v39 = vmul.f32 %v2253_v43, %v2253_v43 }
 0x1f4   :  { %v901_v14 = vadd.f32 %v900_v10, %v853_v3  ;;  %v861_v10 = vmul.f32 %v2256_v51, %v2256_v51 }
 0x1f6   :  { %v902_v42 = vadd.f32 %v901_v14, %v854_v58  ;;  %v862_v14 = vmul.f32 %v2259_v2, %v2259_v2 }
 0x1f8   :  { %v903_v56 = vadd.f32 %v902_v42, %v855_v50  ;;  %v863_v42 = vmul.f32 %v2262_v49, %v2262_v49 }
 0x1fa   :  { %v904_v54 = vadd.f32 %v903_v56, %v856_v46  ;;  %v864_v56 = vmul.f32 %v2265_v48, %v2265_v48 }
 0x1fc   :  { %v905_v53 = vadd.f32 %v904_v54, %v857_v7  ;;  %v865_v54 = vmul.f32 %v2268_v26, %v2268_v26 }
 0x1fe   :  { %v906_v61 = vadd.f32 %v905_v53, %v858_v44  ;;  %v866_v53 = vmul.f32 %v2271_v37, %v2271_v37 }
 0x200   :  { %v907_v3 = vadd.f32 %v906_v61, %v859_v59  ;;  %v867_v61 = vmul.f32 %v2274_v9, %v2274_v9 }
 0x202   :  { %v908_v58 = vadd.f32 %v907_v3, %v860_v39  ;;  %v868_v3 = vmul.f32 %v2277_v52, %v2277_v52 }
 0x204   :  { %v909_v50 = vadd.f32 %v908_v58, %v861_v10  ;;  %v869_v58 = vmul.f32 %v2280_v13, %v2280_v13 }
 0x206   :  { %v910_v46 = vadd.f32 %v909_v50, %v862_v14  ;;  %v870_v50 = vmul.f32 %v2283_v17, %v2283_v17 }
 0x208   :  { %v911_v7 = vadd.f32 %v910_v46, %v863_v42  ;;  %v871_v46 = vmul.f32 %v2286_v21, %v2286_v21 }
 0x20a   :  { %v912_v44 = vadd.f32 %v911_v7, %v864_v56  ;;  %v872_v7 = vmul.f32 %v2289_v25, %v2289_v25 }
 0x20c   :  { %v913_v59 = vadd.f32 %v912_v44, %v865_v54  ;;  %v873_v44 = vmul.f32 %v2292_v34, %v2292_v34 }
 0x20e   :  { %v914_v39 = vadd.f32 %v913_v59, %v866_v53  ;;  %v874_v59 = vmul.f32 %v2295_v22, %v2295_v22 }
 0x210   :  { %v915_v10 = vadd.f32 %v914_v39, %v867_v61  ;;  %v875_v39 = vmul.f32 %v2298_v0, %v2298_v0 }
 0x212   :  { %v916_v14 = vadd.f32 %v915_v10, %v868_v3 }
 0x214   :  { %v917_v42 = vadd.f32 %v916_v14, %v869_v58 }
 0x216   :  { %v918_v56 = vadd.f32 %v917_v42, %v870_v50 }
 0x218   :  { %v919_v54 = vadd.f32 %v918_v56, %v871_v46 }
 0x21a   :  { %v920_v53 = vadd.f32 %v919_v54, %v872_v7 }
 0x21c   :  { %v921_v61 = vadd.f32 %v920_v53, %v873_v44 }
 0x21e   :  { %v922_v3 = vadd.f32 %v921_v61, %v874_v59 }
 0x220   :  { %v923_v10 = vadd.f32 %v922_v3, %v875_v39 }
 0x222   :  { %v924_v58 = vrot.slane %v923_v10, 4 }
 0x224   :  { %v925_v14 = vadd.f32 %v924_v58, %v923_v10  ;;  %v2735_v10 = vld [vmem:[#allocation5_spill] sm:$0xff]  ;;  %v2736_v58 = vld [vmem:[#allocation6_spill] sm:$0xff] }
 0x226   :  { %v926_v50 = vrot.slane %v925_v14, 2 }
 0x228   :  { %v927_v42 = vadd.f32 %v926_v50, %v925_v14 }
 0x22a   :  { %v928_v21 = vrot.slane %v927_v42, 1 }
 0x22c   :  { %v929_v25 = vadd.f32 %v928_v21, %v927_v42 }
 0x22e   :  { %v930_v46 = vmul.f32 0.0025510204, %v929_v25 }
 0x230   :  { %v931_v56 = vadd.f32 1e-05, %v930_v46 }
 0x232   :  { %1776 = vrsqrt.f32 %v931_v56 }
 0x23c   :  { %v1777_v34 = vpop.eup %1776 }
 0x23d   :  { %v933_v7 = vmul.f32 %v1777_v34, %v2303_v18  ;;  %v934_v54 = vmul.f32 %v1777_v34, %v2308_v6  ;;  %v935_v44 = vmul.f32 %v1777_v34, %v2313_v1  ;;  %v936_v53 = vmul.f32 %v1777_v34, %v2322_v31 }
 0x23e   :  { %v937_v59 = vmul.f32 %v1777_v34, %v2327_v45  ;;  %v938_v61 = vmul.f32 %v1777_v34, %v2334_v62  ;;  %v939_v39 = vmul.f32 %v1777_v34, %v2341_v55  ;;  %v940_v21 = vmul.f32 %v1777_v34, %v2348_v38 }
 0x23f   :  { %v941_v25 = vmul.f32 %v1777_v34, %v2355_v4  ;;  %v942_v3 = vmul.f32 %v1777_v34, %v2362_v33  ;;  %v943_v18 = vmul.f32 %v1777_v34, %v2369_v16  ;;  %v944_v6 = vmul.f32 %v1777_v34, %v2376_v19 }
 0x240   :  { %v945_v1 = vmul.f32 %v1777_v34, %v2383_v15  ;;  %v946_v31 = vmul.f32 %v1777_v34, %v2390_v8  ;;  %v947_v45 = vmul.f32 %v1777_v34, %v2397_v41  ;;  %v948_v62 = vmul.f32 %v1777_v34, %v2404_v11 }
 0x241   :  { %v949_v55 = vmul.f32 %v1777_v34, %v2411_v63  ;;  %v950_v38 = vmul.f32 %v1777_v34, %v2418_v29  ;;  %v951_v4 = vmul.f32 %v1777_v34, %v2425_v12  ;;  %v952_v33 = vmul.f32 %v1777_v34, %v2432_v47 }
 0x242   :  { %v953_v16 = vmul.f32 %v1777_v34, %v2439_v20  ;;  %v954_v19 = vmul.f32 %v1777_v34, %v2446_v24  ;;  %v955_v15 = vmul.f32 %v1777_v34, %v2453_v28  ;;  %v956_v8 = vmul.f32 %v1777_v34, %v2460_v32 }
 0x243   :  { %v957_v41 = vmul.f32 %v1777_v34, %v2467_v40  ;;  %v958_v11 = vmul.f32 %v1777_v34, %v2474_v30  ;;  %v959_v63 = vmul.f32 %v1777_v34, %v2481_v36  ;;  %v960_v29 = vmul.f32 %v1777_v34, %v2235_v57 }
 0x244   :  { %v961_v12 = vmul.f32 %v1777_v34, %v2238_v27  ;;  %v962_v47 = vmul.f32 %v1777_v34, %v2241_v23  ;;  %v963_v20 = vmul.f32 %v1777_v34, %v2244_v35  ;;  %v964_v24 = vmul.f32 %v1777_v34, %v2247_v60  ;;  %v1410_v35 = vld [vmem:[%s2665_s2] ss:$0 sm:$0xff] }
 0x245   :  { %v965_v28 = vmul.f32 %v1777_v34, %v2250_v5  ;;  %v966_v32 = vmul.f32 %v1777_v34, %v2253_v43  ;;  %v967_v40 = vmul.f32 %v1777_v34, %v2256_v51  ;;  %v968_v30 = vmul.f32 %v1777_v34, %v2259_v2  ;;  %v2734_v2 = vld [vmem:[#allocation4_spill] sm:$0xff] }
 0x246   :  { %v969_v36 = vmul.f32 %v1777_v34, %v2262_v49  ;;  %v970_v57 = vmul.f32 %v1777_v34, %v2265_v48  ;;  %v971_v27 = vmul.f32 %v1777_v34, %v2268_v26  ;;  %v972_v23 = vmul.f32 %v1777_v34, %v2271_v37 }
 0x247   :  { %v973_v60 = vmul.f32 %v1777_v34, %v2274_v9  ;;  %v974_v5 = vmul.f32 %v1777_v34, %v2277_v52  ;;  %v975_v43 = vmul.f32 %v1777_v34, %v2280_v13  ;;  %v976_v51 = vmul.f32 %v1777_v34, %v2283_v17 }
 0x248   :  { %v977_v49 = vmul.f32 %v1777_v34, %v2734_v2  ;;  %v978_v48 = vmul.f32 %v1777_v34, %v2735_v10  ;;  %v979_v26 = vmul.f32 %v1777_v34, %v2736_v58  ;;  %v980_v37 = vmul.f32 %v1777_v34, %v2295_v22 }
 0x249   :  { %v981_v14 = vmul.f32 %v1777_v34, %v2298_v0  ;;  %v989_v50 = vmul.f32 %v1410_v35, %v933_v7  ;;  %v990_v42 = vmul.f32 %v1410_v35, %v934_v54  ;;  %v991_v46 = vmul.f32 %v1410_v35, %v935_v44 }
 0x24a   :  { %v992_v9 = vmul.f32 %v1410_v35, %v936_v53  ;;  %v993_v56 = vmul.f32 %v1410_v35, %v937_v59  ;;  %v994_v52 = vmul.f32 %v1410_v35, %v938_v61  ;;  %v995_v13 = vmul.f32 %v1410_v35, %v939_v39 }
 0x24b   :  { %v996_v17 = vmul.f32 %v1410_v35, %v940_v21  ;;  %v997_v2 = vmul.f32 %v1410_v35, %v941_v25  ;;  %v998_v10 = vmul.f32 %v1410_v35, %v942_v3  ;;  %v999_v58 = vmul.f32 %v1410_v35, %v943_v18 }
 0x24c   :  { %v1000_v22 = vmul.f32 %v1410_v35, %v944_v6  ;;  %v1001_v0 = vmul.f32 %v1410_v35, %v945_v1  ;;  %v1002_v34 = vmul.f32 %v1410_v35, %v946_v31  ;;  %v1003_v7 = vmul.f32 %v1410_v35, %v947_v45 }
 0x24d   :  { %v1004_v54 = vmul.f32 %v1410_v35, %v948_v62  ;;  %v1005_v44 = vmul.f32 %v1410_v35, %v949_v55  ;;  %v1006_v53 = vmul.f32 %v1410_v35, %v950_v38  ;;  %v1007_v59 = vmul.f32 %v1410_v35, %v951_v4 }
 0x24e   :  { %v1008_v61 = vmul.f32 %v1410_v35, %v952_v33  ;;  %v1009_v39 = vmul.f32 %v1410_v35, %v953_v16  ;;  %v1010_v21 = vmul.f32 %v1410_v35, %v954_v19  ;;  %v1011_v25 = vmul.f32 %v1410_v35, %v955_v15 }
 0x24f   :  { %v1012_v3 = vmul.f32 %v1410_v35, %v956_v8  ;;  %v1013_v18 = vmul.f32 %v1410_v35, %v957_v41  ;;  %v1014_v6 = vmul.f32 %v1410_v35, %v958_v11  ;;  %v1015_v1 = vmul.f32 %v1410_v35, %v959_v63  ;;  %v1411_v11 = vld [vmem:[%s2666_s3] ss:$0 sm:$0xff] }
 0x250   :  { %v1016_v31 = vmul.f32 %v1410_v35, %v960_v29  ;;  %v1017_v45 = vmul.f32 %v1410_v35, %v961_v12  ;;  %v1018_v62 = vmul.f32 %v1410_v35, %v962_v47  ;;  %v1019_v55 = vmul.f32 %v1410_v35, %v963_v20 }
 0x251   :  { %v1020_v38 = vmul.f32 %v1410_v35, %v964_v24  ;;  %v1021_v4 = vmul.f32 %v1410_v35, %v965_v28  ;;  %v1022_v33 = vmul.f32 %v1410_v35, %v966_v32  ;;  %v1023_v16 = vmul.f32 %v1410_v35, %v967_v40 }
 0x252   :  { %v1024_v19 = vmul.f32 %v1410_v35, %v968_v30  ;;  %v1025_v15 = vmul.f32 %v1410_v35, %v969_v36  ;;  %v1026_v8 = vmul.f32 %v1410_v35, %v970_v57  ;;  %v1027_v41 = vmul.f32 %v1410_v35, %v971_v27 }
 0x253   :  { %v1028_v63 = vmul.f32 %v1410_v35, %v972_v23  ;;  %v1029_v29 = vmul.f32 %v1410_v35, %v973_v60  ;;  %v1030_v12 = vmul.f32 %v1410_v35, %v974_v5  ;;  %v1031_v47 = vmul.f32 %v1410_v35, %v975_v43 }
 0x254   :  { %v1032_v20 = vmul.f32 %v1410_v35, %v976_v51  ;;  %v1033_v24 = vmul.f32 %v1410_v35, %v977_v49  ;;  %v1034_v28 = vmul.f32 %v1410_v35, %v978_v48  ;;  %v1035_v32 = vmul.f32 %v1410_v35, %v979_v26 }
 0x255   :  { %v1036_v40 = vmul.f32 %v1410_v35, %v980_v37  ;;  %v1037_v30 = vmul.f32 %v1410_v35, %v981_v14  ;;  %v1045_v36 = vadd.f32 %v1411_v11, %v989_v50  ;;  %v1046_v57 = vadd.f32 %v1411_v11, %v990_v42 }
 0x256   :  { %v1047_v27 = vadd.f32 %v1411_v11, %v991_v46  ;;  %v1048_v23 = vadd.f32 %v1411_v11, %v992_v9  ;;  %v1049_v60 = vadd.f32 %v1411_v11, %v993_v56  ;;  %v1050_v5 = vadd.f32 %v1411_v11, %v994_v52 }
 0x257   :  { %v1051_v43 = vadd.f32 %v1411_v11, %v995_v13  ;;  %v1052_v51 = vadd.f32 %v1411_v11, %v996_v17  ;;  %v1053_v49 = vadd.f32 %v1411_v11, %v997_v2  ;;  %v1054_v48 = vadd.f32 %v1411_v11, %v998_v10 }
 0x258   :  { %v1055_v26 = vadd.f32 %v1411_v11, %v999_v58  ;;  %v1056_v37 = vadd.f32 %v1411_v11, %v1000_v22  ;;  %v1057_v14 = vadd.f32 %v1411_v11, %v1001_v0  ;;  %v1058_v35 = vadd.f32 %v1411_v11, %v1002_v34 }
 0x259   :  { %v1059_v50 = vadd.f32 %v1411_v11, %v1003_v7  ;;  %v1060_v42 = vadd.f32 %v1411_v11, %v1004_v54  ;;  %v1061_v46 = vadd.f32 %v1411_v11, %v1005_v44  ;;  %v1062_v9 = vadd.f32 %v1411_v11, %v1006_v53 }
 0x25a   :  { %v1063_v56 = vadd.f32 %v1411_v11, %v1007_v59  ;;  %v1064_v52 = vadd.f32 %v1411_v11, %v1008_v61  ;;  %v1065_v13 = vadd.f32 %v1411_v11, %v1009_v39  ;;  %v1066_v17 = vadd.f32 %v1411_v11, %v1010_v21 }
 0x25b   :  { %v1067_v2 = vadd.f32 %v1411_v11, %v1011_v25  ;;  %v1068_v10 = vadd.f32 %v1411_v11, %v1012_v3  ;;  %v1069_v58 = vadd.f32 %v1411_v11, %v1013_v18  ;;  %v1070_v22 = vadd.f32 %v1411_v11, %v1014_v6 }
 0x25c   :  { %v1071_v0 = vadd.f32 %v1411_v11, %v1015_v1  ;;  %v1072_v34 = vadd.f32 %v1411_v11, %v1016_v31  ;;  %v1073_v7 = vadd.f32 %v1411_v11, %v1017_v45  ;;  %v1074_v54 = vadd.f32 %v1411_v11, %v1018_v62 }
 0x25d   :  { %v1075_v44 = vadd.f32 %v1411_v11, %v1019_v55  ;;  %v1076_v53 = vadd.f32 %v1411_v11, %v1020_v38  ;;  %v1077_v59 = vadd.f32 %v1411_v11, %v1021_v4  ;;  %v1078_v61 = vadd.f32 %v1411_v11, %v1022_v33 }
 0x25e   :  { %v1079_v39 = vadd.f32 %v1411_v11, %v1023_v16  ;;  %v1080_v21 = vadd.f32 %v1411_v11, %v1024_v19  ;;  %v1081_v25 = vadd.f32 %v1411_v11, %v1025_v15  ;;  %v1082_v3 = vadd.f32 %v1411_v11, %v1026_v8 }
 0x25f   :  { %v1083_v18 = vadd.f32 %v1411_v11, %v1027_v41  ;;  %v1084_v6 = vadd.f32 %v1411_v11, %v1028_v63  ;;  %v1085_v1 = vadd.f32 %v1411_v11, %v1029_v29  ;;  %v1086_v31 = vadd.f32 %v1411_v11, %v1030_v12 }
 0x260   :  { %v1087_v45 = vadd.f32 %v1411_v11, %v1031_v47  ;;  %v1088_v62 = vadd.f32 %v1411_v11, %v1032_v20  ;;  %v1089_v55 = vadd.f32 %v1411_v11, %v1033_v24  ;;  %v1090_v38 = vadd.f32 %v1411_v11, %v1034_v28 }
 0x261   :  { %v1091_v4 = vadd.f32 %v1411_v11, %v1035_v32  ;;  %v1092_v33 = vadd.f32 %v1411_v11, %v1036_v40  ;;  %v1093_v16 = vadd.f32 %v1411_v11, %v1037_v30  ;;  %v1513_v19 = vpack.c.bf16 %v1046_v57, %v1045_v36 }
 0x262   :  { %v1518_v15 = vpack.c.bf16 %v1048_v23, %v1047_v27  ;;  %v1523_v8 = vpack.c.bf16 %v1050_v5, %v1049_v60  ;;  %v1528_v41 = vpack.c.bf16 %v1052_v51, %v1051_v43  ;;  %v1533_v63 = vpack.c.bf16 %v1054_v48, %v1053_v49 }
 0x263   :  { %v1509_v29 = vpack.c.bf16 %v1093_v16, %v1093_v16  ;;  %1514 = vst [vmem:[%s2667_s4] sm:$0xff] %v1513_v19   ;;  %v1538_v12 = vpack.c.bf16 %v1056_v37, %v1055_v26  ;;  %v1543_v47 = vpack.c.bf16 %v1058_v35, %v1057_v14  ;;  %v1548_v20 = vpack.c.bf16 %v1060_v42, %v1059_v50 }
 0x264   :  { %1630 = vst [vmem:[%s2667_s4 + $0x8] sm:$0xff] %v1518_v15   ;;  %1631 = vst [vmem:[%s2667_s4 + $0x10] sm:$0xff] %v1523_v8   ;;  %v1553_v11 = vpack.c.bf16 %v1062_v9, %v1061_v46  ;;  %v1558_v24 = vpack.c.bf16 %v1064_v52, %v1063_v56  ;;  %v1563_v28 = vpack.c.bf16 %v1066_v17, %v1065_v13 }
 0x265   :  { %1632 = vst [vmem:[%s2667_s4 + $0x18] sm:$0xff] %v1528_v41   ;;  %1633 = vst [vmem:[%s2667_s4 + $0x20] sm:$0xff] %v1533_v63   ;;  %v1568_v32 = vpack.c.bf16 %v1068_v10, %v1067_v2  ;;  %v1573_v40 = vpack.c.bf16 %v1070_v22, %v1069_v58  ;;  %v1578_v30 = vpack.c.bf16 %v1072_v34, %v1071_v0 }
 0x266   :  { %1634 = vst [vmem:[%s2667_s4 + $0x28] sm:$0xff] %v1538_v12   ;;  %1635 = vst [vmem:[%s2667_s4 + $0x30] sm:$0xff] %v1543_v47   ;;  %v1583_v36 = vpack.c.bf16 %v1074_v54, %v1073_v7  ;;  %v1588_v57 = vpack.c.bf16 %v1076_v53, %v1075_v44  ;;  %v1593_v27 = vpack.c.bf16 %v1078_v61, %v1077_v59 }
 0x267   :  { %1636 = vst [vmem:[%s2667_s4 + $0x38] sm:$0xff] %v1548_v20   ;;  %1339 = vst [vmem:[%s2667_s4 + $0xc0] sm:$0xf] %v1509_v29  ;;  %v1598_v23 = vpack.c.bf16 %v1080_v21, %v1079_v39  ;;  %v1603_v60 = vpack.c.bf16 %v1082_v3, %v1081_v25  ;;  %v1608_v5 = vpack.c.bf16 %v1084_v6, %v1083_v18 }
 0x268   :  { %1637 = vst [vmem:[%s2667_s4 + $0x40] sm:$0xff] %v1553_v11   ;;  %1638 = vst [vmem:[%s2667_s4 + $0x48] sm:$0xff] %v1558_v24   ;;  %v1613_v43 = vpack.c.bf16 %v1086_v31, %v1085_v1  ;;  %v1618_v51 = vpack.c.bf16 %v1088_v62, %v1087_v45  ;;  %v1623_v49 = vpack.c.bf16 %v1090_v38, %v1089_v55 }
 0x269   :  { %1639 = vst [vmem:[%s2667_s4 + $0x50] sm:$0xff] %v1563_v28   ;;  %1640 = vst [vmem:[%s2667_s4 + $0x58] sm:$0xff] %v1568_v32   ;;  %v1628_v48 = vpack.c.bf16 %v1092_v33, %v1091_v4 }
 0x26a   :  { %1641 = vst [vmem:[%s2667_s4 + $0x60] sm:$0xff] %v1573_v40   ;;  %1642 = vst [vmem:[%s2667_s4 + $0x68] sm:$0xff] %v1578_v30  }
 0x26b   :  { %1643 = vst [vmem:[%s2667_s4 + $0x70] sm:$0xff] %v1583_v36   ;;  %1644 = vst [vmem:[%s2667_s4 + $0x78] sm:$0xff] %v1588_v57  }
 0x26c   :  { %1645 = vst [vmem:[%s2667_s4 + $0x80] sm:$0xff] %v1593_v27   ;;  %1646 = vst [vmem:[%s2667_s4 + $0x88] sm:$0xff] %v1598_v23  }
 0x26d   :  { %1647 = vst [vmem:[%s2667_s4 + $0x90] sm:$0xff] %v1603_v60   ;;  %1648 = vst [vmem:[%s2667_s4 + $0x98] sm:$0xff] %v1608_v5  }
 0x26e   :  { %1649 = vst [vmem:[%s2667_s4 + $0xa0] sm:$0xff] %v1613_v43   ;;  %1650 = vst [vmem:[%s2667_s4 + $0xa8] sm:$0xff] %v1618_v51  }
 0x26f   :  { %1651 = vst [vmem:[%s2667_s4 + $0xb0] sm:$0xff] %v1623_v49   ;;  %1652 = vst [vmem:[%s2667_s4 + $0xb8] sm:$0xff] %v1628_v48  }

// kernel: autoencoder_forward.9
= control target key start
LH: loop header
LB: loop body
LE: loop exit
PB: predicated region body
PF: predicated region fallthrough
CT: control target
= control target key end

     0   :  { %s863_s15 = smov 0   ;;  %s960_s0 = inlined_call_operand.vmem [shape: bf16[512,128], index: 0, kind: input, shape index: {}]   ;;  %s961_s1 = inlined_call_operand.vmem [shape: bf16[128,128], index: 1, kind: input, shape index: {}]   ;;  %s962_s2 = inlined_call_operand.vmem [shape: f32[1,128], index: 2, kind: input, shape index: {}]   ;;  %s963_s3 = inlined_call_operand.vmem [shape: f32[1,128], index: 3, kind: input, shape index: {}]   ;;  %s964_s4 = inlined_call_operand.vmem [shape: f32[512,128], index: 4, kind: output, shape index: {}]  }
   0x1 LB: > { %s675_s16 = sadd.s32 4294967295, %s836_s15   ;;  %p679_p0 = scmp.ge.s32.totalorder %s836_s15, 1  ;;  %s836_s15 = sphi %s863_s15, %s14_s15  }
   0x2   : > { %p163_p1 = scmp.lt.s32.totalorder %s836_s15, 3 }
   0x4   : > { %p164_p2 = pnand %p679_p0, %p163_p1 }
   0x5   : > { %v806_v0 = vld [vmem:[%s961_s1] sm:$0xff] (!%p164_p2)   ;;  %s680_s17 = sshll.u32 (!%p164_p2), %s675_s16, 5  ;;  %v807_v1 = vld [vmem:[%s961_s1 + $0x8] sm:$0xff] (!%p164_p2)   ;;  %v808_v2 = vld [vmem:[%s961_s1 + $0x10] sm:$0xff] (!%p164_p2)  }
   0x6   : > { %167 = sbr.rel (%p164_p2) target bundleno = 280 (0x118), region = 36  ;;  %p190_p3 = scmp.lt.s32.totalorder (!%p164_p2), %s680_s17, 63  ;;  %734 = vmatprep.subr.bf16.mxu0 (!%p164_p2), %v806_v0  ;;  %782 = vmatprep.subr.bf16.mxu1 (!%p164_p2), %v806_v0  ;;  %v809_v3 = vld [vmem:[%s961_s1 + $0x18] sm:$0xff] (!%p164_p2)   ;;  %v810_v6 = vld [vmem:[%s961_s1 + $0x20] sm:$0xff] (!%p164_p2)   ;;  %v811_v7 = vld [vmem:[%s961_s1 + $0x28] sm:$0xff] (!%p164_p2)  }
   0x7   : > { %735 = vmatpush3.bf16.msra.mxu0 (!%p164_p2), %v806_v0  ;;  %790 = vmatpush3.bf16.msra.mxu1 (!%p164_p2), %v806_v0  ;;  %v812_v8 = vld [vmem:[%s961_s1 + $0x30] sm:$0xff] (!%p164_p2)   ;;  %v813_v9 = vld [vmem:[%s961_s1 + $0x38] sm:$0xff] (!%p164_p2)  }
   0x8   : > { %736 = vmatprep.subr.bf16.mxu0 (!%p164_p2), %v807_v1  ;;  %783 = vmatprep.subr.bf16.mxu1 (!%p164_p2), %v807_v1 }
   0xb   : > { %737 = vmatpush3.bf16.msra.mxu0 (!%p164_p2), %v807_v1  ;;  %791 = vmatpush3.bf16.msra.mxu1 (!%p164_p2), %v807_v1 }
   0xc   : > { %738 = vmatprep.subr.bf16.mxu0 (!%p164_p2), %v808_v2  ;;  %784 = vmatprep.subr.bf16.mxu1 (!%p164_p2), %v808_v2 }
   0xd   : > { %s966_s17 = smov (!%p190_p3, %s680_s17), 63 }
   0xe   : > { %s681_s22 = sshll.u32 %s966_s17, 2  ;;  %s683_s10 = sshll.u32 %s966_s17, 3 }
   0xf   : > { %s886_s25 = scalar_lea.vmem %s960_s0, %s681_s22  ;;  %739 = vmatpush3.bf16.msra.mxu0 %v808_v2  ;;  %792 = vmatpush3.bf16.msra.mxu1 %v808_v2  ;;  %s923_s13 = scalar_lea.vmem %s964_s4, %s683_s10 }
  0x10   : > { %v814_v4 = vld [vmem:[%s886_s25] sm:$0xff]   ;;  %740 = vmatprep.subr.bf16.mxu0 %v809_v3  ;;  %785 = vmatprep.subr.bf16.mxu1 %v809_v3  ;;  %v816_v10 = vld [vmem:[%s886_s25 + $0x8] sm:$0xff]   ;;  %v818_v12 = vld [vmem:[%s886_s25 + $0x10] sm:$0xff]  }
  0x11   : > { %v815_v5 = vld [vmem:[%s886_s25 + $0x40] sm:$0xff]   ;;  %750 = vmatprep.mubr.bf16.mxu0 %v814_v4  ;;  %v817_v11 = vld [vmem:[%s886_s25 + $0x48] sm:$0xff]   ;;  %v819_v13 = vld [vmem:[%s886_s25 + $0x50] sm:$0xff]  }
  0x12   : > { %766 = vmatprep.mubr.bf16.mxu1 %v815_v5  ;;  %v820_v14 = vld [vmem:[%s886_s25 + $0x18] sm:$0xff]   ;;  %v822_v16 = vld [vmem:[%s886_s25 + $0x20] sm:$0xff]   ;;  %v824_v18 = vld [vmem:[%s886_s25 + $0x28] sm:$0xff]  }
  0x13   : > { %741 = vmatpush3.bf16.msra.mxu0 %v809_v3  ;;  %793 = vmatpush3.bf16.msra.mxu1 %v809_v3  ;;  %v821_v15 = vld [vmem:[%s886_s25 + $0x58] sm:$0xff]   ;;  %v823_v17 = vld [vmem:[%s886_s25 + $0x60] sm:$0xff]   ;;  %v825_v19 = vld [vmem:[%s886_s25 + $0x68] sm:$0xff]  }
  0x14   : > { %742 = vmatprep.subr.bf16.mxu0 %v810_v6  ;;  %786 = vmatprep.subr.bf16.mxu1 %v810_v6  ;;  %v826_v20 = vld [vmem:[%s886_s25 + $0x30] sm:$0xff]   ;;  %v828_v22 = vld [vmem:[%s886_s25 + $0x38] sm:$0xff]  }
  0x15   : > { %v827_v21 = vld [vmem:[%s886_s25 + $0x70] sm:$0xff]   ;;  %v829_v23 = vld [vmem:[%s886_s25 + $0x78] sm:$0xff]  }
  0x17   : > { %743 = vmatpush3.bf16.msra.mxu0 %v810_v6  ;;  %794 = vmatpush3.bf16.msra.mxu1 %v810_v6 }
  0x18   : > { %744 = vmatprep.subr.bf16.mxu0 %v811_v7  ;;  %787 = vmatprep.subr.bf16.mxu1 %v811_v7 }
  0x1b   : > { %745 = vmatpush3.bf16.msra.mxu0 %v811_v7  ;;  %795 = vmatpush3.bf16.msra.mxu1 %v811_v7 }
  0x1c   : > { %746 = vmatprep.subr.bf16.mxu0 %v812_v8  ;;  %788 = vmatprep.subr.bf16.mxu1 %v812_v8 }
  0x1f   : > { %747 = vmatpush3.bf16.msra.mxu0 %v812_v8  ;;  %796 = vmatpush3.bf16.msra.mxu1 %v812_v8 }
  0x20   : > { %748 = vmatprep.subr.bf16.mxu0 %v813_v9  ;;  %789 = vmatprep.subr.bf16.mxu1 %v813_v9 }
  0x23   : > { %749 = vmatpush3.bf16.msra.mxu0 %v813_v9  ;;  %797 = vmatpush3.bf16.msra.mxu1 %v813_v9 }
  0x26   : > { %751 = vmatmul.mubr.bf16.vlgmr.msra.gmra.mrb[0].mxu0 %v816_v10  ;;  %767 = vmatmul.mubr.bf16.vlgmr.msra.gmra.mrb[0].mxu1 %v817_v11 }
  0x27   : > { %754 = vmatprep.mubr.bf16.mxu0 %v818_v12  ;;  %770 = vmatprep.mubr.bf16.mxu1 %v819_v13 }
  0x2e   : > { %755 = vmatmul.mubr.bf16.gmra.mrb[4].mxu0 %v820_v14  ;;  %771 = vmatmul.mubr.bf16.gmra.mrb[4].mxu1 %v821_v15 }
  0x2f   : > { %758 = vmatprep.mubr.bf16.mxu0 %v822_v16  ;;  %774 = vmatprep.mubr.bf16.mxu1 %v823_v17 }
  0x36   : > { %759 = vmatmul.mubr.bf16.gmra.mrb[8].mxu0 %v824_v18  ;;  %775 = vmatmul.mubr.bf16.gmra.mrb[8].mxu1 %v825_v19 }
  0x37   : > { %762 = vmatprep.mubr.bf16.mxu0 %v826_v20  ;;  %778 = vmatprep.mubr.bf16.mxu1 %v827_v21 }
  0x3e   : > { %763 = vmatmul.mubr.bf16.gmra.mrb[12].mxu0 %v828_v22  ;;  %779 = vmatmul.mubr.bf16.gmra.mrb[12].mxu1 %v829_v23 }
  0xf9   : > { %v752_v24 = vpop.f32.mrb[0].mxu0  ;;  %v768_v25 = vpop.f32.mrb[0].mxu1 }
  0xfa   : > { %v557_v26 = vmax.f32 %v752_v24, 0.0  ;;  %v573_v27 = vmax.f32 %v768_v25, 0.0  ;;  %v428_v28 = vpop.f32.mrb[1].mxu0  ;;  %v492_v29 = vpop.f32.mrb[1].mxu1 }
  0xfb   : > { %v555_v30 = vmax.f32 %v428_v28, 0.0  ;;  %v571_v31 = vmax.f32 %v492_v29, 0.0  ;;  %v753_v32 = vpop.f32.mrb[2].mxu0  ;;  %v769_v33 = vpop.f32.mrb[2].mxu1 }
  0xfc   : > { %589 = vst [vmem:[%s923_s13 + $0x10] sm:$0xff] %v557_v26  ;;  %605 = vst [vmem:[%s923_s13 + $0x90] sm:$0xff] %v573_v27  ;;  %v558_v34 = vmax.f32 %v753_v32, 0.0  ;;  %v574_v35 = vmax.f32 %v769_v33, 0.0  ;;  %v431_v36 = vpop.f32.mrb[3].mxu0  ;;  %v495_v37 = vpop.f32.mrb[3].mxu1 }
  0xfd   : > { %587 = vst [vmem:[%s923_s13] sm:$0xff] %v555_v30  ;;  %603 = vst [vmem:[%s923_s13 + $0x80] sm:$0xff] %v571_v31  ;;  %v556_v38 = vmax.f32 %v431_v36, 0.0  ;;  %v572_v39 = vmax.f32 %v495_v37, 0.0 }
  0xfe   : > { %590 = vst [vmem:[%s923_s13 + $0x18] sm:$0xff] %v558_v34  ;;  %606 = vst [vmem:[%s923_s13 + $0x98] sm:$0xff] %v574_v35 }
  0xff   : > { %588 = vst [vmem:[%s923_s13 + $0x8] sm:$0xff] %v556_v38  ;;  %604 = vst [vmem:[%s923_s13 + $0x88] sm:$0xff] %v572_v39 }
 0x101   : > { %v756_v40 = vpop.f32.mrb[4].mxu0  ;;  %v772_v41 = vpop.f32.mrb[4].mxu1 }
 0x102   : > { %v561_v42 = vmax.f32 %v756_v40, 0.0  ;;  %v577_v43 = vmax.f32 %v772_v41, 0.0  ;;  %v444_v44 = vpop.f32.mrb[5].mxu0  ;;  %v508_v45 = vpop.f32.mrb[5].mxu1 }
 0x103   : > { %v559_v46 = vmax.f32 %v444_v44, 0.0  ;;  %v575_v47 = vmax.f32 %v508_v45, 0.0  ;;  %v757_v48 = vpop.f32.mrb[6].mxu0  ;;  %v773_v49 = vpop.f32.mrb[6].mxu1 }
 0x104   : > { %593 = vst [vmem:[%s923_s13 + $0x30] sm:$0xff] %v561_v42  ;;  %609 = vst [vmem:[%s923_s13 + $0xb0] sm:$0xff] %v577_v43  ;;  %v562_v50 = vmax.f32 %v757_v48, 0.0  ;;  %v578_v51 = vmax.f32 %v773_v49, 0.0  ;;  %v447_v52 = vpop.f32.mrb[7].mxu0  ;;  %v511_v53 = vpop.f32.mrb[7].mxu1 }
 0x105   : > { %591 = vst [vmem:[%s923_s13 + $0x20] sm:$0xff] %v559_v46  ;;  %607 = vst [vmem:[%s923_s13 + $0xa0] sm:$0xff] %v575_v47  ;;  %v560_v54 = vmax.f32 %v447_v52, 0.0  ;;  %v576_v55 = vmax.f32 %v511_v53, 0.0 }
 0x106   : > { %594 = vst [vmem:[%s923_s13 + $0x38] sm:$0xff] %v562_v50  ;;  %610 = vst [vmem:[%s923_s13 + $0xb8] sm:$0xff] %v578_v51 }
 0x107   : > { %592 = vst [vmem:[%s923_s13 + $0x28] sm:$0xff] %v560_v54  ;;  %608 = vst [vmem:[%s923_s13 + $0xa8] sm:$0xff] %v576_v55 }
 0x109   : > { %v760_v56 = vpop.f32.mrb[8].mxu0  ;;  %v776_v57 = vpop.f32.mrb[8].mxu1 }
 0x10a   : > { %v565_v58 = vmax.f32 %v760_v56, 0.0  ;;  %v581_v59 = vmax.f32 %v776_v57, 0.0  ;;  %v460_v60 = vpop.f32.mrb[9].mxu0  ;;  %v524_v61 = vpop.f32.mrb[9].mxu1 }
 0x10b   : > { %v563_v62 = vmax.f32 %v460_v60, 0.0  ;;  %v579_v63 = vmax.f32 %v524_v61, 0.0  ;;  %v761_v0 = vpop.f32.mrb[10].mxu0  ;;  %v777_v1 = vpop.f32.mrb[10].mxu1 }
 0x10c   : > { %597 = vst [vmem:[%s923_s13 + $0x50] sm:$0xff] %v565_v58  ;;  %613 = vst [vmem:[%s923_s13 + $0xd0] sm:$0xff] %v581_v59  ;;  %v566_v2 = vmax.f32 %v761_v0, 0.0  ;;  %v582_v3 = vmax.f32 %v777_v1, 0.0  ;;  %v463_v4 = vpop.f32.mrb[11].mxu0  ;;  %v527_v5 = vpop.f32.mrb[11].mxu1 }
 0x10d   : > { %595 = vst [vmem:[%s923_s13 + $0x40] sm:$0xff] %v563_v62  ;;  %611 = vst [vmem:[%s923_s13 + $0xc0] sm:$0xff] %v579_v63  ;;  %v564_v6 = vmax.f32 %v463_v4, 0.0  ;;  %v580_v7 = vmax.f32 %v527_v5, 0.0 }
 0x10e   : > { %598 = vst [vmem:[%s923_s13 + $0x58] sm:$0xff] %v566_v2  ;;  %614 = vst [vmem:[%s923_s13 + $0xd8] sm:$0xff] %v582_v3 }
 0x10f   : > { %596 = vst [vmem:[%s923_s13 + $0x48] sm:$0xff] %v564_v6  ;;  %612 = vst [vmem:[%s923_s13 + $0xc8] sm:$0xff] %v580_v7 }
 0x111   : > { %v764_v8 = vpop.f32.mrb[12].mxu0  ;;  %v780_v9 = vpop.f32.mrb[12].mxu1 }
 0x112   : > { %v569_v10 = vmax.f32 %v764_v8, 0.0  ;;  %v585_v11 = vmax.f32 %v780_v9, 0.0  ;;  %v476_v12 = vpop.f32.mrb[13].mxu0  ;;  %v540_v13 = vpop.f32.mrb[13].mxu1 }
 0x113   : > { %v567_v14 = vmax.f32 %v476_v12, 0.0  ;;  %v583_v15 = vmax.f32 %v540_v13, 0.0  ;;  %v765_v16 = vpop.f32.mrb[14].mxu0  ;;  %v781_v17 = vpop.f32.mrb[14].mxu1 }
 0x114   : > { %601 = vst [vmem:[%s923_s13 + $0x70] sm:$0xff] %v569_v10  ;;  %617 = vst [vmem:[%s923_s13 + $0xf0] sm:$0xff] %v585_v11  ;;  %v570_v18 = vmax.f32 %v765_v16, 0.0  ;;  %v586_v19 = vmax.f32 %v781_v17, 0.0  ;;  %v479_v20 = vpop.f32.mrb[15].mxu0  ;;  %v543_v21 = vpop.f32.mrb[15].mxu1 }
 0x115   : > { %599 = vst [vmem:[%s923_s13 + $0x60] sm:$0xff] %v567_v14  ;;  %615 = vst [vmem:[%s923_s13 + $0xe0] sm:$0xff] %v583_v15  ;;  %v568_v22 = vmax.f32 %v479_v20, 0.0  ;;  %v584_v23 = vmax.f32 %v543_v21, 0.0 }
 0x116   : > { %602 = vst [vmem:[%s923_s13 + $0x78] sm:$0xff] %v570_v18  ;;  %618 = vst [vmem:[%s923_s13 + $0xf8] sm:$0xff] %v586_v19 }
 0x117   : > { %600 = vst [vmem:[%s923_s13 + $0x68] sm:$0xff] %v568_v22  ;;  %616 = vst [vmem:[%s923_s13 + $0xe8] sm:$0xff] %v584_v23 }
 0x118 PF: > { %s14_s15 = sadd.s32 1, %s836_s15  }
 0x119   : > { %p11_p4 = scmp.ge.s32.totalorder %s14_s15, 4  }
 0x11b   :  { %13 = sbr.rel (!%p11_p4) target bundleno = 1 (0x1), region = 66 }

</bundles_post_ra>
